<compile_context>
chip_gen: v7x
topology: tpu7x:2x2x1
jax: 0.10.0
libtpu: 0.0.40
codegen_flags: <defaults>
</compile_context>

<pallas_src>
import functools

import jax
import jax.numpy as jnp
from jax import lax
from jax.experimental import pallas as pl
from jax.experimental.pallas import tpu as pltpu

BN_EPS = 1e-5


# ----------------------------------------------------------------------------
# in-kernel helpers
# ----------------------------------------------------------------------------
def _shift_reflect_w(t, dx):
    """t: (th, W, C) -> out[:, j] = t[:, reflect(j + dx)], dx in {-1, 0, +1}."""
    if dx == 0:
        return t
    w = t.shape[1]
    if dx < 0:
        head = lax.slice_in_dim(t, 1, 2, axis=1)         # reflect of column -1
        body = lax.slice_in_dim(t, 0, w - 1, axis=1)
        return jnp.concatenate([head, body], axis=1)
    body = lax.slice_in_dim(t, 1, w, axis=1)
    tail = lax.slice_in_dim(t, w - 2, w - 1, axis=1)      # reflect of column W
    return jnp.concatenate([body, tail], axis=1)


def _halo_row_tile(ref, th):
    """ref: (1, H, W, C) resident block -> rows [r*th-1, r*th+th] with reflect
    (pad=1) applied at the global image boundary. Result: (th+2, W, C)."""
    r = pl.program_id(1)
    nrt = pl.num_programs(1)
    h = ref.shape[1]
    row0 = r * th
    top_i = jnp.where(r == 0, 1, row0 - 1)                # reflect of row -1
    bot_i = jnp.where(r == nrt - 1, h - 2, row0 + th)     # reflect of row H
    return jnp.concatenate([ref[0, pl.ds(top_i, 1)],
                            ref[0, pl.ds(row0, th)],
                            ref[0, pl.ds(bot_i, 1)]], axis=0)


def _im2col_row_tile(t, th):
    """t: (th+2, W, C) halo'd tile -> (th*W, 9*C) patches.

    Tap order matches w.reshape(9*C, Cout) of a (3, 3, C, Cout) weight:
    K index = (ky*3 + kx)*C + c with dy = ky-1, dx = kx-1.
    """
    w = t.shape[1]
    c = t.shape[2]
    cols = []
    for ky in range(3):
        ty = lax.slice_in_dim(t, ky, ky + th, axis=0)     # (th, W, C)
        for dx in (-1, 0, 1):
            cols.append(_shift_reflect_w(ty, dx).reshape(th * w, c))
    # TODO(synk): the +/-1 W shifts could use pltpu.roll (XLU) + an iota boundary
    # fix to free the vector-store slot on v5e; slice+concat kept for robustness.
    return jnp.concatenate(cols, axis=-1)


def _tile_stats(z):
    """z: (rows, C) f32 -> (8, C): row0 = per-tile sum, row1 = centered M2."""
    rows = z.shape[0]
    s = jnp.sum(z, axis=0, keepdims=True)
    mu = s * (1.0 / rows)
    m2 = jnp.sum((z - mu) ** 2, axis=0, keepdims=True)
    return jnp.concatenate([s, m2, jnp.zeros((6, z.shape[-1]), jnp.float32)],
                           axis=0)


# ----------------------------------------------------------------------------
# kernel 1: conv1 (im2col matmul per row tile) + per-tile BN1 partial stats
# ----------------------------------------------------------------------------
def _conv1_stats_kernel(x_ref, w_ref, z_ref, st_ref, *, th):
    w = x_ref.shape[2]
    xt = _halo_row_tile(x_ref, th)                         # (th+2, W, Cin) bf16
    patches = _im2col_row_tile(xt, th)                     # (th*W, 9*Cin) bf16
    z = jnp.dot(patches, w_ref[...],                       # single MXU matmul
                preferred_element_type=jnp.float32)        # (th*W, Cout) f32
    z_ref[0] = z.reshape(th, w, -1).astype(z_ref.dtype)    # bf16 store
    st_ref[0] = _tile_stats(z)                             # stats from f32 acc


# ----------------------------------------------------------------------------
# kernel 2: fused BN1 (precomputed scale/shift) + ReLU, conv2 per row tile,
#           per-tile BN2 partial stats
# ----------------------------------------------------------------------------
def _bn_relu_conv2_kernel(z1_ref, coef_ref, w_ref, z2_ref, st_ref, *, th):
    w = z1_ref.shape[2]
    zt = _halo_row_tile(z1_ref, th).astype(jnp.float32)    # (th+2, W, C) f32
    scale = coef_ref[0:1, :]                               # hoisted (1, C)
    shift = coef_ref[1:2, :]
    y = jnp.maximum(zt * scale + shift, 0.0).astype(jnp.bfloat16)
    patches = _im2col_row_tile(y, th)                      # (th*W, 9*C) bf16
    z2 = jnp.dot(patches, w_ref[...],
                 preferred_element_type=jnp.float32)       # (th*W, Cout) f32
    z2_ref[0] = z2.reshape(th, w, -1).astype(z2_ref.dtype)
    st_ref[0] = _tile_stats(z2)


# ----------------------------------------------------------------------------
# kernel 3: fused BN2 + ReLU, streaming row-tile write at true cout channels
# ----------------------------------------------------------------------------
def _bn_relu_out_kernel(z_ref, coef_ref, o_ref):
    scale = coef_ref[0:1, :]
    shift = coef_ref[1:2, :]
    z = z_ref[0].astype(jnp.float32)                       # (th, W, C)
    o_ref[0] = jnp.maximum(z * scale + shift, 0.0).astype(o_ref.dtype)


# ----------------------------------------------------------------------------
# tiny O(C) glue: Chan-style combine of per-tile (sum, M2) -> BN scale/shift
# ----------------------------------------------------------------------------
def _bn_coef(stats, gamma, beta, n_per_tile):
    c = stats.shape[-1]
    s_i = stats[:, 0, :]                                   # (T, C) per-tile sums
    m2_i = stats[:, 1, :]                                  # (T, C) per-tile M2
    t = s_i.shape[0]
    count = t * n_per_tile
    mean_i = s_i / n_per_tile
    mean = jnp.sum(s_i, axis=0) / count
    m2 = jnp.sum(m2_i, axis=0) + n_per_tile * jnp.sum((mean_i - mean[None, :]) ** 2,
                                                      axis=0)
    var = jnp.maximum(m2 / count, 0.0)                     # biased var (train mode)
    g = gamma.reshape(-1).astype(jnp.float32)
    b = beta.reshape(-1).astype(jnp.float32)
    scale = g * lax.rsqrt(var + BN_EPS)
    shift = b - mean * scale
    return jnp.zeros((8, c), jnp.float32).at[0].set(scale).at[1].set(shift)


def _pick_row_tile(h, w):
    """Largest divisor of H giving ~2K output rows per tile (bounds the per-tile
    im2col buffer / f32 accumulator for v5e's 16 MiB and v7x's 64 MiB VMEM)."""
    target = max(1, 2048 // max(1, w))
    t = min(h, target)
    while h % t:
        t -= 1
    return max(t, 1)


# ----------------------------------------------------------------------------
# public wrapper (NCHW in / NCHW out, like the PyTorch module)
# ----------------------------------------------------------------------------
@functools.partial(jax.jit, static_argnames=("row_tile",))
def conv_block(x_nchw, w1, g1, b1, w2, g2, b2, *, row_tile=None):
    """x_nchw: (N, Cin, H, W). w*: (3,3,Cin/out,Cout). g*/b*: (1, Cout)."""
    n, cin, h, w = x_nchw.shape
    cout = w1.shape[-1]
    th = row_tile if row_tile is not None else _pick_row_tile(h, w)
    assert h % th == 0 and h >= 2, "reflect pad=1 needs H>=2; th must divide H"
    nrt = h // th

    cparams = pltpu.CompilerParams(
        dimension_semantics=("parallel", "parallel"),
        vmem_limit_bytes=48 * 1024 * 1024)   # > 16/32 MiB defaults, < v7x 64 MiB

    # boundary relayout NCHW -> NHWC, bf16 (x only feeds a bf16 matmul)
    x = jnp.transpose(x_nchw, (0, 2, 3, 1)).astype(jnp.bfloat16)
    # weights in im2col layout, true channel counts (no lane padding in HBM)
    w1r = w1.reshape(9 * cin, cout).astype(jnp.bfloat16)
    w2r = w2.reshape(9 * cout, cout).astype(jnp.bfloat16)

    # ---- phase 1: conv1 + BN1 partial stats --------------------------------
    z1, st1 = pl.pallas_call(
        functools.partial(_conv1_stats_kernel, th=th),
        grid=(n, nrt),
        in_specs=[pl.BlockSpec((1, h, w, cin), lambda b, r: (b, 0, 0, 0)),
                  pl.BlockSpec((9 * cin, cout), lambda b, r: (0, 0))],
        out_specs=(pl.BlockSpec((1, th, w, cout), lambda b, r: (b, r, 0, 0)),
                   pl.BlockSpec((1, 8, cout), lambda b, r: (b * nrt + r, 0, 0))),
        out_shape=(jax.ShapeDtypeStruct((n, h, w, cout), jnp.bfloat16),
                   jax.ShapeDtypeStruct((n * nrt, 8, cout), jnp.float32)),
        compiler_params=cparams,
    )(x, w1r)

    coef1 = _bn_coef(st1, g1, b1, th * w)

    # ---- phase 2: BN1+ReLU (fused) -> conv2 + BN2 partial stats -------------
    z2, st2 = pl.pallas_call(
        functools.partial(_bn_relu_conv2_kernel, th=th),
        grid=(n, nrt),
        in_specs=[pl.BlockSpec((1, h, w, cout), lambda b, r: (b, 0, 0, 0)),
                  pl.BlockSpec((8, cout), lambda b, r: (0, 0)),
                  pl.BlockSpec((9 * cout, cout), lambda b, r: (0, 0))],
        out_specs=(pl.BlockSpec((1, th, w, cout), lambda b, r: (b, r, 0, 0)),
                   pl.BlockSpec((1, 8, cout), lambda b, r: (b * nrt + r, 0, 0))),
        out_shape=(jax.ShapeDtypeStruct((n, h, w, cout), jnp.bfloat16),
                   jax.ShapeDtypeStruct((n * nrt, 8, cout), jnp.float32)),
        compiler_params=cparams,
    )(z1, coef1, w2r)

    coef2 = _bn_coef(st2, g2, b2, th * w)

    # ---- phase 3: BN2+ReLU (fused), streaming row tiles ---------------------
    y = pl.pallas_call(
        _bn_relu_out_kernel,
        grid=(n, nrt),
        in_specs=[pl.BlockSpec((1, th, w, cout), lambda b, r: (b, r, 0, 0)),
                  pl.BlockSpec((8, cout), lambda b, r: (0, 0))],
        out_specs=pl.BlockSpec((1, th, w, cout), lambda b, r: (b, r, 0, 0)),
        out_shape=jax.ShapeDtypeStruct((n, h, w, cout), x_nchw.dtype),
        compiler_params=cparams,
    )(z2, coef2)

    # back to NCHW at the API boundary
    return jnp.transpose(y, (0, 3, 1, 2))


# ----------------------------------------------------------------------------
# pure-JAX reference (f32, HIGHEST precision) with identical module semantics
# ----------------------------------------------------------------------------
def _reference(x_nchw, w1, g1, b1, w2, g2, b2):
    def conv(x, w):
        xp = jnp.pad(x, ((0, 0), (0, 0), (1, 1), (1, 1)), mode="reflect")
        w_oihw = jnp.transpose(w, (3, 2, 0, 1))
        return lax.conv_general_dilated(
            xp, w_oihw, (1, 1), "VALID",
            dimension_numbers=("NCHW", "OIHW", "NCHW"),
            precision=lax.Precision.HIGHEST,
            preferred_element_type=jnp.float32)

    def bn_relu(y, g, b):
        mean = jnp.mean(y, axis=(0, 2, 3), keepdims=True)
        var = jnp.mean((y - mean) ** 2, axis=(0, 2, 3), keepdims=True)
        yhat = (y - mean) * lax.rsqrt(var + BN_EPS)
        return jnp.maximum(yhat * g.reshape(1, -1, 1, 1) + b.reshape(1, -1, 1, 1), 0.0)

    y = bn_relu(conv(x_nchw, w1), g1, b1)
    y = bn_relu(conv(y, w2), g2, b2)
    return y


if __name__ == "__main__":
    in_channel, out_channel = 4, 8
    N, H, W = 2, 16, 16

    key = jax.random.PRNGKey(0)
    kx, kw1, kw2 = jax.random.split(key, 3)

    x = jax.random.normal(kx, (N, in_channel, H, W), dtype=jnp.float32)

    # deterministic params (nn.Conv2d(bias=False) / nn.BatchNorm2d init shapes)
    w1 = jax.random.normal(kw1, (3, 3, in_channel, out_channel), jnp.float32) * 0.2
    w2 = jax.random.normal(kw2, (3, 3, out_channel, out_channel), jnp.float32) * 0.2
    g1 = jnp.ones((1, out_channel), jnp.float32)    # BatchNorm gamma init = 1
    b1 = jnp.zeros((1, out_channel), jnp.float32)   # BatchNorm beta  init = 0
    g2 = jnp.ones((1, out_channel), jnp.float32)
    b2 = jnp.zeros((1, out_channel), jnp.float32)
    # TODO(synk): BatchNorm running-stat (momentum) buffer updates are stateful
    # training bookkeeping, not part of the forward output; not reproduced.

    ref = jax.block_until_ready(_reference(x, w1, g1, b1, w2, g2, b2))

    # run both the auto-picked tile (single row tile at this tiny size) and an
    # explicit multi-row-tile config to exercise the halo path.
    for rt in (None, 8):
        out = jax.block_until_ready(
            conv_block(x, w1, g1, b1, w2, g2, b2, row_tile=rt))
        assert out.shape == (N, out_channel, H, W)
        err = float(jnp.max(jnp.abs(out - ref)))
        # tolerance accounts for bf16 MXU operands / bf16 intermediates vs f32 ref
        assert jnp.allclose(out, ref, atol=5e-2, rtol=5e-2), (rt, err)

    print("KERNEL_OK")
</pallas_src>

<mosaic_0001>
module attributes {stable_mosaic.version = 11 : i64} {
  func.func @_conv1_stats_kernel(%arg0: i32, %arg1: i32, %arg2: memref<1x16x16x4xbf16, #tpu.memory_space<vmem>>, %arg3: memref<36x8xbf16, #tpu.memory_space<vmem>>, %arg4: memref<1x16x16x8xbf16, #tpu.memory_space<vmem>>, %arg5: memref<1x8x8xf32, #tpu.memory_space<vmem>>) attributes {dimension_semantics = [#tpu.dimension_semantics<parallel>, #tpu.dimension_semantics<parallel>], iteration_bounds = array<i64: 2, 1>, scalar_prefetch = 0 : i64, scratch_operands = 0 : i64, tpu.core_type = #tpu.core_type<tc>, window_params = [{transform_indices = @transform_0, window_bounds = array<i64: 1, 16, 16, 4>}, {pipeline_mode = #tpu.pipeline_mode<synchronous>, transform_indices = @transform_1, window_bounds = array<i64: 36, 8>}, {transform_indices = @transform_2, window_bounds = array<i64: 1, 16, 16, 8>}, {transform_indices = @transform_3, window_bounds = array<i64: 1, 8, 8>}]} {
    %c16_i32 = arith.constant 16 : i32
    %0 = arith.muli %arg1, %c16_i32 : i32
    %c0_i32 = arith.constant 0 : i32
    %1 = arith.cmpi eq, %arg1, %c0_i32 : i32
    %c1_i32 = arith.constant 1 : i32
    %2 = arith.subi %0, %c1_i32 : i32
    %c1_i32_0 = arith.constant 1 : i32
    %3 = arith.select %1, %c1_i32_0, %2 : i32
    %c0_i32_1 = arith.constant 0 : i32
    %4 = arith.cmpi eq, %arg1, %c0_i32_1 : i32
    %c16_i32_2 = arith.constant 16 : i32
    %5 = arith.addi %0, %c16_i32_2 : i32
    %c14_i32 = arith.constant 14 : i32
    %6 = arith.select %4, %c14_i32, %5 : i32
    %c0 = arith.constant 0 : index
    %7 = arith.index_cast %3 : i32 to index
    %c0_3 = arith.constant 0 : index
    %c0_4 = arith.constant 0 : index
    %8 = vector.load %arg2[%c0, %7, %c0_3, %c0_4] : memref<1x16x16x4xbf16, #tpu.memory_space<vmem>>, vector<1x1x16x4xbf16>
    %9 = vector.shape_cast %8 : vector<1x1x16x4xbf16> to vector<1x16x4xbf16>
    %c0_5 = arith.constant 0 : index
    %10 = arith.index_cast %0 : i32 to index
    %c0_6 = arith.constant 0 : index
    %c0_7 = arith.constant 0 : index
    %11 = vector.load %arg2[%c0_5, %10, %c0_6, %c0_7] : memref<1x16x16x4xbf16, #tpu.memory_space<vmem>>, vector<1x16x16x4xbf16>
    %12 = vector.shape_cast %11 : vector<1x16x16x4xbf16> to vector<16x16x4xbf16>
    %c0_8 = arith.constant 0 : index
    %13 = arith.index_cast %6 : i32 to index
    %c0_9 = arith.constant 0 : index
    %c0_10 = arith.constant 0 : index
    %14 = vector.load %arg2[%c0_8, %13, %c0_9, %c0_10] : memref<1x16x16x4xbf16, #tpu.memory_space<vmem>>, vector<1x1x16x4xbf16>
    %15 = vector.shape_cast %14 : vector<1x1x16x4xbf16> to vector<1x16x4xbf16>
    %16 = tpu.concatenate %9, %12, %15 in 0 : vector<1x16x4xbf16>, vector<16x16x4xbf16>, vector<1x16x4xbf16> -> vector<18x16x4xbf16>
    %17 = vector.extract_strided_slice %16 {offsets = [0, 0, 0], sizes = [16, 16, 4], strides = [1, 1, 1]} : vector<18x16x4xbf16> to vector<16x16x4xbf16>
    %18 = vector.extract_strided_slice %17 {offsets = [0, 1, 0], sizes = [16, 1, 4], strides = [1, 1, 1]} : vector<16x16x4xbf16> to vector<16x1x4xbf16>
    %19 = vector.extract_strided_slice %17 {offsets = [0, 0, 0], sizes = [16, 15, 4], strides = [1, 1, 1]} : vector<16x16x4xbf16> to vector<16x15x4xbf16>
    %20 = tpu.concatenate %18, %19 in 1 : vector<16x1x4xbf16>, vector<16x15x4xbf16> -> vector<16x16x4xbf16>
    %21 = vector.shape_cast %20 : vector<16x16x4xbf16> to vector<256x4xbf16>
    %22 = vector.shape_cast %17 : vector<16x16x4xbf16> to vector<256x4xbf16>
    %23 = vector.extract_strided_slice %17 {offsets = [0, 1, 0], sizes = [16, 15, 4], strides = [1, 1, 1]} : vector<16x16x4xbf16> to vector<16x15x4xbf16>
    %24 = vector.extract_strided_slice %17 {offsets = [0, 14, 0], sizes = [16, 1, 4], strides = [1, 1, 1]} : vector<16x16x4xbf16> to vector<16x1x4xbf16>
    %25 = tpu.concatenate %23, %24 in 1 : vector<16x15x4xbf16>, vector<16x1x4xbf16> -> vector<16x16x4xbf16>
    %26 = vector.shape_cast %25 : vector<16x16x4xbf16> to vector<256x4xbf16>
    %27 = vector.extract_strided_slice %16 {offsets = [1, 0, 0], sizes = [16, 16, 4], strides = [1, 1, 1]} : vector<18x16x4xbf16> to vector<16x16x4xbf16>
    %28 = vector.extract_strided_slice %27 {offsets = [0, 1, 0], sizes = [16, 1, 4], strides = [1, 1, 1]} : vector<16x16x4xbf16> to vector<16x1x4xbf16>
    %29 = vector.extract_strided_slice %27 {offsets = [0, 0, 0], sizes = [16, 15, 4], strides = [1, 1, 1]} : vector<16x16x4xbf16> to vector<16x15x4xbf16>
    %30 = tpu.concatenate %28, %29 in 1 : vector<16x1x4xbf16>, vector<16x15x4xbf16> -> vector<16x16x4xbf16>
    %31 = vector.shape_cast %30 : vector<16x16x4xbf16> to vector<256x4xbf16>
    %32 = vector.shape_cast %27 : vector<16x16x4xbf16> to vector<256x4xbf16>
    %33 = vector.extract_strided_slice %27 {offsets = [0, 1, 0], sizes = [16, 15, 4], strides = [1, 1, 1]} : vector<16x16x4xbf16> to vector<16x15x4xbf16>
    %34 = vector.extract_strided_slice %27 {offsets = [0, 14, 0], sizes = [16, 1, 4], strides = [1, 1, 1]} : vector<16x16x4xbf16> to vector<16x1x4xbf16>
    %35 = tpu.concatenate %33, %34 in 1 : vector<16x15x4xbf16>, vector<16x1x4xbf16> -> vector<16x16x4xbf16>
    %36 = vector.shape_cast %35 : vector<16x16x4xbf16> to vector<256x4xbf16>
    %37 = vector.extract_strided_slice %16 {offsets = [2, 0, 0], sizes = [16, 16, 4], strides = [1, 1, 1]} : vector<18x16x4xbf16> to vector<16x16x4xbf16>
    %38 = vector.extract_strided_slice %37 {offsets = [0, 1, 0], sizes = [16, 1, 4], strides = [1, 1, 1]} : vector<16x16x4xbf16> to vector<16x1x4xbf16>
    %39 = vector.extract_strided_slice %37 {offsets = [0, 0, 0], sizes = [16, 15, 4], strides = [1, 1, 1]} : vector<16x16x4xbf16> to vector<16x15x4xbf16>
    %40 = tpu.concatenate %38, %39 in 1 : vector<16x1x4xbf16>, vector<16x15x4xbf16> -> vector<16x16x4xbf16>
    %41 = vector.shape_cast %40 : vector<16x16x4xbf16> to vector<256x4xbf16>
    %42 = vector.shape_cast %37 : vector<16x16x4xbf16> to vector<256x4xbf16>
    %43 = vector.extract_strided_slice %37 {offsets = [0, 1, 0], sizes = [16, 15, 4], strides = [1, 1, 1]} : vector<16x16x4xbf16> to vector<16x15x4xbf16>
    %44 = vector.extract_strided_slice %37 {offsets = [0, 14, 0], sizes = [16, 1, 4], strides = [1, 1, 1]} : vector<16x16x4xbf16> to vector<16x1x4xbf16>
    %45 = tpu.concatenate %43, %44 in 1 : vector<16x15x4xbf16>, vector<16x1x4xbf16> -> vector<16x16x4xbf16>
    %46 = vector.shape_cast %45 : vector<16x16x4xbf16> to vector<256x4xbf16>
    %47 = tpu.concatenate %21, %22, %26, %31, %32, %36, %41, %42, %46 in 1 : vector<256x4xbf16>, vector<256x4xbf16>, vector<256x4xbf16>, vector<256x4xbf16>, vector<256x4xbf16>, vector<256x4xbf16>, vector<256x4xbf16>, vector<256x4xbf16>, vector<256x4xbf16> -> vector<256x36xbf16>
    %c0_11 = arith.constant 0 : index
    %c0_12 = arith.constant 0 : index
    %48 = vector.load %arg3[%c0_11, %c0_12] : memref<36x8xbf16, #tpu.memory_space<vmem>>, vector<36x8xbf16>
    %cst = arith.constant dense<0.000000e+00> : vector<256x8xf32>
    %49 = tpu.matmul %47, %48, %cst {dimension_numbers = #tpu.dot_dimension_numbers<[1], [0], [0], [1], [0, 0, 1, 1], [], []>} : vector<256x36xbf16>, vector<36x8xbf16>, vector<256x8xf32> -> vector<256x8xf32>
    %50 = vector.shape_cast %49 : vector<256x8xf32> to vector<16x16x8xf32>
    %51 = arith.truncf %50 : vector<16x16x8xf32> to vector<16x16x8xbf16>
    %c0_13 = arith.constant 0 : index
    %c0_14 = arith.constant 0 : index
    %c0_15 = arith.constant 0 : index
    %c0_16 = arith.constant 0 : index
    %52 = vector.load %arg4[%c0_13, %c0_14, %c0_15, %c0_16] : memref<1x16x16x8xbf16, #tpu.memory_space<vmem>>, vector<1x16x16x8xbf16>
    %53 = vector.shape_cast %52 : vector<1x16x16x8xbf16> to vector<16x16x8xbf16>
    %54 = vector.shape_cast %51 : vector<16x16x8xbf16> to vector<1x16x16x8xbf16>
    tpu.vector_store %arg4[%c0_13, %c0_14, %c0_15, %c0_16], %54 {strides = array<i32>} : memref<1x16x16x8xbf16, #tpu.memory_space<vmem>>, vector<1x16x16x8xbf16>,
    %cst_17 = arith.constant dense<0.000000e+00> : vector<8xf32>
    %55 = vector.multi_reduction <add>, %49, %cst_17 [0] : vector<256x8xf32> to vector<8xf32>
    %56 = vector.shape_cast %55 : vector<8xf32> to vector<1x8xf32>
    %cst_18 = arith.constant 3.906250e-03 : f32
    %57 = vector.broadcast %cst_18 : f32 to vector<1x8xf32>
    %58 = arith.mulf %56, %57 : vector<1x8xf32>
    %59 = vector.broadcast %58 : vector<1x8xf32> to vector<256x8xf32>
    %60 = arith.subf %49, %59 : vector<256x8xf32>
    %61 = arith.mulf %60, %60 : vector<256x8xf32>
    %cst_19 = arith.constant dense<0.000000e+00> : vector<8xf32>
    %62 = vector.multi_reduction <add>, %61, %cst_19 [0] : vector<256x8xf32> to vector<8xf32>
    %63 = vector.shape_cast %62 : vector<8xf32> to vector<1x8xf32>
    %cst_20 = arith.constant 0.000000e+00 : f32
    %64 = vector.broadcast %cst_20 : f32 to vector<6x8xf32>
    %65 = tpu.concatenate %56, %63, %64 in 0 : vector<1x8xf32>, vector<1x8xf32>, vector<6x8xf32> -> vector<8x8xf32>
    %c0_21 = arith.constant 0 : index
    %c0_22 = arith.constant 0 : index
    %c0_23 = arith.constant 0 : index
    %66 = vector.load %arg5[%c0_21, %c0_22, %c0_23] : memref<1x8x8xf32, #tpu.memory_space<vmem>>, vector<1x8x8xf32>
    %67 = vector.shape_cast %66 : vector<1x8x8xf32> to vector<8x8xf32>
    %68 = vector.shape_cast %65 : vector<8x8xf32> to vector<1x8x8xf32>
    tpu.vector_store %arg5[%c0_21, %c0_22, %c0_23], %68 {strides = array<i32>} : memref<1x8x8xf32, #tpu.memory_space<vmem>>, vector<1x8x8xf32>,
    return
  }
  func.func @transform_0(%arg0: i32, %arg1: i32) -> (i32, i32, i32, i32) {
    %c0_i32 = arith.constant 0 : i32
    %c0_i32_0 = arith.constant 0 : i32
    %c0_i32_1 = arith.constant 0 : i32
    %c0_i32_2 = arith.constant 0 : i32
    return %arg0, %c0_i32, %c0_i32_0, %c0_i32_1 : i32, i32, i32, i32
  }
  func.func @transform_1(%arg0: i32, %arg1: i32) -> (i32, i32) {
    %c0_i32 = arith.constant 0 : i32
    %c0_i32_0 = arith.constant 0 : i32
    %c0_i32_1 = arith.constant 0 : i32
    return %c0_i32, %c0_i32_0 : i32, i32
  }
  func.func @transform_2(%arg0: i32, %arg1: i32) -> (i32, i32, i32, i32) {
    %c0_i32 = arith.constant 0 : i32
    %c0_i32_0 = arith.constant 0 : i32
    %c0_i32_1 = arith.constant 0 : i32
    return %arg0, %arg1, %c0_i32, %c0_i32_0 : i32, i32, i32, i32
  }
  func.func @transform_3(%arg0: i32, %arg1: i32) -> (i32, i32, i32) {
    %c1_i32 = arith.constant 1 : i32
    %0 = arith.muli %arg0, %c1_i32 : i32
    %1 = arith.addi %0, %arg1 : i32
    %c0_i32 = arith.constant 0 : i32
    %c0_i32_0 = arith.constant 0 : i32
    %c0_i32_1 = arith.constant 0 : i32
    return %1, %c0_i32, %c0_i32_0 : i32, i32, i32
  }
}

module attributes {stable_mosaic.version = 11 : i64} {
  func.func @_bn_relu_out_kernel(%arg0: i32, %arg1: i32, %arg2: memref<1x16x16x8xbf16, #tpu.memory_space<vmem>>, %arg3: memref<8x8xf32, #tpu.memory_space<vmem>>, %arg4: memref<1x16x16x8xf32, #tpu.memory_space<vmem>>) attributes {dimension_semantics = [#tpu.dimension_semantics<parallel>, #tpu.dimension_semantics<parallel>], iteration_bounds = array<i64: 2, 1>, scalar_prefetch = 0 : i64, scratch_operands = 0 : i64, tpu.core_type = #tpu.core_type<tc>, window_params = [{transform_indices = @transform_0, window_bounds = array<i64: 1, 16, 16, 8>}, {pipeline_mode = #tpu.pipeline_mode<synchronous>, transform_indices = @transform_1, window_bounds = array<i64: 8, 8>}, {transform_indices = @transform_2, window_bounds = array<i64: 1, 16, 16, 8>}]} {
    %c0 = arith.constant 0 : index
    %c0_0 = arith.constant 0 : index
    %0 = vector.load %arg3[%c0, %c0_0] : memref<8x8xf32, #tpu.memory_space<vmem>>, vector<1x8xf32>
    %c1 = arith.constant 1 : index
    %c0_1 = arith.constant 0 : index
    %1 = vector.load %arg3[%c1, %c0_1] : memref<8x8xf32, #tpu.memory_space<vmem>>, vector<1x8xf32>
    %c0_2 = arith.constant 0 : index
    %c0_3 = arith.constant 0 : index
    %c0_4 = arith.constant 0 : index
    %c0_5 = arith.constant 0 : index
    %2 = vector.load %arg2[%c0_2, %c0_3, %c0_4, %c0_5] : memref<1x16x16x8xbf16, #tpu.memory_space<vmem>>, vector<1x16x16x8xbf16>
    %3 = vector.shape_cast %2 : vector<1x16x16x8xbf16> to vector<16x16x8xbf16>
    %4 = arith.extf %3 : vector<16x16x8xbf16> to vector<16x16x8xf32>
    %5 = vector.shape_cast %0 : vector<1x8xf32> to vector<1x1x8xf32>
    %6 = vector.broadcast %5 : vector<1x1x8xf32> to vector<16x16x8xf32>
    %7 = arith.mulf %4, %6 : vector<16x16x8xf32>
    %8 = vector.shape_cast %1 : vector<1x8xf32> to vector<1x1x8xf32>
    %9 = vector.broadcast %8 : vector<1x1x8xf32> to vector<16x16x8xf32>
    %10 = arith.addf %7, %9 : vector<16x16x8xf32>
    %cst = arith.constant 0.000000e+00 : f32
    %11 = vector.broadcast %cst : f32 to vector<16x16x8xf32>
    %12 = arith.maximumf %10, %11 : vector<16x16x8xf32>
    %c0_6 = arith.constant 0 : index
    %c0_7 = arith.constant 0 : index
    %c0_8 = arith.constant 0 : index
    %c0_9 = arith.constant 0 : index
    %13 = vector.load %arg4[%c0_6, %c0_7, %c0_8, %c0_9] : memref<1x16x16x8xf32, #tpu.memory_space<vmem>>, vector<1x16x16x8xf32>
    %14 = vector.shape_cast %13 : vector<1x16x16x8xf32> to vector<16x16x8xf32>
    %15 = vector.shape_cast %12 : vector<16x16x8xf32> to vector<1x16x16x8xf32>
    tpu.vector_store %arg4[%c0_6, %c0_7, %c0_8, %c0_9], %15 {strides = array<i32>} : memref<1x16x16x8xf32, #tpu.memory_space<vmem>>, vector<1x16x16x8xf32>,
    return
  }
  func.func @transform_0(%arg0: i32, %arg1: i32) -> (i32, i32, i32, i32) {
    %c0_i32 = arith.constant 0 : i32
    %c0_i32_0 = arith.constant 0 : i32
    %c0_i32_1 = arith.constant 0 : i32
    return %arg0, %arg1, %c0_i32, %c0_i32_0 : i32, i32, i32, i32
  }
  func.func @transform_1(%arg0: i32, %arg1: i32) -> (i32, i32) {
    %c0_i32 = arith.constant 0 : i32
    %c0_i32_0 = arith.constant 0 : i32
    %c0_i32_1 = arith.constant 0 : i32
    return %c0_i32, %c0_i32_0 : i32, i32
  }
  func.func @transform_2(%arg0: i32, %arg1: i32) -> (i32, i32, i32, i32) {
    %c0_i32 = arith.constant 0 : i32
    %c0_i32_0 = arith.constant 0 : i32
    %c0_i32_1 = arith.constant 0 : i32
    return %arg0, %arg1, %c0_i32, %c0_i32_0 : i32, i32, i32, i32
  }
}

module attributes {stable_mosaic.version = 11 : i64} {
  func.func @_bn_relu_conv2_kernel(%arg0: i32, %arg1: i32, %arg2: memref<1x16x16x8xbf16, #tpu.memory_space<vmem>>, %arg3: memref<8x8xf32, #tpu.memory_space<vmem>>, %arg4: memref<72x8xbf16, #tpu.memory_space<vmem>>, %arg5: memref<1x16x16x8xbf16, #tpu.memory_space<vmem>>, %arg6: memref<1x8x8xf32, #tpu.memory_space<vmem>>) attributes {dimension_semantics = [#tpu.dimension_semantics<parallel>, #tpu.dimension_semantics<parallel>], iteration_bounds = array<i64: 2, 1>, scalar_prefetch = 0 : i64, scratch_operands = 0 : i64, tpu.core_type = #tpu.core_type<tc>, window_params = [{transform_indices = @transform_0, window_bounds = array<i64: 1, 16, 16, 8>}, {pipeline_mode = #tpu.pipeline_mode<synchronous>, transform_indices = @transform_1, window_bounds = array<i64: 8, 8>}, {pipeline_mode = #tpu.pipeline_mode<synchronous>, transform_indices = @transform_2, window_bounds = array<i64: 72, 8>}, {transform_indices = @transform_3, window_bounds = array<i64: 1, 16, 16, 8>}, {transform_indices = @transform_4, window_bounds = array<i64: 1, 8, 8>}]} {
    %c16_i32 = arith.constant 16 : i32
    %0 = arith.muli %arg1, %c16_i32 : i32
    %c0_i32 = arith.constant 0 : i32
    %1 = arith.cmpi eq, %arg1, %c0_i32 : i32
    %c1_i32 = arith.constant 1 : i32
    %2 = arith.subi %0, %c1_i32 : i32
    %c1_i32_0 = arith.constant 1 : i32
    %3 = arith.select %1, %c1_i32_0, %2 : i32
    %c0_i32_1 = arith.constant 0 : i32
    %4 = arith.cmpi eq, %arg1, %c0_i32_1 : i32
    %c16_i32_2 = arith.constant 16 : i32
    %5 = arith.addi %0, %c16_i32_2 : i32
    %c14_i32 = arith.constant 14 : i32
    %6 = arith.select %4, %c14_i32, %5 : i32
    %c0 = arith.constant 0 : index
    %7 = arith.index_cast %3 : i32 to index
    %c0_3 = arith.constant 0 : index
    %c0_4 = arith.constant 0 : index
    %8 = vector.load %arg2[%c0, %7, %c0_3, %c0_4] : memref<1x16x16x8xbf16, #tpu.memory_space<vmem>>, vector<1x1x16x8xbf16>
    %9 = vector.shape_cast %8 : vector<1x1x16x8xbf16> to vector<1x16x8xbf16>
    %c0_5 = arith.constant 0 : index
    %10 = arith.index_cast %0 : i32 to index
    %c0_6 = arith.constant 0 : index
    %c0_7 = arith.constant 0 : index
    %11 = vector.load %arg2[%c0_5, %10, %c0_6, %c0_7] : memref<1x16x16x8xbf16, #tpu.memory_space<vmem>>, vector<1x16x16x8xbf16>
    %12 = vector.shape_cast %11 : vector<1x16x16x8xbf16> to vector<16x16x8xbf16>
    %c0_8 = arith.constant 0 : index
    %13 = arith.index_cast %6 : i32 to index
    %c0_9 = arith.constant 0 : index
    %c0_10 = arith.constant 0 : index
    %14 = vector.load %arg2[%c0_8, %13, %c0_9, %c0_10] : memref<1x16x16x8xbf16, #tpu.memory_space<vmem>>, vector<1x1x16x8xbf16>
    %15 = vector.shape_cast %14 : vector<1x1x16x8xbf16> to vector<1x16x8xbf16>
    %16 = tpu.concatenate %9, %12, %15 in 0 : vector<1x16x8xbf16>, vector<16x16x8xbf16>, vector<1x16x8xbf16> -> vector<18x16x8xbf16>
    %17 = arith.extf %16 : vector<18x16x8xbf16> to vector<18x16x8xf32>
    %c0_11 = arith.constant 0 : index
    %c0_12 = arith.constant 0 : index
    %18 = vector.load %arg3[%c0_11, %c0_12] : memref<8x8xf32, #tpu.memory_space<vmem>>, vector<1x8xf32>
    %c1 = arith.constant 1 : index
    %c0_13 = arith.constant 0 : index
    %19 = vector.load %arg3[%c1, %c0_13] : memref<8x8xf32, #tpu.memory_space<vmem>>, vector<1x8xf32>
    %20 = vector.shape_cast %18 : vector<1x8xf32> to vector<1x1x8xf32>
    %21 = vector.broadcast %20 : vector<1x1x8xf32> to vector<18x16x8xf32>
    %22 = arith.mulf %17, %21 : vector<18x16x8xf32>
    %23 = vector.shape_cast %19 : vector<1x8xf32> to vector<1x1x8xf32>
    %24 = vector.broadcast %23 : vector<1x1x8xf32> to vector<18x16x8xf32>
    %25 = arith.addf %22, %24 : vector<18x16x8xf32>
    %cst = arith.constant 0.000000e+00 : f32
    %26 = vector.broadcast %cst : f32 to vector<18x16x8xf32>
    %27 = arith.maximumf %25, %26 : vector<18x16x8xf32>
    %28 = arith.truncf %27 : vector<18x16x8xf32> to vector<18x16x8xbf16>
    %29 = vector.extract_strided_slice %28 {offsets = [0, 0, 0], sizes = [16, 16, 8], strides = [1, 1, 1]} : vector<18x16x8xbf16> to vector<16x16x8xbf16>
    %30 = vector.extract_strided_slice %29 {offsets = [0, 1, 0], sizes = [16, 1, 8], strides = [1, 1, 1]} : vector<16x16x8xbf16> to vector<16x1x8xbf16>
    %31 = vector.extract_strided_slice %29 {offsets = [0, 0, 0], sizes = [16, 15, 8], strides = [1, 1, 1]} : vector<16x16x8xbf16> to vector<16x15x8xbf16>
    %32 = tpu.concatenate %30, %31 in 1 : vector<16x1x8xbf16>, vector<16x15x8xbf16> -> vector<16x16x8xbf16>
    %33 = vector.shape_cast %32 : vector<16x16x8xbf16> to vector<256x8xbf16>
    %34 = vector.shape_cast %29 : vector<16x16x8xbf16> to vector<256x8xbf16>
    %35 = vector.extract_strided_slice %29 {offsets = [0, 1, 0], sizes = [16, 15, 8], strides = [1, 1, 1]} : vector<16x16x8xbf16> to vector<16x15x8xbf16>
    %36 = vector.extract_strided_slice %29 {offsets = [0, 14, 0], sizes = [16, 1, 8], strides = [1, 1, 1]} : vector<16x16x8xbf16> to vector<16x1x8xbf16>
    %37 = tpu.concatenate %35, %36 in 1 : vector<16x15x8xbf16>, vector<16x1x8xbf16> -> vector<16x16x8xbf16>
    %38 = vector.shape_cast %37 : vector<16x16x8xbf16> to vector<256x8xbf16>
    %39 = vector.extract_strided_slice %28 {offsets = [1, 0, 0], sizes = [16, 16, 8], strides = [1, 1, 1]} : vector<18x16x8xbf16> to vector<16x16x8xbf16>
    %40 = vector.extract_strided_slice %39 {offsets = [0, 1, 0], sizes = [16, 1, 8], strides = [1, 1, 1]} : vector<16x16x8xbf16> to vector<16x1x8xbf16>
    %41 = vector.extract_strided_slice %39 {offsets = [0, 0, 0], sizes = [16, 15, 8], strides = [1, 1, 1]} : vector<16x16x8xbf16> to vector<16x15x8xbf16>
    %42 = tpu.concatenate %40, %41 in 1 : vector<16x1x8xbf16>, vector<16x15x8xbf16> -> vector<16x16x8xbf16>
    %43 = vector.shape_cast %42 : vector<16x16x8xbf16> to vector<256x8xbf16>
    %44 = vector.shape_cast %39 : vector<16x16x8xbf16> to vector<256x8xbf16>
    %45 = vector.extract_strided_slice %39 {offsets = [0, 1, 0], sizes = [16, 15, 8], strides = [1, 1, 1]} : vector<16x16x8xbf16> to vector<16x15x8xbf16>
    %46 = vector.extract_strided_slice %39 {offsets = [0, 14, 0], sizes = [16, 1, 8], strides = [1, 1, 1]} : vector<16x16x8xbf16> to vector<16x1x8xbf16>
    %47 = tpu.concatenate %45, %46 in 1 : vector<16x15x8xbf16>, vector<16x1x8xbf16> -> vector<16x16x8xbf16>
    %48 = vector.shape_cast %47 : vector<16x16x8xbf16> to vector<256x8xbf16>
    %49 = vector.extract_strided_slice %28 {offsets = [2, 0, 0], sizes = [16, 16, 8], strides = [1, 1, 1]} : vector<18x16x8xbf16> to vector<16x16x8xbf16>
    %50 = vector.extract_strided_slice %49 {offsets = [0, 1, 0], sizes = [16, 1, 8], strides = [1, 1, 1]} : vector<16x16x8xbf16> to vector<16x1x8xbf16>
    %51 = vector.extract_strided_slice %49 {offsets = [0, 0, 0], sizes = [16, 15, 8], strides = [1, 1, 1]} : vector<16x16x8xbf16> to vector<16x15x8xbf16>
    %52 = tpu.concatenate %50, %51 in 1 : vector<16x1x8xbf16>, vector<16x15x8xbf16> -> vector<16x16x8xbf16>
    %53 = vector.shape_cast %52 : vector<16x16x8xbf16> to vector<256x8xbf16>
    %54 = vector.shape_cast %49 : vector<16x16x8xbf16> to vector<256x8xbf16>
    %55 = vector.extract_strided_slice %49 {offsets = [0, 1, 0], sizes = [16, 15, 8], strides = [1, 1, 1]} : vector<16x16x8xbf16> to vector<16x15x8xbf16>
    %56 = vector.extract_strided_slice %49 {offsets = [0, 14, 0], sizes = [16, 1, 8], strides = [1, 1, 1]} : vector<16x16x8xbf16> to vector<16x1x8xbf16>
    %57 = tpu.concatenate %55, %56 in 1 : vector<16x15x8xbf16>, vector<16x1x8xbf16> -> vector<16x16x8xbf16>
    %58 = vector.shape_cast %57 : vector<16x16x8xbf16> to vector<256x8xbf16>
    %59 = tpu.concatenate %33, %34, %38, %43, %44, %48, %53, %54, %58 in 1 : vector<256x8xbf16>, vector<256x8xbf16>, vector<256x8xbf16>, vector<256x8xbf16>, vector<256x8xbf16>, vector<256x8xbf16>, vector<256x8xbf16>, vector<256x8xbf16>, vector<256x8xbf16> -> vector<256x72xbf16>
    %c0_14 = arith.constant 0 : index
    %c0_15 = arith.constant 0 : index
    %60 = vector.load %arg4[%c0_14, %c0_15] : memref<72x8xbf16, #tpu.memory_space<vmem>>, vector<72x8xbf16>
    %cst_16 = arith.constant dense<0.000000e+00> : vector<256x8xf32>
    %61 = tpu.matmul %59, %60, %cst_16 {dimension_numbers = #tpu.dot_dimension_numbers<[1], [0], [0], [1], [0, 0, 1, 1], [], []>} : vector<256x72xbf16>, vector<72x8xbf16>, vector<256x8xf32> -> vector<256x8xf32>
    %62 = vector.shape_cast %61 : vector<256x8xf32> to vector<16x16x8xf32>
    %63 = arith.truncf %62 : vector<16x16x8xf32> to vector<16x16x8xbf16>
    %c0_17 = arith.constant 0 : index
    %c0_18 = arith.constant 0 : index
    %c0_19 = arith.constant 0 : index
    %c0_20 = arith.constant 0 : index
    %64 = vector.load %arg5[%c0_17, %c0_18, %c0_19, %c0_20] : memref<1x16x16x8xbf16, #tpu.memory_space<vmem>>, vector<1x16x16x8xbf16>
    %65 = vector.shape_cast %64 : vector<1x16x16x8xbf16> to vector<16x16x8xbf16>
    %66 = vector.shape_cast %63 : vector<16x16x8xbf16> to vector<1x16x16x8xbf16>
    tpu.vector_store %arg5[%c0_17, %c0_18, %c0_19, %c0_20], %66 {strides = array<i32>} : memref<1x16x16x8xbf16, #tpu.memory_space<vmem>>, vector<1x16x16x8xbf16>,
    %cst_21 = arith.constant dense<0.000000e+00> : vector<8xf32>
    %67 = vector.multi_reduction <add>, %61, %cst_21 [0] : vector<256x8xf32> to vector<8xf32>
    %68 = vector.shape_cast %67 : vector<8xf32> to vector<1x8xf32>
    %cst_22 = arith.constant 3.906250e-03 : f32
    %69 = vector.broadcast %cst_22 : f32 to vector<1x8xf32>
    %70 = arith.mulf %68, %69 : vector<1x8xf32>
    %71 = vector.broadcast %70 : vector<1x8xf32> to vector<256x8xf32>
    %72 = arith.subf %61, %71 : vector<256x8xf32>
    %73 = arith.mulf %72, %72 : vector<256x8xf32>
    %cst_23 = arith.constant dense<0.000000e+00> : vector<8xf32>
    %74 = vector.multi_reduction <add>, %73, %cst_23 [0] : vector<256x8xf32> to vector<8xf32>
    %75 = vector.shape_cast %74 : vector<8xf32> to vector<1x8xf32>
    %cst_24 = arith.constant 0.000000e+00 : f32
    %76 = vector.broadcast %cst_24 : f32 to vector<6x8xf32>
    %77 = tpu.concatenate %68, %75, %76 in 0 : vector<1x8xf32>, vector<1x8xf32>, vector<6x8xf32> -> vector<8x8xf32>
    %c0_25 = arith.constant 0 : index
    %c0_26 = arith.constant 0 : index
    %c0_27 = arith.constant 0 : index
    %78 = vector.load %arg6[%c0_25, %c0_26, %c0_27] : memref<1x8x8xf32, #tpu.memory_space<vmem>>, vector<1x8x8xf32>
    %79 = vector.shape_cast %78 : vector<1x8x8xf32> to vector<8x8xf32>
    %80 = vector.shape_cast %77 : vector<8x8xf32> to vector<1x8x8xf32>
    tpu.vector_store %arg6[%c0_25, %c0_26, %c0_27], %80 {strides = array<i32>} : memref<1x8x8xf32, #tpu.memory_space<vmem>>, vector<1x8x8xf32>,
    return
  }
  func.func @transform_0(%arg0: i32, %arg1: i32) -> (i32, i32, i32, i32) {
    %c0_i32 = arith.constant 0 : i32
    %c0_i32_0 = arith.constant 0 : i32
    %c0_i32_1 = arith.constant 0 : i32
    %c0_i32_2 = arith.constant 0 : i32
    return %arg0, %c0_i32, %c0_i32_0, %c0_i32_1 : i32, i32, i32, i32
  }
  func.func @transform_1(%arg0: i32, %arg1: i32) -> (i32, i32) {
    %c0_i32 = arith.constant 0 : i32
    %c0_i32_0 = arith.constant 0 : i32
    %c0_i32_1 = arith.constant 0 : i32
    return %c0_i32, %c0_i32_0 : i32, i32
  }
  func.func @transform_2(%arg0: i32, %arg1: i32) -> (i32, i32) {
    %c0_i32 = arith.constant 0 : i32
    %c0_i32_0 = arith.constant 0 : i32
    %c0_i32_1 = arith.constant 0 : i32
    return %c0_i32, %c0_i32_0 : i32, i32
  }
  func.func @transform_3(%arg0: i32, %arg1: i32) -> (i32, i32, i32, i32) {
    %c0_i32 = arith.constant 0 : i32
    %c0_i32_0 = arith.constant 0 : i32
    %c0_i32_1 = arith.constant 0 : i32
    return %arg0, %arg1, %c0_i32, %c0_i32_0 : i32, i32, i32, i32
  }
  func.func @transform_4(%arg0: i32, %arg1: i32) -> (i32, i32, i32) {
    %c1_i32 = arith.constant 1 : i32
    %0 = arith.muli %arg0, %c1_i32 : i32
    %1 = arith.addi %0, %arg1 : i32
    %c0_i32 = arith.constant 0 : i32
    %c0_i32_0 = arith.constant 0 : i32
    %c0_i32_1 = arith.constant 0 : i32
    return %1, %c0_i32, %c0_i32_0 : i32, i32, i32
  }
}

</mosaic_0001>

<bundles_post_ra>
// kernel: conv_block.5
= control target key start
LH: loop header
LB: loop body
LE: loop exit
PB: predicated region body
PF: predicated region fallthrough
CT: control target
= control target key end

     0   :  { %s644_s9 = smov 0   ;;  %s646_s10 = smov 0   ;;  %s839_s0 = inlined_call_operand.vmem [shape: bf16[2,16,16,8], index: 0, kind: input, shape index: {}]   ;;  %s840_s1 = inlined_call_operand.vmem [shape: f32[8,8], index: 1, kind: input, shape index: {}]   ;;  %s841_s2 = inlined_call_operand.vmem [shape: f32[2,16,16,8], index: 2, kind: output, shape index: {}]  }
   0x1   :  { %s648_s11 = smov 0  }
   0x2 LB: > { %s24_s12 = sadd.s32 1, %s623_s10  ;;  %p491_p0 = scmp.ge.s32.totalorder %s627_s11, 1  ;;  %s627_s11 = sphi %s648_s11, %s12_s11   ;;  %s623_s10 = sphi %s646_s10, %s843_s10   ;;  %s619_s9 = sphi %s644_s9, %s842_s9  }
   0x3   : > { %p26_p1 = scmp.ge.s32.totalorder %s24_s12, 2  ;;  %p134_p2 = scmp.lt.s32.totalorder %s627_s11, 3 }
   0x5   : > { %s845_s12 = smov (%p26_p1, %s24_s12), 0  ;;  %p135_p3 = pnand %p491_p0, %p134_p2 }
   0x6   : > { %p167_p4 = scmp.lt.s32.totalorder (!%p135_p3), %s619_s9, 1  ;;  %v673_v0 = vld [vmem:[%s840_s1] ss:$0 sm:$0xff] (!%p135_p3)  ;;  %vm358_vm0 = vcmask (!%p135_p3), 64512   ;;  %v682_v9 = vld [vmem:[%s840_s1 + $0x1] ss:$0 sm:$0xff] (!%p135_p3) }
   0x7   : > { %138 = sbr.rel (%p135_p3) target bundleno = 54 (0x36), region = 28 }
   0xe   : > { %s847_s9 = smov (!%p167_p4, %s619_s9), 1 }
   0xf   : > { %s500_s13 = sshll.u32 %s847_s9, 7  ;;  %s501_s21 = sshll.u32 %s847_s9, 8 }
  0x10   : > { %s668_s16 = scalar_lea.vmem %s839_s0, %s500_s13  ;;  %s700_s24 = scalar_lea.vmem %s841_s2, %s501_s21 }
  0x11   : > { %v503_v1 = vld [vmem:[%s668_s16] sm:$0xff]   ;;  %v566_v2 = vld [vmem:[%s668_s16 + $0x8] sm:$0xff]   ;;  %v567_v3 = vld [vmem:[%s668_s16 + $0x10] sm:$0xff]  }
  0x12   : > { %v504_v4 = vunpack.c.l.bf16 %v503_v1  ;;  %v505_v5 = vunpack.c.h.bf16 %v503_v1  ;;  %v508_v6 = vunpack.c.l.bf16 %v566_v2  ;;  %v509_v7 = vunpack.c.h.bf16 %v566_v2  ;;  %v568_v8 = vld [vmem:[%s668_s16 + $0x18] sm:$0xff]   ;;  %v569_v30 = vld [vmem:[%s668_s16 + $0x20] sm:$0xff]   ;;  %v570_v31 = vld [vmem:[%s668_s16 + $0x28] sm:$0xff]  }
  0x13   : > { %v512_v10 = vunpack.c.l.bf16 %v567_v3  ;;  %v513_v11 = vunpack.c.h.bf16 %v567_v3  ;;  %v516_v12 = vunpack.c.l.bf16 %v568_v8  ;;  %v517_v13 = vunpack.c.h.bf16 %v568_v8  ;;  %v571_v36 = vld [vmem:[%s668_s16 + $0x30] sm:$0xff]   ;;  %v572_v37 = vld [vmem:[%s668_s16 + $0x38] sm:$0xff]   ;;  %v573_v3 = vld [vmem:[%s668_s16 + $0x40] sm:$0xff]  }
  0x14   : > { %v258_v14 = vmul.f32 %v504_v4, %v673_v0  ;;  %v259_v15 = vmul.f32 %v505_v5, %v673_v0  ;;  %v260_v16 = vmul.f32 %v508_v6, %v673_v0  ;;  %v261_v17 = vmul.f32 %v509_v7, %v673_v0  ;;  %v574_v4 = vld [vmem:[%s668_s16 + $0x48] sm:$0xff]  }
  0x15   : > { %v262_v18 = vmul.f32 %v512_v10, %v673_v0  ;;  %v263_v19 = vmul.f32 %v513_v11, %v673_v0  ;;  %v264_v20 = vmul.f32 %v516_v12, %v673_v0  ;;  %v265_v21 = vmul.f32 %v517_v13, %v673_v0  ;;  %v575_v10 = vld [vmem:[%s668_s16 + $0x50] sm:$0xff]   ;;  %v576_v11 = vld [vmem:[%s668_s16 + $0x58] sm:$0xff]  }
  0x16   : > { %v294_v22 = vadd.f32 %v682_v9, %v258_v14  ;;  %v295_v23 = vadd.f32 %v682_v9, %v259_v15  ;;  %v296_v24 = vadd.f32 %v682_v9, %v260_v16  ;;  %v297_v25 = vadd.f32 %v682_v9, %v261_v17 }
  0x17   : > { %v298_v26 = vadd.f32 %v682_v9, %v262_v18  ;;  %v299_v27 = vadd.f32 %v682_v9, %v263_v19  ;;  %v300_v28 = vadd.f32 %v682_v9, %v264_v20  ;;  %v301_v29 = vadd.f32 %v682_v9, %v265_v21 }
  0x18   : > { %v326_v32 = vmax.f32 %v294_v22, 0.0  ;;  %v327_v33 = vmax.f32 %v295_v23, 0.0  ;;  %v328_v34 = vmax.f32 %v296_v24, 0.0  ;;  %v329_v35 = vmax.f32 %v297_v25, 0.0 }
  0x19   : > { %v330_v38 = vmax.f32 %v298_v26, 0.0  ;;  %v331_v39 = vmax.f32 %v299_v27, 0.0  ;;  %v332_v40 = vmax.f32 %v300_v28, 0.0  ;;  %v333_v41 = vmax.f32 %v301_v29, 0.0 }
  0x1a   : > { %359 = vst.msk [vmem:[%s700_s24] sm:$0xff] %vm358_vm0, %v326_v32  ;;  %360 = vst.msk [vmem:[%s700_s24 + $0x8] sm:$0xff] %vm358_vm0, %v327_v33  ;;  %v520_v42 = vunpack.c.l.bf16 %v569_v30  ;;  %v521_v43 = vunpack.c.h.bf16 %v569_v30  ;;  %v524_v44 = vunpack.c.l.bf16 %v570_v31  ;;  %v525_v45 = vunpack.c.h.bf16 %v570_v31 }
  0x1b   : > { %361 = vst.msk [vmem:[%s700_s24 + $0x10] sm:$0xff] %vm358_vm0, %v328_v34  ;;  %362 = vst.msk [vmem:[%s700_s24 + $0x18] sm:$0xff] %vm358_vm0, %v329_v35  ;;  %v528_v46 = vunpack.c.l.bf16 %v571_v36  ;;  %v529_v47 = vunpack.c.h.bf16 %v571_v36  ;;  %v532_v48 = vunpack.c.l.bf16 %v572_v37  ;;  %v533_v49 = vunpack.c.h.bf16 %v572_v37 }
  0x1c   : > { %363 = vst.msk [vmem:[%s700_s24 + $0x20] sm:$0xff] %vm358_vm0, %v330_v38  ;;  %364 = vst.msk [vmem:[%s700_s24 + $0x28] sm:$0xff] %vm358_vm0, %v331_v39  ;;  %v266_v50 = vmul.f32 %v520_v42, %v673_v0  ;;  %v267_v51 = vmul.f32 %v521_v43, %v673_v0  ;;  %v268_v52 = vmul.f32 %v524_v44, %v673_v0  ;;  %v536_v16 = vunpack.c.l.bf16 %v573_v3 }
  0x1d   : > { %365 = vst.msk [vmem:[%s700_s24 + $0x30] sm:$0xff] %vm358_vm0, %v332_v40  ;;  %366 = vst.msk [vmem:[%s700_s24 + $0x38] sm:$0xff] %vm358_vm0, %v333_v41  ;;  %v269_v53 = vmul.f32 %v525_v45, %v673_v0  ;;  %v270_v54 = vmul.f32 %v528_v46, %v673_v0  ;;  %v271_v55 = vmul.f32 %v529_v47, %v673_v0  ;;  %v537_v17 = vunpack.c.h.bf16 %v573_v3  ;;  %v577_v40 = vld [vmem:[%s668_s16 + $0x60] sm:$0xff]   ;;  %v578_v41 = vld [vmem:[%s668_s16 + $0x68] sm:$0xff]  }
  0x1e   : > { %v272_v56 = vmul.f32 %v532_v48, %v673_v0  ;;  %v273_v57 = vmul.f32 %v533_v49, %v673_v0  ;;  %v302_v58 = vadd.f32 %v682_v9, %v266_v50  ;;  %v303_v59 = vadd.f32 %v682_v9, %v267_v51  ;;  %v579_v46 = vld [vmem:[%s668_s16 + $0x70] sm:$0xff]   ;;  %v580_v47 = vld [vmem:[%s668_s16 + $0x78] sm:$0xff]  }
  0x1f   : > { %v304_v60 = vadd.f32 %v682_v9, %v268_v52  ;;  %v305_v61 = vadd.f32 %v682_v9, %v269_v53  ;;  %v306_v62 = vadd.f32 %v682_v9, %v270_v54  ;;  %v307_v63 = vadd.f32 %v682_v9, %v271_v55 }
  0x20   : > { %v308_v1 = vadd.f32 %v682_v9, %v272_v56  ;;  %v309_v2 = vadd.f32 %v682_v9, %v273_v57  ;;  %v334_v5 = vmax.f32 %v302_v58, 0.0  ;;  %v335_v6 = vmax.f32 %v303_v59, 0.0 }
  0x21   : > { %v336_v7 = vmax.f32 %v304_v60, 0.0  ;;  %v337_v8 = vmax.f32 %v305_v61, 0.0  ;;  %v338_v12 = vmax.f32 %v306_v62, 0.0  ;;  %v339_v13 = vmax.f32 %v307_v63, 0.0 }
  0x22   : > { %v340_v14 = vmax.f32 %v308_v1, 0.0  ;;  %v341_v15 = vmax.f32 %v309_v2, 0.0  ;;  %367 = vst.msk [vmem:[%s700_s24 + $0x40] sm:$0xff] %vm358_vm0, %v334_v5  ;;  %368 = vst.msk [vmem:[%s700_s24 + $0x48] sm:$0xff] %vm358_vm0, %v335_v6  ;;  %v540_v18 = vunpack.c.l.bf16 %v574_v4  ;;  %v541_v19 = vunpack.c.h.bf16 %v574_v4 }
  0x23   : > { %369 = vst.msk [vmem:[%s700_s24 + $0x50] sm:$0xff] %vm358_vm0, %v336_v7  ;;  %370 = vst.msk [vmem:[%s700_s24 + $0x58] sm:$0xff] %vm358_vm0, %v337_v8  ;;  %v544_v20 = vunpack.c.l.bf16 %v575_v10  ;;  %v545_v21 = vunpack.c.h.bf16 %v575_v10  ;;  %v548_v22 = vunpack.c.l.bf16 %v576_v11  ;;  %v549_v23 = vunpack.c.h.bf16 %v576_v11 }
  0x24   : > { %371 = vst.msk [vmem:[%s700_s24 + $0x60] sm:$0xff] %vm358_vm0, %v338_v12  ;;  %372 = vst.msk [vmem:[%s700_s24 + $0x68] sm:$0xff] %vm358_vm0, %v339_v13  ;;  %v274_v24 = vmul.f32 %v536_v16, %v673_v0  ;;  %v275_v25 = vmul.f32 %v537_v17, %v673_v0  ;;  %v276_v26 = vmul.f32 %v540_v18, %v673_v0  ;;  %v552_v52 = vunpack.c.l.bf16 %v577_v40 }
  0x25   : > { %373 = vst.msk [vmem:[%s700_s24 + $0x70] sm:$0xff] %vm358_vm0, %v340_v14  ;;  %374 = vst.msk [vmem:[%s700_s24 + $0x78] sm:$0xff] %vm358_vm0, %v341_v15  ;;  %v277_v27 = vmul.f32 %v541_v19, %v673_v0  ;;  %v278_v28 = vmul.f32 %v544_v20, %v673_v0  ;;  %v279_v29 = vmul.f32 %v545_v21, %v673_v0  ;;  %v553_v53 = vunpack.c.h.bf16 %v577_v40 }
  0x26   : > { %v280_v30 = vmul.f32 %v548_v22, %v673_v0  ;;  %v281_v31 = vmul.f32 %v549_v23, %v673_v0  ;;  %v310_v32 = vadd.f32 %v682_v9, %v274_v24  ;;  %v311_v33 = vadd.f32 %v682_v9, %v275_v25 }
  0x27   : > { %v312_v34 = vadd.f32 %v682_v9, %v276_v26  ;;  %v313_v35 = vadd.f32 %v682_v9, %v277_v27  ;;  %v314_v36 = vadd.f32 %v682_v9, %v278_v28  ;;  %v315_v37 = vadd.f32 %v682_v9, %v279_v29 }
  0x28   : > { %v316_v38 = vadd.f32 %v682_v9, %v280_v30  ;;  %v317_v39 = vadd.f32 %v682_v9, %v281_v31  ;;  %v342_v42 = vmax.f32 %v310_v32, 0.0  ;;  %v343_v43 = vmax.f32 %v311_v33, 0.0 }
  0x29   : > { %v344_v44 = vmax.f32 %v312_v34, 0.0  ;;  %v345_v45 = vmax.f32 %v313_v35, 0.0  ;;  %v346_v48 = vmax.f32 %v314_v36, 0.0  ;;  %v347_v49 = vmax.f32 %v315_v37, 0.0 }
  0x2a   : > { %v348_v50 = vmax.f32 %v316_v38, 0.0  ;;  %v349_v51 = vmax.f32 %v317_v39, 0.0  ;;  %375 = vst.msk [vmem:[%s700_s24 + $0x80] sm:$0xff] %vm358_vm0, %v342_v42  ;;  %376 = vst.msk [vmem:[%s700_s24 + $0x88] sm:$0xff] %vm358_vm0, %v343_v43  ;;  %v556_v54 = vunpack.c.l.bf16 %v578_v41  ;;  %v557_v55 = vunpack.c.h.bf16 %v578_v41 }
  0x2b   : > { %377 = vst.msk [vmem:[%s700_s24 + $0x90] sm:$0xff] %vm358_vm0, %v344_v44  ;;  %378 = vst.msk [vmem:[%s700_s24 + $0x98] sm:$0xff] %vm358_vm0, %v345_v45  ;;  %v560_v56 = vunpack.c.l.bf16 %v579_v46  ;;  %v561_v57 = vunpack.c.h.bf16 %v579_v46  ;;  %v564_v58 = vunpack.c.l.bf16 %v580_v47  ;;  %v565_v59 = vunpack.c.h.bf16 %v580_v47 }
  0x2c   : > { %379 = vst.msk [vmem:[%s700_s24 + $0xa0] sm:$0xff] %vm358_vm0, %v346_v48  ;;  %380 = vst.msk [vmem:[%s700_s24 + $0xa8] sm:$0xff] %vm358_vm0, %v347_v49  ;;  %v282_v60 = vmul.f32 %v552_v52, %v673_v0  ;;  %v283_v61 = vmul.f32 %v553_v53, %v673_v0  ;;  %v284_v62 = vmul.f32 %v556_v54, %v673_v0 }
  0x2d   : > { %381 = vst.msk [vmem:[%s700_s24 + $0xb0] sm:$0xff] %vm358_vm0, %v348_v50  ;;  %382 = vst.msk [vmem:[%s700_s24 + $0xb8] sm:$0xff] %vm358_vm0, %v349_v51  ;;  %v285_v63 = vmul.f32 %v557_v55, %v673_v0  ;;  %v286_v1 = vmul.f32 %v560_v56, %v673_v0  ;;  %v287_v2 = vmul.f32 %v561_v57, %v673_v0 }
  0x2e   : > { %v288_v3 = vmul.f32 %v564_v58, %v673_v0  ;;  %v289_v4 = vmul.f32 %v565_v59, %v673_v0  ;;  %v318_v5 = vadd.f32 %v682_v9, %v282_v60  ;;  %v319_v6 = vadd.f32 %v682_v9, %v283_v61 }
  0x2f   : > { %v320_v7 = vadd.f32 %v682_v9, %v284_v62  ;;  %v321_v8 = vadd.f32 %v682_v9, %v285_v63  ;;  %v322_v10 = vadd.f32 %v682_v9, %v286_v1  ;;  %v323_v11 = vadd.f32 %v682_v9, %v287_v2 }
  0x30   : > { %v324_v0 = vadd.f32 %v682_v9, %v288_v3  ;;  %v325_v12 = vadd.f32 %v682_v9, %v289_v4  ;;  %v350_v13 = vmax.f32 %v318_v5, 0.0  ;;  %v351_v14 = vmax.f32 %v319_v6, 0.0 }
  0x31   : > { %v352_v15 = vmax.f32 %v320_v7, 0.0  ;;  %v353_v16 = vmax.f32 %v321_v8, 0.0  ;;  %v354_v17 = vmax.f32 %v322_v10, 0.0  ;;  %v355_v18 = vmax.f32 %v323_v11, 0.0 }
  0x32   : > { %v356_v19 = vmax.f32 %v324_v0, 0.0  ;;  %v357_v20 = vmax.f32 %v325_v12, 0.0  ;;  %383 = vst.msk [vmem:[%s700_s24 + $0xc0] sm:$0xff] %vm358_vm0, %v350_v13  ;;  %384 = vst.msk [vmem:[%s700_s24 + $0xc8] sm:$0xff] %vm358_vm0, %v351_v14 }
  0x33   : > { %385 = vst.msk [vmem:[%s700_s24 + $0xd0] sm:$0xff] %vm358_vm0, %v352_v15  ;;  %386 = vst.msk [vmem:[%s700_s24 + $0xd8] sm:$0xff] %vm358_vm0, %v353_v16 }
  0x34   : > { %387 = vst.msk [vmem:[%s700_s24 + $0xe0] sm:$0xff] %vm358_vm0, %v354_v17  ;;  %388 = vst.msk [vmem:[%s700_s24 + $0xe8] sm:$0xff] %vm358_vm0, %v355_v18 }
  0x35   : > { %389 = vst.msk [vmem:[%s700_s24 + $0xf0] sm:$0xff] %vm358_vm0, %v356_v19  ;;  %390 = vst.msk [vmem:[%s700_s24 + $0xf8] sm:$0xff] %vm358_vm0, %v357_v20 }
  0x36 PF: > { %s12_s11 = sadd.s32 1, %s627_s11   ;;  %s842_s9 = smov %s623_s10 }
  0x37   : > { %p9_p5 = scmp.ge.s32.totalorder %s12_s11, 4   ;;  %s843_s10 = smov %s845_s12 }
  0x39   :  { %11 = sbr.rel (!%p9_p5) target bundleno = 2 (0x2), region = 58 }

// kernel: conv_block.4
= control target key start
LH: loop header
LB: loop body
LE: loop exit
PB: predicated region body
PF: predicated region fallthrough
CT: control target
= control target key end

     0   :  { %s2423_s15 = smov 0   ;;  %s2425_s16 = smov 0   ;;  %s3485_s0 = inlined_call_operand.vmem [shape: bf16[2,16,16,8], index: 0, kind: input, shape index: {}]   ;;  %s3486_s1 = inlined_call_operand.vmem [shape: f32[8,8], index: 1, kind: input, shape index: {}]   ;;  %s3487_s2 = inlined_call_operand.vmem [shape: bf16[72,8], index: 2, kind: input, shape index: {}]   ;;  %s3488_s3 = inlined_call_operand.vmem [shape: bf16[2,16,16,8], index: 3, kind: output, shape index: {0}]   ;;  %s3489_s4 = inlined_call_operand.vmem [shape: f32[2,8,8], index: 4, kind: output, shape index: {1}]  }
   0x1   :  { %s2427_s17 = smov 0  }
   0x2 LB: > { %s27_s18 = sadd.s32 1, %s2384_s16  ;;  %p2062_p0 = scmp.ge.s32.totalorder %s2388_s17, 1  ;;  %s2388_s17 = sphi %s2427_s17, %s15_s17   ;;  %s2384_s16 = sphi %s2425_s16, %s3495_s16   ;;  %s2380_s15 = sphi %s2423_s15, %s3494_s15  }
   0x3   : > { %p29_p1 = scmp.ge.s32.totalorder %s27_s18, 2  ;;  %p181_p2 = scmp.lt.s32.totalorder %s2388_s17, 3 }
   0x5   : > { %s3497_s18 = smov (%p29_p1, %s27_s18), 0  ;;  %p182_p3 = pnand %p2062_p0, %p181_p2 }
   0x6   : > { %p217_p4 = scmp.lt.s32.totalorder (!%p182_p3), %s2380_s15, 1  ;;  %v2447_v0 = vld [vmem:[%s3486_s1] ss:$0 sm:$0xff] (!%p182_p3)  ;;  %v2462_v8 = vld [vmem:[%s3486_s1 + $0x1] ss:$0 sm:$0xff] (!%p182_p3)  ;;  %vm690_vm0 = vcmask (!%p182_p3), 1047552  }
   0x7   : > { %185 = sbr.rel (%p182_p3) target bundleno = 715 (0x2cb), region = 32  ;;  %v2359_v30 = vld [vmem:[%s3487_s2] sm:$0xff] (!%p182_p3)   ;;  %s2390_s29 = smov (!%p182_p3), 32   ;;  %vm691_vm1 = vsmask.f32 (!%p182_p3), 7424  ;;  %v2360_v39 = vld [vmem:[%s3487_s2 + $0x8] sm:$0xff] (!%p182_p3)  }
   0x8   : > { %s2391_s30 = smov (!%p182_p3), 8   ;;  %2273 = vmatprep.subr.bf16.mxu0 (!%p182_p3), %v2359_v30  ;;  %2315 = vmatprep.subr.bf16.mxu1 (!%p182_p3), %v2359_v30  ;;  %vm2494_vm2 = vmand (!%p182_p3), %vm690_vm0, %vm691_vm1  ;;  %s2392_s7 = smov (!%p182_p3), 56   ;;  %v2361_v49 = vld [vmem:[%s3487_s2 + $0x10] sm:$0xff] (!%p182_p3)   ;;  %vm607_vm3 = vcmask (!%p182_p3), 1040384   ;;  %vm608_vm4 = vsmask.f32 (!%p182_p3), 256 }
   0x9   : > { %2274 = vmatpush3.bf16.msra.mxu0 (!%p182_p3), %v2359_v30  ;;  %2320 = vmatpush3.bf16.msra.mxu1 (!%p182_p3), %v2359_v30  ;;  %s2393_s10 = smov (!%p182_p3), 16   ;;  %vm2517_vm5 = vmand (!%p182_p3), %vm607_vm3, %vm608_vm4  ;;  %v2362_v57 = vld [vmem:[%s3487_s2 + $0x18] sm:$0xff] (!%p182_p3)   ;;  %s2394_s13 = smov (!%p182_p3), 24   ;;  %vm1397_vm6 = vcmask (!%p182_p3), 1043456   ;;  %vm1048_vm7 = vcmask (!%p182_p3), 64512   ;;  %vm1097_vm8 = vcmask (!%p182_p3), 130048  }
   0xa   : > { %2275 = vmatprep.subr.bf16.mxu0 (!%p182_p3), %v2360_v39  ;;  %2316 = vmatprep.subr.bf16.mxu1 (!%p182_p3), %v2360_v39  ;;  %s2395_s14 = smov (!%p182_p3), 40   ;;  %s2396_s20 = smov (!%p182_p3), 48   ;;  %vm1130_vm9 = vcmask (!%p182_p3), 195584   ;;  %vm1163_vm10 = vcmask (!%p182_p3), 261120   ;;  %vm1196_vm11 = vcmask (!%p182_p3), 326656   ;;  %vm1229_vm12 = vcmask (!%p182_p3), 392192  }
   0xb   : > { %s2397_s23 = smov (!%p182_p3), 64   ;;  %vm1262_vm13 = vcmask (!%p182_p3), 457728   ;;  %vm1295_vm14 = vcmask (!%p182_p3), 523264   ;;  %vm1364_vm15 = vcmask (!%p182_p3), 588800   ;;  %vm1690_vm0 = vcmask (!%p182_p3), 60416  }
   0xc   : > { %vm1928_vm1 = vcmask (!%p182_p3), 1041408  }
   0xd   : > { %2276 = vmatpush3.bf16.msra.mxu0 (!%p182_p3), %v2360_v39  ;;  %2321 = vmatpush3.bf16.msra.mxu1 (!%p182_p3), %v2360_v39 }
   0xe   : > { %s3499_s15 = smov (!%p217_p4, %s2380_s15), 1  ;;  %2277 = vmatprep.subr.bf16.mxu0 %v2361_v49  ;;  %2317 = vmatprep.subr.bf16.mxu1 %v2361_v49 }
   0xf   : > { %s2129_s19 = sshll.u32 %s3499_s15, 7 }
  0x10   : > { %s2454_s24 = scalar_lea.vmem %s3485_s0, %s2129_s19 }
  0x11   : > { %v2236_v1 = vld [vmem:[%s2454_s24 + $0x8] sm:$0xff]   ;;  %v2237_v2 = vld [vmem:[%s2454_s24 + $0x10] sm:$0xff]   ;;  %v2168_v3 = vld [vmem:[%s2454_s24] sm:$0xff]   ;;  %2278 = vmatpush3.bf16.msra.mxu0 %v2361_v49  ;;  %2322 = vmatpush3.bf16.msra.mxu1 %v2361_v49 }
  0x12   : > { %v2173_v4 = vunpack.c.l.bf16 %v2236_v1  ;;  %v2174_v5 = vunpack.c.h.bf16 %v2236_v1  ;;  %v2177_v6 = vunpack.c.l.bf16 %v2237_v2  ;;  %v2178_v7 = vunpack.c.h.bf16 %v2237_v2  ;;  %v2238_v37 = vld [vmem:[%s2454_s24 + $0x18] sm:$0xff]   ;;  %v2239_v1 = vld [vmem:[%s2454_s24 + $0x20] sm:$0xff]   ;;  %2279 = vmatprep.subr.bf16.mxu0 %v2362_v57  ;;  %2318 = vmatprep.subr.bf16.mxu1 %v2362_v57 }
  0x13   : > { %v2169_v9 = vunpack.c.l.bf16 %v2168_v3  ;;  %v2170_v10 = vunpack.c.h.bf16 %v2168_v3  ;;  %v2181_v43 = vunpack.c.l.bf16 %v2238_v37  ;;  %v2182_v44 = vunpack.c.h.bf16 %v2238_v37 }
  0x14   : > { %v337_v11 = vmul.f32 %v2173_v4, %v2447_v0  ;;  %v338_v12 = vmul.f32 %v2174_v5, %v2447_v0  ;;  %v339_v13 = vmul.f32 %v2177_v6, %v2447_v0  ;;  %v340_v14 = vmul.f32 %v2178_v7, %v2447_v0 }
  0x15   : > { %v335_v15 = vmul.f32 %v2169_v9, %v2447_v0  ;;  %v336_v16 = vmul.f32 %v2170_v10, %v2447_v0  ;;  %v341_v51 = vmul.f32 %v2181_v43, %v2447_v0  ;;  %v342_v52 = vmul.f32 %v2182_v44, %v2447_v0  ;;  %2280 = vmatpush3.bf16.msra.mxu0 %v2362_v57  ;;  %v2241_v43 = vld [vmem:[%s2454_s24 + $0x30] sm:$0xff]  }
  0x16   : > { %v377_v17 = vadd.f32 %v2462_v8, %v337_v11  ;;  %v378_v18 = vadd.f32 %v2462_v8, %v338_v12  ;;  %v379_v19 = vadd.f32 %v2462_v8, %v339_v13  ;;  %v380_v20 = vadd.f32 %v2462_v8, %v340_v14  ;;  %2323 = vmatpush3.bf16.msra.mxu1 %v2362_v57 }
  0x17   : > { %v375_v21 = vadd.f32 %v2462_v8, %v335_v15  ;;  %v376_v22 = vadd.f32 %v2462_v8, %v336_v16  ;;  %v381_v59 = vadd.f32 %v2462_v8, %v341_v51  ;;  %v382_v60 = vadd.f32 %v2462_v8, %v342_v52 }
  0x18   : > { %v413_v23 = vmax.f32 %v377_v17, 0.0  ;;  %v414_v24 = vmax.f32 %v378_v18, 0.0  ;;  %v415_v25 = vmax.f32 %v379_v19, 0.0  ;;  %v416_v26 = vmax.f32 %v380_v20, 0.0  ;;  %v2363_v17 = vld [vmem:[%s3487_s2 + $0x20] ss:$0 sps:$4 sm:$0xff]  }
  0x19   : > { %v411_v27 = vmax.f32 %v375_v21, 0.0  ;;  %v412_v28 = vmax.f32 %v376_v22, 0.0  ;;  %v417_v2 = vmax.f32 %v381_v59, 0.0  ;;  %v418_v3 = vmax.f32 %v382_v60, 0.0  ;;  %2325 = vmatprep.subr.msk.bf16.mxu0 %vm1397_vm6, %v2363_v17  ;;  %2326 = vmatprep.subr.msk.bf16.mxu1 %vm1397_vm6, %v2363_v17 }
  0x1a   : > { %v2476_v29 = vpack.c.bf16 %v414_v24, %v413_v23  ;;  %v2486_v33 = vpack.c.bf16 %v416_v26, %v415_v25  ;;  %v2185_v4 = vunpack.c.l.bf16 %v2239_v1  ;;  %v2186_v6 = vunpack.c.h.bf16 %v2239_v1  ;;  %v2240_v26 = vld [vmem:[%s2454_s24 + $0x28] sm:$0xff]  }
  0x1b   : > { %v446_v31 = vpack.c.bf16 %v412_v28, %v411_v27  ;;  %v2546_v7 = vpack.c.bf16 %v418_v3, %v417_v2  ;;  %v1399_v23 = vsel %vm1397_vm6, %v2363_v17, 0  ;;  %v2189_v27 = vunpack.c.l.bf16 %v2240_v26  ;;  %v2242_v3 = vld [vmem:[%s2454_s24 + $0x38] sm:$0xff]  }
  0x1c   : > { %886 = vrot.lane.b32.xlu1 %v2476_v29, %s2390_s29  ;;  %755 = vrot.lane.b32.xlu0 %v2476_v29, %s2391_s30  ;;  %v464_v32 = vshrl.u32 %v2476_v29, 16  ;;  %v528_v34 = vshll.u32 %v2476_v29, 16  ;;  %v473_v50 = vshrl.u32 %v2486_v33, 16  ;;  %v540_v58 = vshll.u32 %v2486_v33, 16 }
  0x1d   : > { %v467_v35 = vshrl.u32 %v446_v31, 16  ;;  %v532_v36 = vshll.u32 %v446_v31, 16  ;;  %v343_v11 = vmul.f32 %v2185_v4, %v2447_v0  ;;  %v344_v12 = vmul.f32 %v2186_v6, %v2447_v0  ;;  %2282 = vmatpush3.bf16.msra.mxu0 %v1399_v23  ;;  %2324 = vmatpush3.bf16.msra.mxu1 %v1399_v23 }
  0x1e   : > { %v626_v38 = vrot.slane %v528_v34, 1  ;;  %v535_v47 = vrot.slane %v464_v32, 7  ;;  %v539_v63 = vrot.slane %v473_v50, 7  ;;  %v632_v10 = vrot.slane %v540_v58, 1 }
  0x1f   : > { %v628_v41 = vrot.slane %v532_v36, 1  ;;  %v531_v46 = vrot.slane %v467_v35, 7  ;;  %v476_v13 = vshrl.u32 %v2546_v7, 16  ;;  %v383_v15 = vadd.f32 %v2462_v8, %v343_v11 }
  0x20   : > { %985 = vrot.lane.b32.xlu1 %v2486_v33, %s2392_s7  ;;  %757 = vrot.lane.b32.xlu0 %v446_v31, %s2391_s30  ;;  %v627_v42 = vor.u32 %v626_v38, %v464_v32  ;;  %v538_v55 = vor.u32 %v535_v47, %v528_v34  ;;  %v542_v5 = vor.u32 %v540_v58, %v539_v63  ;;  %v544_v19 = vshll.u32 %v2546_v7, 16 }
  0x21   : > { %v629_v45 = vor.u32 %v628_v41, %v467_v35  ;;  %v534_v54 = vor.u32 %v532_v36, %v531_v46  ;;  %v633_v14 = vor.u32 %v632_v10, %v473_v50  ;;  %v384_v16 = vadd.f32 %v2462_v8, %v344_v12 }
  0x22   : > { %v2503_v48 = vsel %vm2494_vm2, %v627_v42, %v528_v34  ;;  %v2536_v62 = vsel %vm2517_vm5, %v464_v32, %v538_v55  ;;  %v2550_v9 = vsel %vm2517_vm5, %v473_v50, %v542_v5  ;;  %v543_v18 = vrot.slane %v476_v13, 7 }
  0x23   : > { %v694_v53 = vsel %vm2494_vm2, %v629_v45, %v532_v36  ;;  %v2532_v61 = vsel %vm2517_vm5, %v467_v35, %v534_v54  ;;  %v696_v20 = vsel %vm2494_vm2, %v633_v14, %v540_v58  ;;  %v419_v21 = vmax.f32 %v383_v15, 0.0 }
  0x24   : > { %884 = vrot.lane.b32.xlu0 %v446_v31, %s2390_s29  ;;  %803 = vrot.lane.b32.xlu1 %v2503_v48, %s2393_s10  ;;  %v420_v22 = vmax.f32 %v384_v16, 0.0  ;;  %v546_v24 = vor.u32 %v544_v19, %v543_v18  ;;  %v2190_v31 = vunpack.c.h.bf16 %v2240_v26  ;;  %v345_v32 = vmul.f32 %v2189_v27, %v2447_v0 }
  0x25   : > { %v2193_v44 = vunpack.c.l.bf16 %v2241_v43  ;;  %v2194_v47 = vunpack.c.h.bf16 %v2241_v43  ;;  %v2197_v4 = vunpack.c.l.bf16 %v2242_v3  ;;  %v2198_v10 = vunpack.c.h.bf16 %v2242_v3 }
  0x26   : > { %v2574_v25 = vpack.c.bf16 %v420_v22, %v419_v21  ;;  %v2582_v28 = vsel %vm2517_vm5, %v476_v13, %v546_v24  ;;  %v346_v37 = vmul.f32 %v2190_v31, %v2447_v0  ;;  %v385_v41 = vadd.f32 %v2462_v8, %v345_v32 }
  0x27   : > { %v348_v51 = vmul.f32 %v2194_v47, %v2447_v0  ;;  %v349_v11 = vmul.f32 %v2197_v4, %v2447_v0  ;;  %v350_v15 = vmul.f32 %v2198_v10, %v2447_v0 }
  0x28   : > { %983 = vrot.lane.b32.xlu0 %v2476_v29, %s2392_s7  ;;  %805 = vrot.lane.b32.xlu1 %v694_v53, %s2393_s10  ;;  %v479_v30 = vshrl.u32 %v2574_v25, 16  ;;  %v548_v36 = vshll.u32 %v2574_v25, 16  ;;  %v386_v42 = vadd.f32 %v2462_v8, %v346_v37  ;;  %v421_v45 = vmax.f32 %v385_v41, 0.0 }
  0x29   : > { %v388_v55 = vadd.f32 %v2462_v8, %v348_v51  ;;  %v389_v18 = vadd.f32 %v2462_v8, %v349_v11 }
  0x2a   : > { %v547_v35 = vrot.slane %v479_v30, 7  ;;  %v422_v46 = vmax.f32 %v386_v42, 0.0  ;;  %v636_v49 = vrot.slane %v548_v36, 1 }
  0x2b   : > { %v424_v63 = vmax.f32 %v388_v55, 0.0  ;;  %v425_v23 = vmax.f32 %v389_v18, 0.0 }
  0x2c   : > { %851 = vrot.lane.b32.xlu0 %v2532_v61, %s2394_s13  ;;  %853 = vrot.lane.b32.xlu1 %v2536_v62, %s2394_s13  ;;  %v550_v39 = vor.u32 %v548_v36, %v547_v35  ;;  %v451_v50 = vpack.c.bf16 %v422_v46, %v421_v45 }
  0x2e   : > { %v482_v54 = vshrl.u32 %v451_v50, 16  ;;  %v552_v60 = vshll.u32 %v451_v50, 16 }
  0x30   : > { %917 = vrot.lane.b32.xlu0 %v694_v53, %s2395_s14  ;;  %919 = vrot.lane.b32.xlu1 %v2503_v48, %s2395_s14  ;;  %v637_v53 = vor.u32 %v636_v49, %v479_v30  ;;  %v551_v59 = vrot.slane %v482_v54, 7  ;;  %v638_v6 = vrot.slane %v552_v60, 1 }
  0x32   : > { %v698_v58 = vsel %vm2494_vm2, %v637_v53, %v548_v36  ;;  %v554_v1 = vor.u32 %v552_v60, %v551_v59  ;;  %v639_v12 = vor.u32 %v638_v6, %v482_v54 }
  0x34   : > { %950 = vrot.lane.b32.xlu0 %v2536_v62, %s2396_s20  ;;  %952 = vrot.lane.b32.xlu1 %v2550_v9, %s2396_s20  ;;  %v2634_v5 = vsel %vm2517_vm5, %v482_v54, %v554_v1  ;;  %v699_v16 = vsel %vm2494_vm2, %v639_v12, %v552_v60  ;;  %v2245_v60 = vld [vmem:[%s2454_s24 + $0x50] sm:$0xff]  }
  0x35   : > { %v2210_v4 = vunpack.c.h.bf16 %v2245_v60 }
  0x38   : > { %1016 = vrot.lane.b32.xlu0 %v2503_v48, %s2397_s23  ;;  %759 = vrot.lane.b32.xlu1 %v2476_v29, %s2391_s30  ;;  %v634_v29 = vrot.slane %v544_v19, 1 }
  0x3a   : > { %v635_v34 = vor.u32 %v634_v29, %v476_v13 }
  0x3c   : > { %1018 = vrot.lane.b32.xlu0 %v696_v20, %s2397_s23  ;;  %761 = vrot.lane.b32.xlu1 %v2486_v33, %s2391_s30  ;;  %v697_v38 = vsel %vm2494_vm2, %v635_v34, %v544_v19  ;;  %v390_v19 = vadd.f32 %v2462_v8, %v350_v15 }
  0x3e   : > { %v426_v24 = vmax.f32 %v390_v19, 0.0 }
  0x40   : > { %807 = vrot.lane.b32.xlu0 %v2503_v48, %s2393_s10  ;;  %809 = vrot.lane.b32.xlu1 %v696_v20, %s2393_s10  ;;  %v347_v48 = vmul.f32 %v2193_v44, %v2447_v0  ;;  %v2662_v27 = vpack.c.bf16 %v426_v24, %v425_v23  ;;  %v2244_v44 = vld [vmem:[%s2454_s24 + $0x48] sm:$0xff]  }
  0x41   : > { %v2206_v49 = vunpack.c.h.bf16 %v2244_v44 }
  0x42   : > { %v387_v52 = vadd.f32 %v2462_v8, %v347_v48  ;;  %v488_v32 = vshrl.u32 %v2662_v27, 16  ;;  %v560_v36 = vshll.u32 %v2662_v27, 16  ;;  %v2205_v48 = vunpack.c.l.bf16 %v2244_v44 }
  0x43   : > { %v354_v54 = vmul.f32 %v2206_v49, %v2447_v0 }
  0x44   : > { %855 = vrot.lane.b32.xlu0 %v2550_v9, %s2394_s13  ;;  %857 = vrot.lane.b32.xlu1 %v2582_v28, %s2394_s13  ;;  %v423_v57 = vmax.f32 %v387_v52, 0.0  ;;  %v642_v45 = vrot.slane %v560_v36, 1  ;;  %v353_v53 = vmul.f32 %v2205_v48, %v2447_v0 }
  0x45   : > { %v394_v59 = vadd.f32 %v2462_v8, %v354_v54 }
  0x46   : > { %v2627_v2 = vpack.c.bf16 %v424_v63, %v423_v57  ;;  %v2209_v63 = vunpack.c.l.bf16 %v2245_v60 }
  0x47   : > { %v430_v3 = vmax.f32 %v394_v59, 0.0 }
  0x48   : > { %888 = vrot.lane.b32.xlu0 %v2486_v33, %s2390_s29  ;;  %890 = vrot.lane.b32.xlu1 %v2546_v7, %s2390_s29  ;;  %v2605_v33 = vsel %vm2517_vm5, %v479_v30, %v550_v39  ;;  %v556_v14 = vshll.u32 %v2627_v2, 16  ;;  %v355_v12 = vmul.f32 %v2209_v63, %v2447_v0 }
  0x4a   : > { %v640_v26 = vrot.slane %v556_v14, 1  ;;  %v395_v18 = vadd.f32 %v2462_v8, %v355_v12 }
  0x4c   : > { %921 = vrot.lane.b32.xlu0 %v696_v20, %s2395_s14  ;;  %923 = vrot.lane.b32.xlu1 %v697_v38, %s2395_s14  ;;  %v2243_v20 = vld [vmem:[%s2454_s24 + $0x40] sm:$0xff]  }
  0x4d   : > { %v2201_v21 = vunpack.c.l.bf16 %v2243_v20 }
  0x4f   : > { %v351_v29 = vmul.f32 %v2201_v21, %v2447_v0 }
  0x50   : > { %954 = vrot.lane.b32.xlu0 %v2582_v28, %s2396_s20  ;;  %956 = vrot.lane.b32.xlu1 %v2605_v33, %s2396_s20 }
  0x51   : > { %v391_v34 = vadd.f32 %v2462_v8, %v351_v29 }
  0x53   : > { %v427_v39 = vmax.f32 %v391_v34, 0.0 }
  0x54   : > { %987 = vrot.lane.b32.xlu0 %v2546_v7, %s2392_s7  ;;  %989 = vrot.lane.b32.xlu1 %v2574_v25, %s2392_s7 }
  0x58   : > { %1020 = vrot.lane.b32.xlu0 %v697_v38, %s2397_s23  ;;  %763 = vrot.lane.b32.xlu1 %v2546_v7, %s2391_s30  ;;  %v485_v7 = vshrl.u32 %v2627_v2, 16 }
  0x5a   : > { %v555_v13 = vrot.slane %v485_v7, 7  ;;  %v641_v31 = vor.u32 %v640_v26, %v485_v7  ;;  %v431_v26 = vmax.f32 %v395_v18, 0.0 }
  0x5c   : > { %1022 = vrot.lane.b32.xlu0 %v698_v58, %s2397_s23  ;;  %765 = vrot.lane.b32.xlu1 %v2574_v25, %s2391_s30  ;;  %v558_v17 = vor.u32 %v556_v14, %v555_v13  ;;  %v700_v37 = vsel %vm2494_vm2, %v641_v31, %v556_v14  ;;  %v356_v13 = vmul.f32 %v2210_v4, %v2447_v0 }
  0x5e   : > { %v2656_v22 = vsel %vm2517_vm5, %v485_v7, %v558_v17  ;;  %v396_v19 = vadd.f32 %v2462_v8, %v356_v13  ;;  %v2247_v13 = vld [vmem:[%s2454_s24 + $0x60] sm:$0xff]  }
  0x60   : > { %811 = vrot.lane.b32.xlu0 %v697_v38, %s2393_s10  ;;  %813 = vrot.lane.b32.xlu1 %v698_v58, %s2393_s10  ;;  %v559_v38 = vrot.slane %v488_v32, 7  ;;  %v432_v29 = vmax.f32 %v396_v19, 0.0 }
  0x62   : > { %v562_v42 = vor.u32 %v560_v36, %v559_v38  ;;  %v2744_v34 = vpack.c.bf16 %v432_v29, %v431_v26 }
  0x64   : > { %859 = vrot.lane.b32.xlu0 %v2605_v33, %s2394_s13  ;;  %861 = vrot.lane.b32.xlu1 %v2634_v5, %s2394_s13  ;;  %v2687_v46 = vsel %vm2517_vm5, %v488_v32, %v562_v42 }
  0x68   : > { %892 = vrot.lane.b32.xlu0 %v2574_v25, %s2390_s29  ;;  %894 = vrot.lane.b32.xlu1 %v451_v50, %s2390_s29  ;;  %v2202_v25 = vunpack.c.h.bf16 %v2243_v20 }
  0x6a   : > { %v352_v30 = vmul.f32 %v2202_v25, %v2447_v0 }
  0x6c   : > { %925 = vrot.lane.b32.xlu0 %v698_v58, %s2395_s14  ;;  %927 = vrot.lane.b32.xlu1 %v699_v16, %s2395_s14  ;;  %v392_v35 = vadd.f32 %v2462_v8, %v352_v30  ;;  %v393_v58 = vadd.f32 %v2462_v8, %v353_v53 }
  0x6e   : > { %v428_v41 = vmax.f32 %v392_v35, 0.0 }
  0x70   : > { %958 = vrot.lane.b32.xlu0 %v2634_v5, %s2396_s20  ;;  %960 = vrot.lane.b32.xlu1 %v2656_v22, %s2396_s20  ;;  %v2680_v43 = vpack.c.bf16 %v428_v41, %v427_v39 }
  0x72   : > { %v491_v47 = vshrl.u32 %v2680_v43, 16  ;;  %v564_v52 = vshll.u32 %v2680_v43, 16 }
  0x74   : > { %991 = vrot.lane.b32.xlu0 %v451_v50, %s2392_s7  ;;  %993 = vrot.lane.b32.xlu1 %v2627_v2, %s2392_s7  ;;  %v563_v51 = vrot.slane %v491_v47, 7  ;;  %v644_v10 = vrot.slane %v564_v52, 1 }
  0x76   : > { %v566_v57 = vor.u32 %v564_v52, %v563_v51 }
  0x78   : > { %1024 = vrot.lane.b32.xlu0 %v699_v16, %s2397_s23  ;;  %767 = vrot.lane.b32.xlu1 %v451_v50, %s2391_s30  ;;  %v643_v50 = vor.u32 %v642_v45, %v488_v32  ;;  %v2710_v1 = vsel %vm2517_vm5, %v491_v47, %v566_v57  ;;  %v2246_v32 = vld [vmem:[%s2454_s24 + $0x58] sm:$0xff]   ;;  %v2757_v45 = vshrl.u32 %v2744_v34, 16 }
  0x79   : > { %v2214_v41 = vunpack.c.h.bf16 %v2246_v32 }
  0x7a   : > { %v701_v55 = vsel %vm2494_vm2, %v643_v50, %v560_v36  ;;  %v571_v57 = vrot.slane %v2757_v45, 7 }
  0x7b   : > { %v358_v53 = vmul.f32 %v2214_v41, %v2447_v0 }
  0x7c   : > { %1026 = vrot.lane.b32.xlu0 %v700_v37, %s2397_s23  ;;  %769 = vrot.lane.b32.xlu1 %v2627_v2, %s2391_s30 }
  0x7d   : > { %v398_v12 = vadd.f32 %v2462_v8, %v358_v53 }
  0x80   : > { %815 = vrot.lane.b32.xlu0 %v699_v16, %s2393_s10  ;;  %817 = vrot.lane.b32.xlu1 %v700_v37, %s2393_s10  ;;  %v645_v16 = vor.u32 %v644_v10, %v491_v47 }
  0x82   : > { %v2737_v24 = vsel %vm2494_vm2, %v645_v16, %v564_v52 }
  0x84   : > { %863 = vrot.lane.b32.xlu0 %v2656_v22, %s2394_s13  ;;  %865 = vrot.lane.b32.xlu1 %v2687_v46, %s2394_s13 }
  0x88   : > { %896 = vrot.lane.b32.xlu0 %v2627_v2, %s2390_s29  ;;  %898 = vrot.lane.b32.xlu1 %v2662_v27, %s2390_s29  ;;  %v429_v2 = vmax.f32 %v393_v58, 0.0  ;;  %v572_v58 = vshll.u32 %v2744_v34, 16 }
  0x8a   : > { %v2718_v11 = vpack.c.bf16 %v430_v3, %v429_v2  ;;  %v574_v10 = vor.u32 %v572_v58, %v571_v57 }
  0x8c   : > { %929 = vrot.lane.b32.xlu0 %v700_v37, %s2395_s14  ;;  %931 = vrot.lane.b32.xlu1 %v701_v55, %s2395_s14  ;;  %v494_v17 = vshrl.u32 %v2718_v11, 16  ;;  %v568_v23 = vshll.u32 %v2718_v11, 16  ;;  %v2213_v37 = vunpack.c.l.bf16 %v2246_v32 }
  0x8e   : > { %v2712_v6 = vpop.permute.xlu1 %886  ;;  %v756_v7 = vpop.permute.xlu0 %755  ;;  %v567_v25 = vrot.slane %v494_v17, 7  ;;  %v646_v39 = vrot.slane %v568_v23, 1  ;;  %v357_v50 = vmul.f32 %v2213_v37, %v2447_v0 }
  0x8f   : > { %v1051_v38 = vsel %vm1048_vm7, %v2536_v62, %v756_v7 }
  0x90   : > { %962 = vrot.lane.b32.xlu0 %v2687_v46, %s2396_s20  ;;  %964 = vrot.lane.b32.xlu1 %v2710_v1, %s2396_s20  ;;  %v647_v52 = vor.u32 %v646_v39, %v494_v17  ;;  %v397_v3 = vadd.f32 %v2462_v8, %v357_v50 }
  0x92   : > { %v2722_v14 = vpop.permute.xlu1 %985  ;;  %v758_v15 = vpop.permute.xlu0 %757  ;;  %v703_v7 = vsel %vm2494_vm2, %v647_v52, %v568_v23 }
  0x93   : > { %v1054_v51 = vsel %vm1048_vm7, %v2532_v61, %v758_v15 }
  0x94   : > { %995 = vrot.lane.b32.xlu0 %v2662_v27, %s2392_s7  ;;  %997 = vrot.lane.b32.xlu1 %v2680_v43, %s2392_s7 }
  0x96   : > { %v885_v20 = vpop.permute.xlu0 %884  ;;  %v804_v21 = vpop.permute.xlu1 %803 }
  0x97   : > { %v1099_v42 = vsel %vm1097_vm8, %v1051_v38, %v804_v21  ;;  %v2797_v21 = vsel %vm2517_vm5, %v2757_v45, %v574_v10 }
  0x98   : > { %1028 = vrot.lane.b32.xlu0 %v701_v55, %s2397_s23  ;;  %771 = vrot.lane.b32.xlu1 %v2662_v27, %s2391_s30  ;;  %v570_v27 = vor.u32 %v568_v23, %v567_v25  ;;  %v433_v23 = vmax.f32 %v397_v3, 0.0  ;;  %v434_v25 = vmax.f32 %v398_v12, 0.0 }
  0x9a   : > { %v984_v30 = vpop.permute.xlu0 %983  ;;  %v806_v31 = vpop.permute.xlu1 %805  ;;  %v2754_v44 = vsel %vm2517_vm5, %v494_v17, %v570_v27  ;;  %v648_v27 = vrot.slane %v572_v58, 1 }
  0x9b   : > { %v1101_v54 = vsel %vm1097_vm8, %v1054_v51, %v806_v31 }
  0x9c   : > { %1030 = vrot.lane.b32.xlu0 %v2737_v24, %s2397_s23  ;;  %773 = vrot.lane.b32.xlu1 %v2680_v43, %s2391_s30  ;;  %v649_v39 = vor.u32 %v648_v27, %v2757_v45 }
  0x9e   : > { %v852_v35 = vpop.permute.xlu0 %851  ;;  %v854_v36 = vpop.permute.xlu1 %853  ;;  %v704_v50 = vsel %vm2494_vm2, %v649_v39, %v572_v58 }
  0x9f   : > { %v1132_v47 = vsel %vm1130_vm9, %v1099_v42, %v852_v35  ;;  %v1134_v61 = vsel %vm1130_vm9, %v1101_v54, %v854_v36  ;;  %v2809_v35 = vpack.c.bf16 %v434_v25, %v433_v23 }
  0xa0   : > { %819 = vrot.lane.b32.xlu0 %v701_v55, %s2393_s10  ;;  %821 = vrot.lane.b32.xlu1 %v2737_v24, %s2393_s10  ;;  %v1165_v55 = vsel %vm1163_vm10, %v1132_v47, %v885_v20  ;;  %v1167_v4 = vsel %vm1163_vm10, %v1134_v61, %v2712_v6  ;;  %v2217_v6 = vunpack.c.l.bf16 %v2247_v13  ;;  %v2218_v20 = vunpack.c.h.bf16 %v2247_v13  ;;  %v2248_v61 = vld [vmem:[%s2454_s24 + $0x68] sm:$0xff]  }
  0xa1   : > { %v500_v41 = vshrl.u32 %v2809_v35, 16  ;;  %v576_v52 = vshll.u32 %v2809_v35, 16 }
  0xa2   : > { %v918_v48 = vpop.permute.xlu0 %917  ;;  %v920_v49 = vpop.permute.xlu1 %919  ;;  %v359_v31 = vmul.f32 %v2217_v6, %v2447_v0  ;;  %v360_v32 = vmul.f32 %v2218_v20, %v2447_v0 }
  0xa3   : > { %v1198_v59 = vsel %vm1196_vm11, %v1165_v55, %v918_v48  ;;  %v1200_v15 = vsel %vm1196_vm11, %v1167_v4, %v920_v49  ;;  %v575_v51 = vrot.slane %v500_v41, 7 }
  0xa4   : > { %867 = vrot.lane.b32.xlu0 %v2710_v1, %s2394_s13  ;;  %869 = vrot.lane.b32.xlu1 %v2754_v44, %s2394_s13  ;;  %v399_v37 = vadd.f32 %v2462_v8, %v359_v31  ;;  %v400_v38 = vadd.f32 %v2462_v8, %v360_v32  ;;  %v2249_v32 = vld [vmem:[%s2454_s24 + $0x70] sm:$0xff]  }
  0xa5   : > { %v578_v55 = vor.u32 %v576_v52, %v575_v51  ;;  %v2226_v39 = vunpack.c.h.bf16 %v2249_v32 }
  0xa6   : > { %v951_v60 = vpop.permute.xlu0 %950  ;;  %v953_v63 = vpop.permute.xlu1 %952  ;;  %v435_v48 = vmax.f32 %v399_v37, 0.0  ;;  %v436_v49 = vmax.f32 %v400_v38, 0.0 }
  0xa7   : > { %v1231_v2 = vsel %vm1229_vm12, %v1198_v59, %v951_v60  ;;  %v1233_v18 = vsel %vm1229_vm12, %v1200_v15, %v953_v63  ;;  %v650_v59 = vrot.slane %v576_v52, 1  ;;  %v2838_v60 = vsel %vm2517_vm5, %v500_v41, %v578_v55 }
  0xa8   : > { %900 = vrot.lane.b32.xlu0 %v2680_v43, %s2390_s29  ;;  %902 = vrot.lane.b32.xlu1 %v2718_v11, %s2390_s29  ;;  %v1264_v17 = vsel %vm1262_vm13, %v1231_v2, %v984_v30  ;;  %v1266_v29 = vsel %vm1262_vm13, %v1233_v18, %v2722_v14  ;;  %v2828_v54 = vpack.c.bf16 %v436_v49, %v435_v48  ;;  %v2221_v63 = vunpack.c.l.bf16 %v2248_v61 }
  0xa9   : > { %v2222_v2 = vunpack.c.h.bf16 %v2248_v61  ;;  %v651_v10 = vor.u32 %v650_v59, %v500_v41 }
  0xaa   : > { %v1017_v16 = vpop.permute.xlu0 %1016  ;;  %v760_v43 = vpop.permute.xlu1 %759  ;;  %v2834_v58 = vshrl.u32 %v2828_v54, 16  ;;  %v580_v13 = vshll.u32 %v2828_v54, 16 }
  0xab   : > { %v1297_v19 = vsel %vm1295_vm14, %v1264_v17, %v1017_v16  ;;  %v1057_v12 = vsel %vm1048_vm7, %v2536_v62, %v760_v43  ;;  %v361_v16 = vmul.f32 %v2221_v63, %v2447_v0  ;;  %v362_v17 = vmul.f32 %v2222_v2, %v2447_v0 }
  0xac   : > { %933 = vrot.lane.b32.xlu0 %v2737_v24, %s2395_s14  ;;  %935 = vrot.lane.b32.xlu1 %v703_v7, %s2395_s14  ;;  %v2855_v6 = vsel %vm2494_vm2, %v651_v10, %v576_v52  ;;  %v652_v55 = vrot.slane %v580_v13, 1 }
  0xad   : > { %2283 = vmatprep.mubr.msk.bf16.mxu0 %vm1364_vm15, %v1297_v19  ;;  %v402_v31 = vadd.f32 %v2462_v8, %v362_v17 }
  0xae   : > { %v1019_v26 = vpop.permute.xlu0 %1018  ;;  %v762_v30 = vpop.permute.xlu1 %761  ;;  %v653_v2 = vor.u32 %v652_v55, %v2834_v58 }
  0xaf   : > { %v1299_v24 = vsel %vm1295_vm14, %v1266_v29, %v1019_v26  ;;  %v1060_v20 = vsel %vm1048_vm7, %v2550_v9, %v762_v30  ;;  %v438_v48 = vmax.f32 %v402_v31, 0.0 }
  0xb0   : > { %966 = vrot.lane.b32.xlu0 %v2754_v44, %s2396_s20  ;;  %968 = vrot.lane.b32.xlu1 %v2797_v21, %s2396_s20 }
  0xb1   : > { %2284 = vmatmul.mubr.msk.bf16.vlgmr.msra.gmra.mrb[0].mxu0 %vm1364_vm15, %v1299_v24  ;;  %v401_v24 = vadd.f32 %v2462_v8, %v361_v16 }
  0xb2   : > { %v808_v36 = vpop.permute.xlu0 %807  ;;  %v810_v14 = vpop.permute.xlu1 %809 }
  0xb3   : > { %v1103_v15 = vsel %vm1097_vm8, %v1057_v12, %v808_v36  ;;  %v1105_v26 = vsel %vm1097_vm8, %v1060_v20, %v810_v14  ;;  %v2225_v14 = vunpack.c.l.bf16 %v2249_v32 }
  0xb4   : > { %999 = vrot.lane.b32.xlu0 %v2718_v11, %s2392_s7  ;;  %1001 = vrot.lane.b32.xlu1 %v2744_v34, %s2392_s7 }
  0xb6   : > { %v856_v42 = vpop.permute.xlu0 %855  ;;  %v858_v47 = vpop.permute.xlu1 %857 }
  0xb7   : > { %v1136_v18 = vsel %vm1130_vm9, %v1103_v15, %v856_v42  ;;  %v1138_v9 = vsel %vm1130_vm9, %v1105_v26, %v858_v47  ;;  %v437_v47 = vmax.f32 %v401_v24, 0.0 }
  0xb8   : > { %1032 = vrot.lane.b32.xlu0 %v703_v7, %s2397_s23  ;;  %775 = vrot.lane.b32.xlu1 %v2718_v11, %s2391_s30 }
  0xba   : > { %v889_v53 = vpop.permute.xlu0 %888  ;;  %v891_v45 = vpop.permute.xlu1 %890 }
  0xbb   : > { %v1169_v19 = vsel %vm1163_vm10, %v1136_v18, %v889_v53  ;;  %v363_v53 = vmul.f32 %v2225_v14, %v2447_v0 }
  0xbc   : > { %1034 = vrot.lane.b32.xlu0 %v704_v50, %s2397_s23  ;;  %777 = vrot.lane.b32.xlu1 %v2744_v34, %s2391_s30 }
  0xbd   : > { %v403_v59 = vadd.f32 %v2462_v8, %v363_v53 }
  0xbe   : > { %v922_v57 = vpop.permute.xlu0 %921  ;;  %v924_v11 = vpop.permute.xlu1 %923 }
  0xbf   : > { %v1202_v23 = vsel %vm1196_vm11, %v1169_v19, %v922_v57  ;;  %v2893_v57 = vpack.c.bf16 %v438_v48, %v437_v47  ;;  %v439_v10 = vmax.f32 %v403_v59, 0.0 }
  0xc0   : > { %823 = vrot.lane.b32.xlu0 %v703_v7, %s2393_s10  ;;  %825 = vrot.lane.b32.xlu1 %v704_v50, %s2393_s10  ;;  %v579_v7 = vrot.slane %v2834_v58, 7 }
  0xc2   : > { %v955_v3 = vpop.permute.xlu0 %954  ;;  %v957_v4 = vpop.permute.xlu1 %956  ;;  %v582_v25 = vor.u32 %v580_v13, %v579_v7  ;;  %v706_v7 = vsel %vm2494_vm2, %v653_v2, %v580_v13 }
  0xc3   : > { %v1235_v29 = vsel %vm1229_vm12, %v1202_v23, %v955_v3 }
  0xc4   : > { %871 = vrot.lane.b32.xlu0 %v2797_v21, %s2394_s13  ;;  %873 = vrot.lane.b32.xlu1 %v2838_v60, %s2394_s13  ;;  %v2882_v42 = vsel %vm2517_vm5, %v2834_v58, %v582_v25 }
  0xc6   : > { %v988_v62 = vpop.permute.xlu0 %987  ;;  %v990_v43 = vpop.permute.xlu1 %989 }
  0xc7   : > { %v1268_v30 = vsel %vm1262_vm13, %v1235_v29, %v988_v62 }
  0xc8   : > { %904 = vrot.lane.b32.xlu0 %v2744_v34, %s2390_s29  ;;  %906 = vrot.lane.b32.xlu1 %v2809_v35, %s2390_s29  ;;  %v1171_v34 = vsel %vm1163_vm10, %v1138_v9, %v891_v45  ;;  %v364_v45 = vmul.f32 %v2226_v39, %v2447_v0  ;;  %v506_v0 = vshrl.u32 %v2893_v57, 16 }
  0xc9   : > { %v1204_v38 = vsel %vm1196_vm11, %v1171_v34, %v924_v11 }
  0xca   : > { %v1021_v27 = vpop.permute.xlu0 %1020  ;;  %v764_v36 = vpop.permute.xlu1 %763  ;;  %v1237_v41 = vsel %vm1229_vm12, %v1204_v38, %v957_v4  ;;  %v404_v63 = vadd.f32 %v2462_v8, %v364_v45  ;;  %v583_v15 = vrot.slane %v506_v0, 7  ;;  %v584_v8 = vshll.u32 %v2893_v57, 16 }
  0xcb   : > { %v1301_v37 = vsel %vm1295_vm14, %v1268_v30, %v1021_v27  ;;  %v1270_v49 = vsel %vm1262_vm13, %v1237_v41, %v990_v43  ;;  %v2250_v43 = vld [vmem:[%s2454_s24 + $0x78] sm:$0xff]   ;;  %v1063_v31 = vsel %vm1048_vm7, %v2582_v28, %v764_v36  ;;  %v2364_v30 = vld [vmem:[%s3486_s1] ss:$0 sm:$0xff] }
  0xcc   : > { %937 = vrot.lane.b32.xlu0 %v704_v50, %s2395_s14  ;;  %939 = vrot.lane.b32.xlu1 %v2855_v6, %s2395_s14  ;;  %v440_v12 = vmax.f32 %v404_v63, 0.0  ;;  %v586_v18 = vor.u32 %v584_v8, %v583_v15  ;;  %v654_v19 = vrot.slane %v584_v8, 1  ;;  %v2229_v23 = vunpack.c.l.bf16 %v2250_v43 }
  0xcd   : > { %2287 = vmatprep.mubr.msk.bf16.mxu0 %vm1364_vm15, %v1301_v37  ;;  %v2230_v25 = vunpack.c.h.bf16 %v2250_v43 }
  0xce   : > { %v1023_v51 = vpop.permute.xlu0 %1022  ;;  %v766_v50 = vpop.permute.xlu1 %765  ;;  %v2913_v17 = vpack.c.bf16 %v440_v12, %v439_v10  ;;  %v2922_v20 = vsel %vm2517_vm5, %v506_v0, %v586_v18  ;;  %v655_v24 = vor.u32 %v654_v19, %v506_v0  ;;  %v365_v27 = vmul.f32 %v2364_v30, %v2229_v23 }
  0xcf   : > { %v1303_v52 = vsel %vm1295_vm14, %v1270_v49, %v1023_v51  ;;  %v366_v34 = vmul.f32 %v2364_v30, %v2230_v25  ;;  %v1066_v39 = vsel %vm1048_vm7, %v2605_v33, %v766_v50  ;;  %v2365_v51 = vld [vmem:[%s3486_s1 + $0x1] ss:$0 sm:$0xff] }
  0xd0   : > { %970 = vrot.lane.b32.xlu0 %v2838_v60, %s2396_s20  ;;  %972 = vrot.lane.b32.xlu1 %v2882_v42, %s2396_s20  ;;  %v509_v13 = vshrl.u32 %v2913_v17, 16  ;;  %v588_v32 = vshll.u32 %v2913_v17, 16  ;;  %v707_v14 = vsel %vm2494_vm2, %v655_v24, %v584_v8 }
  0xd1   : > { %2288 = vmatmul.mubr.msk.bf16.gmra.mrb[4].mxu0 %vm1364_vm15, %v1303_v52  ;;  %v405_v52 = vadd.f32 %v2365_v51, %v365_v27  ;;  %v406_v53 = vadd.f32 %v2365_v51, %v366_v34 }
  0xd2   : > { %v812_v11 = vpop.permute.xlu0 %811  ;;  %v814_v61 = vpop.permute.xlu1 %813 }
  0xd3   : > { %v1107_v9 = vsel %vm1097_vm8, %v1063_v31, %v812_v11  ;;  %v1109_v48 = vsel %vm1097_vm8, %v1066_v39, %v814_v61  ;;  %v441_v2 = vmax.f32 %v405_v52, 0.0  ;;  %v442_v0 = vmax.f32 %v406_v53, 0.0 }
  0xd4   : > { %1003 = vrot.lane.b32.xlu0 %v2809_v35, %s2392_s7  ;;  %1005 = vrot.lane.b32.xlu1 %v2828_v54, %s2392_s7 }
  0xd5   : > { %v461_v15 = vpack.c.bf16 %v442_v0, %v441_v2 }
  0xd6   : > { %v860_v3 = vpop.permute.xlu0 %859  ;;  %v862_v4 = vpop.permute.xlu1 %861 }
  0xd7   : > { %v1140_v37 = vsel %vm1130_vm9, %v1107_v9, %v860_v3  ;;  %v1142_v33 = vsel %vm1130_vm9, %v1109_v48, %v862_v4  ;;  %v710_v18 = vshrl.u32 %v461_v15, 16  ;;  %v714_v23 = vshll.u32 %v461_v15, 16 }
  0xd8   : > { %1036 = vrot.lane.b32.xlu0 %v2855_v6, %s2397_s23  ;;  %779 = vrot.lane.b32.xlu1 %v2809_v35, %s2391_s30 }
  0xd9   : > { %v713_v19 = vrot.slane %v710_v18, 7  ;;  %v719_v31 = vrot.slane %v714_v23, 1 }
  0xda   : > { %v893_v58 = vpop.permute.xlu0 %892  ;;  %v895_v16 = vpop.permute.xlu1 %894 }
  0xdb   : > { %v1173_v38 = vsel %vm1163_vm10, %v1140_v37, %v893_v58  ;;  %v1175_v55 = vsel %vm1163_vm10, %v1142_v33, %v895_v16  ;;  %v720_v27 = vor.u32 %v719_v31, %v710_v18 }
  0xdc   : > { %1038 = vrot.lane.b32.xlu0 %v706_v7, %s2397_s23  ;;  %781 = vrot.lane.b32.xlu1 %v2828_v54, %s2391_s30 }
  0xdd   : > { %v723_v39 = vsel %vm2494_vm2, %v720_v27, %v714_v23 }
  0xde   : > { %v926_v62 = vpop.permute.xlu0 %925  ;;  %v928_v35 = vpop.permute.xlu1 %927 }
  0xdf   : > { %v1206_v41 = vsel %vm1196_vm11, %v1173_v38, %v926_v62  ;;  %v1208_v61 = vsel %vm1196_vm11, %v1175_v55, %v928_v35 }
  0xe0   : > { %827 = vrot.lane.b32.xlu0 %v2855_v6, %s2393_s10  ;;  %829 = vrot.lane.b32.xlu1 %v706_v7, %s2393_s10  ;;  %v587_v6 = vrot.slane %v509_v13, 7 }
  0xe2   : > { %v959_v26 = vpop.permute.xlu0 %958  ;;  %v961_v29 = vpop.permute.xlu1 %960  ;;  %v590_v47 = vor.u32 %v588_v32, %v587_v6 }
  0xe3   : > { %v1239_v49 = vsel %vm1229_vm12, %v1206_v41, %v959_v26  ;;  %v1241_v59 = vsel %vm1229_vm12, %v1208_v61, %v961_v29 }
  0xe4   : > { %875 = vrot.lane.b32.xlu0 %v2882_v42, %s2394_s13  ;;  %877 = vrot.lane.b32.xlu1 %v2922_v20, %s2394_s13  ;;  %v2962_v63 = vsel %vm2517_vm5, %v509_v13, %v590_v47 }
  0xe6   : > { %v992_v28 = vpop.permute.xlu0 %991  ;;  %v994_v36 = vpop.permute.xlu1 %993 }
  0xe7   : > { %v1272_v50 = vsel %vm1262_vm13, %v1239_v49, %v992_v28  ;;  %v1274_v3 = vsel %vm1262_vm13, %v1241_v59, %v994_v36 }
  0xe8   : > { %908 = vrot.lane.b32.xlu0 %v2828_v54, %s2390_s29  ;;  %910 = vrot.lane.b32.xlu1 %v2893_v57, %s2390_s29 }
  0xea   : > { %v1025_v45 = vpop.permute.xlu0 %1024  ;;  %v768_v54 = vpop.permute.xlu1 %767 }
  0xeb   : > { %v1305_v11 = vsel %vm1295_vm14, %v1272_v50, %v1025_v45  ;;  %v1069_v9 = vsel %vm1048_vm7, %v2634_v5, %v768_v54 }
  0xec   : > { %941 = vrot.lane.b32.xlu0 %v706_v7, %s2395_s14  ;;  %943 = vrot.lane.b32.xlu1 %v707_v14, %s2395_s14  ;;  %v656_v7 = vrot.slane %v588_v32, 1 }
  0xed   : > { %2291 = vmatprep.mubr.msk.bf16.mxu0 %vm1364_vm15, %v1305_v11 }
  0xee   : > { %v1027_v4 = vpop.permute.xlu0 %1026  ;;  %v770_v10 = vpop.permute.xlu1 %769  ;;  %v657_v16 = vor.u32 %v656_v7, %v509_v13  ;;  %v716_v13 = vor.u32 %v714_v23, %v713_v19 }
  0xef   : > { %v1307_v12 = vsel %vm1295_vm14, %v1274_v3, %v1027_v4  ;;  %v1072_v36 = vsel %vm1048_vm7, %v2656_v22, %v770_v10 }
  0xf0   : > { %974 = vrot.lane.b32.xlu0 %v2922_v20, %s2396_s20  ;;  %976 = vrot.lane.b32.xlu1 %v2962_v63, %s2396_s20  ;;  %v708_v43 = vsel %vm2494_vm2, %v657_v16, %v588_v32 }
  0xf1   : > { %2292 = vmatmul.mubr.msk.bf16.gmra.mrb[8].mxu0 %vm1364_vm15, %v1307_v12 }
  0xf2   : > { %v816_v8 = vpop.permute.xlu0 %815  ;;  %v818_v58 = vpop.permute.xlu1 %817 }
  0xf3   : > { %v1111_v30 = vsel %vm1097_vm8, %v1069_v9, %v816_v8  ;;  %v1113_v5 = vsel %vm1097_vm8, %v1072_v36, %v818_v58 }
  0xf4   : > { %1007 = vrot.lane.b32.xlu0 %v2893_v57, %s2392_s7  ;;  %1009 = vrot.lane.b32.xlu1 %v2913_v17, %s2392_s7 }
  0xf6   : > { %v864_v62 = vpop.permute.xlu0 %863  ;;  %v866_v35 = vpop.permute.xlu1 %865 }
  0xf7   : > { %v1144_v34 = vsel %vm1130_vm9, %v1111_v30, %v864_v62  ;;  %v1146_v41 = vsel %vm1130_vm9, %v1113_v5, %v866_v35 }
  0xf8   : > { %1040 = vrot.lane.b32.xlu0 %v707_v14, %s2397_s23  ;;  %783 = vrot.lane.b32.xlu1 %v2893_v57, %s2391_s30  ;;  %v718_v57 = vsel %vm2517_vm5, %v710_v18, %v716_v13 }
  0xfa   : > { %v897_v25 = vpop.permute.xlu0 %896  ;;  %v899_v26 = vpop.permute.xlu1 %898 }
  0xfb   : > { %v1177_v56 = vsel %vm1163_vm10, %v1144_v34, %v897_v25  ;;  %v1179_v49 = vsel %vm1163_vm10, %v1146_v41, %v899_v26 }
  0xfc   : > { %1042 = vrot.lane.b32.xlu0 %v708_v43, %s2397_s23  ;;  %785 = vrot.lane.b32.xlu1 %v2913_v17, %s2391_s30  ;;  %s3090_s30 = scalar_lea.vmem %s3488_s3, %s2129_s19  ;;  %s2067_s19 = sshll.u32 %s3499_s15, 3 }
  0xfe   : > { %v930_v29 = vpop.permute.xlu0 %929  ;;  %v932_v24 = vpop.permute.xlu1 %931 }
  0xff   : > { %v1210_v38 = vsel %vm1196_vm11, %v1177_v56, %v930_v29  ;;  %v1212_v52 = vsel %vm1196_vm11, %v1179_v49, %v932_v24 }
 0x100   : > { %831 = vrot.lane.b32.xlu0 %v707_v14, %s2393_s10  ;;  %833 = vrot.lane.b32.xlu1 %v708_v43, %s2393_s10 }
 0x102   : > { %v963_v6 = vpop.permute.xlu0 %962  ;;  %v965_v32 = vpop.permute.xlu1 %964 }
 0x103   : > { %v1243_v14 = vsel %vm1229_vm12, %v1210_v38, %v963_v6  ;;  %v1245_v53 = vsel %vm1229_vm12, %v1212_v52, %v965_v32 }
 0x104   : > { %879 = vrot.lane.b32.xlu0 %v2962_v63, %s2394_s13  ;;  %881 = vrot.lane.b32.xlu1 %v718_v57, %s2394_s13 }
 0x106   : > { %v996_v37 = vpop.permute.xlu0 %995  ;;  %v998_v28 = vpop.permute.xlu1 %997 }
 0x107   : > { %v1276_v47 = vsel %vm1262_vm13, %v1243_v14, %v996_v37  ;;  %v1278_v40 = vsel %vm1262_vm13, %v1245_v53, %v998_v28 }
 0x108   : > { %912 = vrot.lane.b32.xlu0 %v2913_v17, %s2390_s29  ;;  %914 = vrot.lane.b32.xlu1 %v461_v15, %s2390_s29 }
 0x10a   : > { %v1029_v48 = vpop.permute.xlu0 %1028  ;;  %v772_v22 = vpop.permute.xlu1 %771 }
 0x10b   : > { %v1309_v51 = vsel %vm1295_vm14, %v1276_v47, %v1029_v48  ;;  %v1075_v12 = vsel %vm1048_vm7, %v2687_v46, %v772_v22 }
 0x10c   : > { %945 = vrot.lane.b32.xlu0 %v708_v43, %s2395_s14  ;;  %947 = vrot.lane.b32.xlu1 %v723_v39, %s2395_s14 }
 0x10d   : > { %2295 = vmatprep.mubr.msk.bf16.mxu0 %vm1364_vm15, %v1309_v51 }
 0x10e   : > { %v1031_v33 = vpop.permute.xlu0 %1030  ;;  %v774_v50 = vpop.permute.xlu1 %773 }
 0x10f   : > { %v1311_v45 = vsel %vm1295_vm14, %v1278_v40, %v1031_v33  ;;  %v1078_v16 = vsel %vm1048_vm7, %v2710_v1, %v774_v50 }
 0x110   : > { %978 = vrot.lane.b32.xlu0 %v718_v57, %s2396_s20  ;;  %980 = vrot.lane.b32.xlu1 %v2962_v63, %s2396_s20 }
 0x111   : > { %2296 = vmatmul.mubr.msk.bf16.gmra.mrb[12].mxu0 %vm1364_vm15, %v1311_v45 }
 0x112   : > { %v820_v54 = vpop.permute.xlu0 %819  ;;  %v822_v55 = vpop.permute.xlu1 %821 }
 0x113   : > { %v1115_v7 = vsel %vm1097_vm8, %v1075_v12, %v820_v54  ;;  %v1117_v62 = vsel %vm1097_vm8, %v1078_v16, %v822_v55 }
 0x114   : > { %1011 = vrot.lane.b32.xlu0 %v461_v15, %s2392_s7  ;;  %1013 = vrot.lane.b32.xlu1 %v2913_v17, %s2392_s7  ;;  %s237_s7 = scalar_lea.vmem %s3489_s4, %s2067_s19 }
 0x116   : > { %v868_v11 = vpop.permute.xlu0 %867  ;;  %v870_v61 = vpop.permute.xlu1 %869 }
 0x117   : > { %v1148_v15 = vsel %vm1130_vm9, %v1115_v7, %v868_v11 }
 0x118   : > { %1044 = vrot.lane.b32.xlu0 %v723_v39, %s2397_s23  ;;  %1046 = vrot.lane.b32.xlu1 %v708_v43, %s2397_s23  ;;  %v1150_v43 = vsel %vm1130_vm9, %v1117_v62, %v870_v61 }
 0x11a   : > { %v901_v59 = vpop.permute.xlu0 %900  ;;  %v903_v2 = vpop.permute.xlu1 %902 }
 0x11b   : > { %v1181_v58 = vsel %vm1163_vm10, %v1148_v15, %v901_v59  ;;  %v1183_v25 = vsel %vm1163_vm10, %v1150_v43, %v903_v2 }
 0x11e   : > { %v934_v0 = vpop.permute.xlu0 %933  ;;  %v936_v3 = vpop.permute.xlu1 %935 }
 0x11f   : > { %v1214_v18 = vsel %vm1196_vm11, %v1181_v58, %v934_v0  ;;  %v1216_v13 = vsel %vm1196_vm11, %v1183_v25, %v936_v3 }
 0x122   : > { %v967_v4 = vpop.permute.xlu0 %966  ;;  %v969_v10 = vpop.permute.xlu1 %968 }
 0x123   : > { %v1247_v35 = vsel %vm1229_vm12, %v1214_v18, %v967_v4  ;;  %v1249_v1 = vsel %vm1229_vm12, %v1216_v13, %v969_v10 }
 0x126   : > { %v1000_v17 = vpop.permute.xlu0 %999  ;;  %v1002_v8 = vpop.permute.xlu1 %1001 }
 0x127   : > { %v1280_v46 = vsel %vm1262_vm13, %v1247_v35, %v1000_v17  ;;  %v1282_v29 = vsel %vm1262_vm13, %v1249_v1, %v1002_v8 }
 0x12a   : > { %v1033_v19 = vpop.permute.xlu0 %1032  ;;  %v776_v23 = vpop.permute.xlu1 %775 }
 0x12b   : > { %v1313_v26 = vsel %vm1295_vm14, %v1280_v46, %v1033_v19  ;;  %v1081_v38 = vsel %vm1048_vm7, %v2754_v44, %v776_v23 }
 0x12c   : > { %2299 = vmatprep.mubr.msk.bf16.mxu1 %vm1364_vm15, %v1313_v26 }
 0x12e   : > { %v1035_v24 = vpop.permute.xlu0 %1034  ;;  %v778_v57 = vpop.permute.xlu1 %777 }
 0x12f   : > { %v1315_v31 = vsel %vm1295_vm14, %v1282_v29, %v1035_v24  ;;  %v1084_v48 = vsel %vm1048_vm7, %v2797_v21, %v778_v57 }
 0x130   : > { %2300 = vmatmul.mubr.msk.bf16.vlgmr.msra.gmra.mrb[0].mxu1 %vm1364_vm15, %v1315_v31 }
 0x132   : > { %v824_v6 = vpop.permute.xlu0 %823  ;;  %v826_v32 = vpop.permute.xlu1 %825 }
 0x133   : > { %v1119_v5 = vsel %vm1097_vm8, %v1081_v38, %v824_v6  ;;  %v1121_v49 = vsel %vm1097_vm8, %v1084_v48, %v826_v32 }
 0x136   : > { %v872_v9 = vpop.permute.xlu0 %871  ;;  %v874_v30 = vpop.permute.xlu1 %873 }
 0x137   : > { %v1152_v14 = vsel %vm1130_vm9, %v1119_v5, %v872_v9  ;;  %v1154_v52 = vsel %vm1130_vm9, %v1121_v49, %v874_v30 }
 0x13a   : > { %v905_v27 = vpop.permute.xlu0 %904  ;;  %v907_v34 = vpop.permute.xlu1 %906 }
 0x13b   : > { %v1185_v47 = vsel %vm1163_vm10, %v1152_v14, %v905_v27  ;;  %v1187_v33 = vsel %vm1163_vm10, %v1154_v52, %v907_v34 }
 0x13e   : > { %v938_v37 = vpop.permute.xlu0 %937  ;;  %v940_v28 = vpop.permute.xlu1 %939 }
 0x13f   : > { %v1218_v22 = vsel %vm1196_vm11, %v1185_v47, %v938_v37  ;;  %v1220_v45 = vsel %vm1196_vm11, %v1187_v33, %v940_v28 }
 0x142   : > { %v971_v56 = vpop.permute.xlu0 %970  ;;  %v973_v36 = vpop.permute.xlu1 %972 }
 0x143   : > { %v1251_v51 = vsel %vm1229_vm12, %v1218_v22, %v971_v56  ;;  %v1253_v21 = vsel %vm1229_vm12, %v1220_v45, %v973_v36 }
 0x146   : > { %v1004_v39 = vpop.permute.xlu0 %1003  ;;  %v1006_v41 = vpop.permute.xlu1 %1005 }
 0x147   : > { %v1284_v44 = vsel %vm1262_vm13, %v1251_v51, %v1004_v39  ;;  %v1286_v54 = vsel %vm1262_vm13, %v1253_v21, %v1006_v41 }
 0x14a   : > { %v1037_v53 = vpop.permute.xlu0 %1036  ;;  %v780_v40 = vpop.permute.xlu1 %779 }
 0x14b   : > { %v1317_v50 = vsel %vm1295_vm14, %v1284_v44, %v1037_v53  ;;  %v1087_v8 = vsel %vm1048_vm7, %v2838_v60, %v780_v40 }
 0x14c   : > { %2303 = vmatprep.mubr.msk.bf16.mxu1 %vm1364_vm15, %v1317_v50 }
 0x14e   : > { %v1039_v55 = vpop.permute.xlu0 %1038  ;;  %v782_v11 = vpop.permute.xlu1 %781 }
 0x14f   : > { %v1319_v61 = vsel %vm1295_vm14, %v1286_v54, %v1039_v55  ;;  %v1090_v43 = vsel %vm1048_vm7, %v2882_v42, %v782_v11 }
 0x150   : > { %2304 = vmatmul.mubr.msk.bf16.gmra.mrb[4].mxu1 %vm1364_vm15, %v1319_v61 }
 0x152   : > { %v828_v59 = vpop.permute.xlu0 %827  ;;  %v830_v2 = vpop.permute.xlu1 %829 }
 0x153   : > { %v1123_v58 = vsel %vm1097_vm8, %v1087_v8, %v828_v59  ;;  %v1125_v19 = vsel %vm1097_vm8, %v1090_v43, %v830_v2 }
 0x156   : > { %v876_v0 = vpop.permute.xlu0 %875  ;;  %v878_v3 = vpop.permute.xlu1 %877 }
 0x157   : > { %v1156_v16 = vsel %vm1130_vm9, %v1123_v58, %v876_v0  ;;  %v1158_v25 = vsel %vm1130_vm9, %v1125_v19, %v878_v3 }
 0x15a   : > { %v909_v4 = vpop.permute.xlu0 %908  ;;  %v911_v10 = vpop.permute.xlu1 %910 }
 0x15b   : > { %v1189_v35 = vsel %vm1163_vm10, %v1156_v16, %v909_v4  ;;  %v1191_v1 = vsel %vm1163_vm10, %v1158_v25, %v911_v10 }
 0x15e   : > { %v942_v12 = vpop.permute.xlu0 %941  ;;  %v944_v7 = vpop.permute.xlu1 %943 }
 0x15f   : > { %v1222_v46 = vsel %vm1196_vm11, %v1189_v35, %v942_v12  ;;  %v1224_v24 = vsel %vm1196_vm11, %v1191_v1, %v944_v7 }
 0x162   : > { %v975_v15 = vpop.permute.xlu0 %974  ;;  %v977_v17 = vpop.permute.xlu1 %976 }
 0x163   : > { %v1255_v23 = vsel %vm1229_vm12, %v1222_v46, %v975_v15  ;;  %v1257_v42 = vsel %vm1229_vm12, %v1224_v24, %v977_v17 }
 0x166   : > { %v1008_v18 = vpop.permute.xlu0 %1007  ;;  %v1010_v62 = vpop.permute.xlu1 %1009 }
 0x167   : > { %v1288_v60 = vsel %vm1262_vm13, %v1255_v23, %v1008_v18  ;;  %v1290_v57 = vsel %vm1262_vm13, %v1257_v42, %v1010_v62 }
 0x16a   : > { %v1041_v26 = vpop.permute.xlu0 %1040  ;;  %v784_v13 = vpop.permute.xlu1 %783 }
 0x16b   : > { %v1321_v29 = vsel %vm1295_vm14, %v1288_v60, %v1041_v26  ;;  %v1093_v14 = vsel %vm1048_vm7, %v2922_v20, %v784_v13 }
 0x16c   : > { %2307 = vmatprep.mubr.msk.bf16.mxu1 %vm1364_vm15, %v1321_v29 }
 0x16e   : > { %v1043_v31 = vpop.permute.xlu0 %1042  ;;  %v786_v6 = vpop.permute.xlu1 %785 }
 0x16f   : > { %v1323_v32 = vsel %vm1295_vm14, %v1290_v57, %v1043_v31  ;;  %v1096_v39 = vsel %vm1048_vm7, %v2962_v63, %v786_v6 }
 0x170   : > { %2308 = vmatmul.mubr.msk.bf16.gmra.mrb[8].mxu1 %vm1364_vm15, %v1323_v32 }
 0x172   : > { %v832_v9 = vpop.permute.xlu0 %831  ;;  %v834_v30 = vpop.permute.xlu1 %833 }
 0x173   : > { %v1127_v47 = vsel %vm1097_vm8, %v1093_v14, %v832_v9  ;;  %v1129_v48 = vsel %vm1097_vm8, %v1096_v39, %v834_v30 }
 0x176   : > { %v880_v27 = vpop.permute.xlu0 %879  ;;  %v882_v34 = vpop.permute.xlu1 %881 }
 0x177   : > { %v1160_v51 = vsel %vm1130_vm9, %v1127_v47, %v880_v27  ;;  %v1162_v20 = vsel %vm1130_vm9, %v1129_v48, %v882_v34 }
 0x17a   : > { %v913_v37 = vpop.permute.xlu0 %912  ;;  %v915_v28 = vpop.permute.xlu1 %914 }
 0x17b   : > { %v1193_v53 = vsel %vm1163_vm10, %v1160_v51, %v913_v37  ;;  %v1195_v40 = vsel %vm1163_vm10, %v1162_v20, %v915_v28 }
 0x17e   : > { %v946_v56 = vpop.permute.xlu0 %945  ;;  %v948_v36 = vpop.permute.xlu1 %947 }
 0x17f   : > { %v1226_v21 = vsel %vm1196_vm11, %v1193_v53, %v946_v56  ;;  %v1228_v61 = vsel %vm1196_vm11, %v1195_v40, %v948_v36 }
 0x182   : > { %v979_v38 = vpop.permute.xlu0 %978  ;;  %v981_v5 = vpop.permute.xlu1 %980 }
 0x183   : > { %v1259_v59 = vsel %vm1229_vm12, %v1226_v21, %v979_v38  ;;  %v1261_v0 = vsel %vm1229_vm12, %v1228_v61, %v981_v5 }
 0x184   : > { %v3096_v41 = vpop.f32.mrb[0].mxu0 }
 0x185   : > { %v2133_v22 = vpack.c.bf16 %v3096_v41, %v3096_v41  ;;  %v3102_v49 = vpop.f32.mrb[1].mxu0  ;;  %v1726_v3 = vsel %vm1048_vm7, %v3096_v41, 0.0 }
 0x186   : > { %v2131_v63 = vpack.c.bf16 %v3102_v49, %v3102_v49  ;;  %v3108_v52 = vpop.f32.mrb[2].mxu0  ;;  %v1012_v44 = vpop.permute.xlu0 %1011  ;;  %v1723_v54 = vsel %vm1048_vm7, %v3102_v49, 0.0 }
 0x187   : > { %1693 = vst.msk [vmem:[%s3090_s30 + $0x8] sm:$0xf] %vm1690_vm0, %v2133_v22  ;;  %v2134_v33 = vpack.c.bf16 %v3108_v52, %v3108_v52  ;;  %v1014_v50 = vpop.permute.xlu1 %1013  ;;  %v3116_v45 = vpop.f32.mrb[3].mxu0  ;;  %v1292_v4 = vsel %vm1262_vm13, %v1259_v59, %v1012_v44  ;;  %v1728_v8 = vsel %vm1048_vm7, %v3108_v52, 0.0 }
 0x188   : > { %1691 = vst.msk [vmem:[%s3090_s30] sm:$0xf] %vm1690_vm0, %v2131_v63  ;;  %v2132_v55 = vpack.c.bf16 %v3116_v45, %v3116_v45  ;;  %v1724_v11 = vsel %vm1048_vm7, %v3116_v45, 0.0  ;;  %v1294_v12 = vsel %vm1262_vm13, %v1261_v0, %v1014_v50 }
 0x189   : > { %1694 = vst.msk [vmem:[%s3090_s30 + $0xc] sm:$0xf] %vm1690_vm0, %v2134_v33  ;;  %v1725_v2 = vadd.f32 %v1724_v11, %v1723_v54 }
 0x18a   : > { %1692 = vst.msk [vmem:[%s3090_s30 + $0x4] sm:$0xf] %vm1690_vm0, %v2132_v55  ;;  %v1045_v10 = vpop.permute.xlu0 %1044 }
 0x18b   : > { %v1727_v7 = vadd.f32 %v1726_v3, %v1725_v2  ;;  %v1325_v15 = vsel %vm1295_vm14, %v1292_v4, %v1045_v10  ;;  %v1047_v17 = vpop.permute.xlu1 %1046 }
 0x18c   : > { %v1327_v58 = vsel %vm1295_vm14, %v1294_v12, %v1047_v17  ;;  %2311 = vmatprep.mubr.msk.bf16.mxu1 %vm1364_vm15, %v1325_v15 }
 0x18d   : > { %2312 = vmatmul.mubr.msk.bf16.gmra.mrb[12].mxu1 %vm1364_vm15, %v1327_v58  ;;  %v1729_v16 = vadd.f32 %v1728_v8, %v1727_v7 }
 0x1a4   : > { %v3144_v18 = vpop.f32.mrb[4].mxu0 }
 0x1a5   : > { %v2137_v62 = vpack.c.bf16 %v3144_v18, %v3144_v18  ;;  %v3148_v35 = vpop.f32.mrb[5].mxu0  ;;  %v1734_v29 = vsel %vm1048_vm7, %v3144_v18, 0.0 }
 0x1a6   : > { %v2135_v43 = vpack.c.bf16 %v3148_v35, %v3148_v35  ;;  %v1730_v46 = vsel %vm1048_vm7, %v3148_v35, 0.0  ;;  %v3154_v19 = vpop.f32.mrb[6].mxu0 }
 0x1a7   : > { %1697 = vst.msk [vmem:[%s3090_s30 + $0x18] sm:$0xf] %vm1690_vm0, %v2137_v62  ;;  %v1731_v23 = vadd.f32 %v1730_v46, %v1729_v16  ;;  %v2138_v25 = vpack.c.bf16 %v3154_v19, %v3154_v19  ;;  %v3160_v60 = vpop.f32.mrb[7].mxu0  ;;  %v1736_v42 = vsel %vm1048_vm7, %v3154_v19, 0.0 }
 0x1a8   : > { %1695 = vst.msk [vmem:[%s3090_s30 + $0x10] sm:$0xf] %vm1690_vm0, %v2135_v43  ;;  %v2136_v26 = vpack.c.bf16 %v3160_v60, %v3160_v60  ;;  %v1732_v13 = vsel %vm1048_vm7, %v3160_v60, 0.0 }
 0x1a9   : > { %1698 = vst.msk [vmem:[%s3090_s30 + $0x1c] sm:$0xf] %vm1690_vm0, %v2138_v25  ;;  %v1733_v1 = vadd.f32 %v1732_v13, %v1731_v23 }
 0x1aa   : > { %1696 = vst.msk [vmem:[%s3090_s30 + $0x14] sm:$0xf] %vm1690_vm0, %v2136_v26 }
 0x1ab   : > { %v1735_v24 = vadd.f32 %v1734_v29, %v1733_v1 }
 0x1ad   : > { %v1737_v57 = vadd.f32 %v1736_v42, %v1735_v24 }
 0x1c4   : > { %v3176_v31 = vpop.f32.mrb[8].mxu0 }
 0x1c5   : > { %v2141_v6 = vpack.c.bf16 %v3176_v31, %v3176_v31  ;;  %v3180_v32 = vpop.f32.mrb[9].mxu0  ;;  %v1742_v5 = vsel %vm1048_vm7, %v3176_v31, 0.0 }
 0x1c6   : > { %v2139_v9 = vpack.c.bf16 %v3180_v32, %v3180_v32  ;;  %v1738_v30 = vsel %vm1048_vm7, %v3180_v32, 0.0  ;;  %v3186_v27 = vpop.f32.mrb[10].mxu0 }
 0x1c7   : > { %1701 = vst.msk [vmem:[%s3090_s30 + $0x28] sm:$0xf] %vm1690_vm0, %v2141_v6  ;;  %v1739_v34 = vadd.f32 %v1738_v30, %v1737_v57  ;;  %v2142_v37 = vpack.c.bf16 %v3186_v27, %v3186_v27  ;;  %v3192_v28 = vpop.f32.mrb[11].mxu0  ;;  %v1744_v39 = vsel %vm1048_vm7, %v3186_v27, 0.0 }
 0x1c8   : > { %1699 = vst.msk [vmem:[%s3090_s30 + $0x20] sm:$0xf] %vm1690_vm0, %v2139_v9  ;;  %v2140_v56 = vpack.c.bf16 %v3192_v28, %v3192_v28  ;;  %v1740_v36 = vsel %vm1048_vm7, %v3192_v28, 0.0 }
 0x1c9   : > { %1702 = vst.msk [vmem:[%s3090_s30 + $0x2c] sm:$0xf] %vm1690_vm0, %v2142_v37  ;;  %v1741_v38 = vadd.f32 %v1740_v36, %v1739_v34 }
 0x1ca   : > { %1700 = vst.msk [vmem:[%s3090_s30 + $0x24] sm:$0xf] %vm1690_vm0, %v2140_v56 }
 0x1cb   : > { %v1743_v14 = vadd.f32 %v1742_v5, %v1741_v38 }
 0x1cd   : > { %v1745_v47 = vadd.f32 %v1744_v39, %v1743_v14 }
 0x1e4   : > { %v3208_v48 = vpop.f32.mrb[12].mxu0 }
 0x1e5   : > { %v2145_v22 = vpack.c.bf16 %v3208_v48, %v3208_v48  ;;  %v3212_v51 = vpop.f32.mrb[13].mxu0  ;;  %v1750_v55 = vsel %vm1048_vm7, %v3208_v48, 0.0 }
 0x1e6   : > { %v2143_v20 = vpack.c.bf16 %v3212_v51, %v3212_v51  ;;  %v1746_v63 = vsel %vm1048_vm7, %v3212_v51, 0.0  ;;  %v3218_v44 = vpop.f32.mrb[14].mxu0 }
 0x1e7   : > { %1705 = vst.msk [vmem:[%s3090_s30 + $0x38] sm:$0xf] %vm1690_vm0, %v2145_v22  ;;  %v1747_v53 = vadd.f32 %v1746_v63, %v1745_v47  ;;  %v2146_v40 = vpack.c.bf16 %v3218_v44, %v3218_v44  ;;  %v3224_v33 = vpop.f32.mrb[15].mxu0  ;;  %v1752_v61 = vsel %vm1048_vm7, %v3218_v44, 0.0 }
 0x1e8   : > { %1703 = vst.msk [vmem:[%s3090_s30 + $0x30] sm:$0xf] %vm1690_vm0, %v2143_v20  ;;  %v2144_v50 = vpack.c.bf16 %v3224_v33, %v3224_v33  ;;  %v1748_v21 = vsel %vm1048_vm7, %v3224_v33, 0.0 }
 0x1e9   : > { %1706 = vst.msk [vmem:[%s3090_s30 + $0x3c] sm:$0xf] %vm1690_vm0, %v2146_v40  ;;  %v1749_v54 = vadd.f32 %v1748_v21, %v1747_v53 }
 0x1ea   : > { %1704 = vst.msk [vmem:[%s3090_s30 + $0x34] sm:$0xf] %vm1690_vm0, %v2144_v50 }
 0x1eb   : > { %v1751_v11 = vadd.f32 %v1750_v55, %v1749_v54 }
 0x1ed   : > { %v1753_v59 = vadd.f32 %v1752_v61, %v1751_v11 }
 0x203   : > { %v3240_v2 = vpop.f32.mrb[0].mxu1 }
 0x204   : > { %v2149_v0 = vpack.c.bf16 %v3240_v2, %v3240_v2  ;;  %v3244_v3 = vpop.f32.mrb[1].mxu1  ;;  %v1758_v62 = vsel %vm1048_vm7, %v3240_v2, 0.0 }
 0x205   : > { %v2147_v4 = vpack.c.bf16 %v3244_v3, %v3244_v3  ;;  %v1754_v10 = vsel %vm1048_vm7, %v3244_v3, 0.0  ;;  %v3250_v12 = vpop.f32.mrb[2].mxu1 }
 0x206   : > { %1709 = vst.msk [vmem:[%s3090_s30 + $0x48] sm:$0xf] %vm1690_vm0, %v2149_v0  ;;  %v1755_v7 = vadd.f32 %v1754_v10, %v1753_v59  ;;  %v2150_v15 = vpack.c.bf16 %v3250_v12, %v3250_v12  ;;  %v3256_v17 = vpop.f32.mrb[3].mxu1  ;;  %v1760_v46 = vsel %vm1048_vm7, %v3250_v12, 0.0 }
 0x207   : > { %1707 = vst.msk [vmem:[%s3090_s30 + $0x40] sm:$0xf] %vm1690_vm0, %v2147_v4  ;;  %v2148_v8 = vpack.c.bf16 %v3256_v17, %v3256_v17  ;;  %v1756_v58 = vsel %vm1048_vm7, %v3256_v17, 0.0 }
 0x208   : > { %1710 = vst.msk [vmem:[%s3090_s30 + $0x4c] sm:$0xf] %vm1690_vm0, %v2150_v15  ;;  %v1757_v16 = vadd.f32 %v1756_v58, %v1755_v7 }
 0x209   : > { %1708 = vst.msk [vmem:[%s3090_s30 + $0x44] sm:$0xf] %vm1690_vm0, %v2148_v8 }
 0x20a   : > { %v1759_v43 = vadd.f32 %v1758_v62, %v1757_v16 }
 0x20c   : > { %v1761_v23 = vadd.f32 %v1760_v46, %v1759_v43 }
 0x223   : > { %v3272_v25 = vpop.f32.mrb[4].mxu1 }
 0x224   : > { %v2153_v26 = vpack.c.bf16 %v3272_v25, %v3272_v25  ;;  %v3276_v13 = vpop.f32.mrb[5].mxu1  ;;  %v1766_v37 = vsel %vm1048_vm7, %v3272_v25, 0.0 }
 0x225   : > { %v2151_v1 = vpack.c.bf16 %v3276_v13, %v3276_v13  ;;  %v1762_v29 = vsel %vm1048_vm7, %v3276_v13, 0.0  ;;  %v3282_v24 = vpop.f32.mrb[6].mxu1 }
 0x226   : > { %1713 = vst.msk [vmem:[%s3090_s30 + $0x58] sm:$0xf] %vm1690_vm0, %v2153_v26  ;;  %v1763_v42 = vadd.f32 %v1762_v29, %v1761_v23  ;;  %v2154_v57 = vpack.c.bf16 %v3282_v24, %v3282_v24  ;;  %v3288_v6 = vpop.f32.mrb[7].mxu1  ;;  %v1768_v36 = vsel %vm1048_vm7, %v3282_v24, 0.0 }
 0x227   : > { %1711 = vst.msk [vmem:[%s3090_s30 + $0x50] sm:$0xf] %vm1690_vm0, %v2151_v1  ;;  %v2152_v9 = vpack.c.bf16 %v3288_v6, %v3288_v6  ;;  %v1764_v30 = vsel %vm1048_vm7, %v3288_v6, 0.0 }
 0x228   : > { %1714 = vst.msk [vmem:[%s3090_s30 + $0x5c] sm:$0xf] %vm1690_vm0, %v2154_v57  ;;  %v1765_v34 = vadd.f32 %v1764_v30, %v1763_v42 }
 0x229   : > { %1712 = vst.msk [vmem:[%s3090_s30 + $0x54] sm:$0xf] %vm1690_vm0, %v2152_v9 }
 0x22a   : > { %v1767_v56 = vadd.f32 %v1766_v37, %v1765_v34 }
 0x22c   : > { %v1769_v38 = vadd.f32 %v1768_v36, %v1767_v56 }
 0x243   : > { %v3304_v5 = vpop.f32.mrb[8].mxu1 }
 0x244   : > { %v2157_v14 = vpack.c.bf16 %v3304_v5, %v3304_v5  ;;  %v3308_v39 = vpop.f32.mrb[9].mxu1  ;;  %v1774_v55 = vsel %vm1048_vm7, %v3304_v5, 0.0 }
 0x245   : > { %v2155_v47 = vpack.c.bf16 %v3308_v39, %v3308_v39  ;;  %v1770_v22 = vsel %vm1048_vm7, %v3308_v39, 0.0  ;;  %v3314_v20 = vpop.f32.mrb[10].mxu1 }
 0x246   : > { %1717 = vst.msk [vmem:[%s3090_s30 + $0x68] sm:$0xf] %vm1690_vm0, %v2157_v14  ;;  %v1771_v63 = vadd.f32 %v1770_v22, %v1769_v38  ;;  %v2158_v53 = vpack.c.bf16 %v3314_v20, %v3314_v20  ;;  %v3320_v40 = vpop.f32.mrb[11].mxu1  ;;  %v1776_v61 = vsel %vm1048_vm7, %v3314_v20, 0.0 }
 0x247   : > { %1715 = vst.msk [vmem:[%s3090_s30 + $0x60] sm:$0xf] %vm1690_vm0, %v2155_v47  ;;  %v2156_v50 = vpack.c.bf16 %v3320_v40, %v3320_v40  ;;  %v1772_v21 = vsel %vm1048_vm7, %v3320_v40, 0.0 }
 0x248   : > { %1718 = vst.msk [vmem:[%s3090_s30 + $0x6c] sm:$0xf] %vm1690_vm0, %v2158_v53  ;;  %v1773_v54 = vadd.f32 %v1772_v21, %v1771_v63 }
 0x249   : > { %1716 = vst.msk [vmem:[%s3090_s30 + $0x64] sm:$0xf] %vm1690_vm0, %v2156_v50 }
 0x24a   : > { %v1775_v11 = vadd.f32 %v1774_v55, %v1773_v54 }
 0x24c   : > { %v1777_v59 = vadd.f32 %v1776_v61, %v1775_v11 }
 0x260   : > { %v3336_v0 = vpop.f32.mrb[12].mxu1 }
 0x261   : > { %v2161_v4 = vpack.c.bf16 %v3336_v0, %v3336_v0  ;;  %v3340_v10 = vpop.f32.mrb[13].mxu1  ;;  %v1782_v26 = vsel %vm1048_vm7, %v3336_v0, 0.0 }
 0x262   : > { %v2159_v7 = vpack.c.bf16 %v3340_v10, %v3340_v10  ;;  %v1778_v15 = vsel %vm1048_vm7, %v3340_v10, 0.0  ;;  %v3346_v8 = vpop.f32.mrb[14].mxu1 }
 0x263   : > { %1721 = vst.msk [vmem:[%s3090_s30 + $0x78] sm:$0xf] %vm1690_vm0, %v2161_v4  ;;  %v1779_v58 = vadd.f32 %v1778_v15, %v1777_v59  ;;  %v2162_v16 = vpack.c.bf16 %v3346_v8, %v3346_v8  ;;  %v3352_v62 = vpop.f32.mrb[15].mxu1  ;;  %v1784_v29 = vsel %vm1048_vm7, %v3346_v8, 0.0 }
 0x264   : > { %1719 = vst.msk [vmem:[%s3090_s30 + $0x70] sm:$0xf] %vm1690_vm0, %v2159_v7  ;;  %v2160_v43 = vpack.c.bf16 %v3352_v62, %v3352_v62  ;;  %v1780_v46 = vsel %vm1048_vm7, %v3352_v62, 0.0 }
 0x265   : > { %1722 = vst.msk [vmem:[%s3090_s30 + $0x7c] sm:$0xf] %vm1690_vm0, %v2162_v16  ;;  %v1781_v23 = vadd.f32 %v1780_v46, %v1779_v58 }
 0x266   : > { %1720 = vst.msk [vmem:[%s3090_s30 + $0x74] sm:$0xf] %vm1690_vm0, %v2160_v43 }
 0x267   : > { %v1783_v1 = vadd.f32 %v1782_v26, %v1781_v23 }
 0x269   : > { %v1785_v42 = vadd.f32 %v1784_v29, %v1783_v1 }
 0x26b   : > { %v1786_v57 = vrot.slane %v1785_v42, 4 }
 0x26d   : > { %v1787_v9 = vadd.f32 %v1786_v57, %v1785_v42 }
 0x26f   : > { %v1788_v30 = vrot.slane %v1787_v9, 2 }
 0x271   : > { %v1789_v34 = vadd.f32 %v1788_v30, %v1787_v9 }
 0x273   : > { %v1790_v37 = vrot.slane %v1789_v34, 1 }
 0x275   : > { %v3368_v56 = vadd.f32 %v1790_v37, %v1789_v34 }
 0x277   : > { %v3371_v36 = vmul.f32 0.00390625, %v3368_v56 }
 0x279   : > { %v1793_v38 = vsub.f32 %v3102_v49, %v3371_v36  ;;  %v1794_v14 = vsub.f32 %v3116_v45, %v3371_v36  ;;  %v1795_v47 = vsub.f32 %v3096_v41, %v3371_v36  ;;  %v1796_v22 = vsub.f32 %v3108_v52, %v3371_v36 }
 0x27a   : > { %v1797_v50 = vsub.f32 %v3148_v35, %v3371_v36  ;;  %v1798_v54 = vsub.f32 %v3160_v60, %v3371_v36  ;;  %v1799_v41 = vsub.f32 %v3144_v18, %v3371_v36  ;;  %v1800_v35 = vsub.f32 %v3154_v19, %v3371_v36 }
 0x27b   : > { %v1825_v63 = vmul.f32 %v1793_v38, %v1793_v38  ;;  %v1826_v53 = vmul.f32 %v1794_v14, %v1794_v14  ;;  %v1827_v21 = vmul.f32 %v1795_v47, %v1795_v47  ;;  %v1828_v55 = vmul.f32 %v1796_v22, %v1796_v22 }
 0x27c   : > { %v1829_v61 = vmul.f32 %v1797_v50, %v1797_v50  ;;  %v1830_v4 = vmul.f32 %v1798_v54, %v1798_v54  ;;  %v1801_v15 = vsub.f32 %v3180_v32, %v3371_v36  ;;  %v1831_v58 = vmul.f32 %v1799_v41, %v1799_v41 }
 0x27d   : > { %v1857_v49 = vsel %vm1048_vm7, %v1825_v63, 0.0  ;;  %v1858_v45 = vsel %vm1048_vm7, %v1826_v53, 0.0  ;;  %v1860_v52 = vsel %vm1048_vm7, %v1827_v21, 0.0  ;;  %v1862_v7 = vsel %vm1048_vm7, %v1828_v55, 0.0 }
 0x27e   : > { %v1859_v11 = vadd.f32 %v1858_v45, %v1857_v49  ;;  %v1864_v16 = vsel %vm1048_vm7, %v1829_v61, 0.0  ;;  %v1802_v18 = vsub.f32 %v3192_v28, %v3371_v36  ;;  %v1832_v46 = vmul.f32 %v1800_v35, %v1800_v35 }
 0x27f   : > { %v1866_v23 = vsel %vm1048_vm7, %v1830_v4, 0.0  ;;  %v1803_v19 = vsub.f32 %v3176_v31, %v3371_v36  ;;  %v1833_v1 = vmul.f32 %v1801_v15, %v1801_v15  ;;  %v1868_v29 = vsel %vm1048_vm7, %v1831_v58, 0.0 }
 0x280   : > { %v1861_v59 = vadd.f32 %v1860_v52, %v1859_v11  ;;  %v1804_v32 = vsub.f32 %v3186_v27, %v3371_v36  ;;  %v1834_v57 = vmul.f32 %v1802_v18, %v1802_v18  ;;  %v1870_v9 = vsel %vm1048_vm7, %v1832_v46, 0.0 }
 0x281   : > { %v1805_v28 = vsub.f32 %v3212_v51, %v3371_v36  ;;  %v1835_v34 = vmul.f32 %v1803_v19, %v1803_v19  ;;  %v1872_v37 = vsel %vm1048_vm7, %v1833_v1, 0.0  ;;  %v1806_v31 = vsub.f32 %v3224_v33, %v3371_v36 }
 0x282   : > { %v1863_v60 = vadd.f32 %v1862_v7, %v1861_v59  ;;  %v1836_v14 = vmul.f32 %v1804_v32, %v1804_v32  ;;  %v1874_v47 = vsel %vm1048_vm7, %v1834_v57, 0.0  ;;  %v1807_v27 = vsub.f32 %v3208_v48, %v3371_v36 }
 0x283   : > { %v1837_v63 = vmul.f32 %v1805_v28, %v1805_v28  ;;  %v1876_v53 = vsel %vm1048_vm7, %v1835_v34, 0.0  ;;  %v1808_v51 = vsub.f32 %v3218_v44, %v3371_v36  ;;  %v1838_v21 = vmul.f32 %v1806_v31, %v1806_v31 }
 0x284   : > { %v1865_v43 = vadd.f32 %v1864_v16, %v1863_v60  ;;  %v1878_v54 = vsel %vm1048_vm7, %v1836_v14, 0.0  ;;  %v1809_v33 = vsub.f32 %v3244_v3, %v3371_v36  ;;  %v1839_v49 = vmul.f32 %v1807_v27, %v1807_v27 }
 0x285   : > { %v1880_v45 = vsel %vm1048_vm7, %v1837_v63, 0.0  ;;  %v1810_v48 = vsub.f32 %v3256_v17, %v3371_v36  ;;  %v1840_v41 = vmul.f32 %v1808_v51, %v1808_v51  ;;  %v1882_v61 = vsel %vm1048_vm7, %v1838_v21, 0.0 }
 0x286   : > { %v1867_v26 = vadd.f32 %v1866_v23, %v1865_v43  ;;  %v1811_v44 = vsub.f32 %v3240_v2, %v3371_v36  ;;  %v1841_v59 = vmul.f32 %v1809_v33, %v1809_v33  ;;  %v1884_v35 = vsel %vm1048_vm7, %v1839_v49, 0.0 }
 0x287   : > { %v1812_v3 = vsub.f32 %v3250_v12, %v3371_v36  ;;  %v1842_v7 = vmul.f32 %v1810_v48, %v1810_v48  ;;  %v1886_v60 = vsel %vm1048_vm7, %v1840_v41, 0.0  ;;  %v1813_v17 = vsub.f32 %v3276_v13, %v3371_v36 }
 0x288   : > { %v1869_v42 = vadd.f32 %v1868_v29, %v1867_v26  ;;  %v1843_v58 = vmul.f32 %v1811_v44, %v1811_v44  ;;  %v1888_v16 = vsel %vm1048_vm7, %v1841_v59, 0.0  ;;  %v1814_v2 = vsub.f32 %v3288_v6, %v3371_v36 }
 0x289   : > { %v1844_v18 = vmul.f32 %v1812_v3, %v1812_v3  ;;  %v1890_v46 = vsel %vm1048_vm7, %v1842_v7, 0.0  ;;  %v1815_v12 = vsub.f32 %v3272_v25, %v3371_v36  ;;  %v1845_v26 = vmul.f32 %v1813_v17, %v1813_v17 }
 0x28a   : > { %v1871_v30 = vadd.f32 %v1870_v9, %v1869_v42  ;;  %v1892_v19 = vsel %vm1048_vm7, %v1843_v58, 0.0  ;;  %v1816_v13 = vsub.f32 %v3282_v24, %v3371_v36  ;;  %v1846_v29 = vmul.f32 %v1814_v2, %v1814_v2 }
 0x28b   : > { %v1894_v42 = vsel %vm1048_vm7, %v1844_v18, 0.0  ;;  %v1817_v6 = vsub.f32 %v3308_v39, %v3371_v36  ;;  %v1847_v57 = vmul.f32 %v1815_v12, %v1815_v12  ;;  %v1896_v9 = vsel %vm1048_vm7, %v1845_v26, 0.0 }
 0x28c   : > { %v1873_v38 = vadd.f32 %v1872_v37, %v1871_v30  ;;  %v1818_v25 = vsub.f32 %v3320_v40, %v3371_v36  ;;  %v1848_v28 = vmul.f32 %v1816_v13, %v1816_v13  ;;  %v1898_v34 = vsel %vm1048_vm7, %v1846_v29, 0.0 }
 0x28d   : > { %v1819_v24 = vsub.f32 %v3304_v5, %v3371_v36  ;;  %v1900_v31 = vsel %vm1048_vm7, %v1847_v57, 0.0  ;;  %v1820_v39 = vsub.f32 %v3314_v20, %v3371_v36  ;;  %v1821_v40 = vsub.f32 %v3340_v10, %v3371_v36 }
 0x28e   : > { %v1875_v22 = vadd.f32 %v1874_v47, %v1873_v38  ;;  %v1849_v38 = vmul.f32 %v1817_v6, %v1817_v6  ;;  %v1850_v47 = vmul.f32 %v1818_v25, %v1818_v25  ;;  %v1822_v5 = vsub.f32 %v3352_v62, %v3371_v36 }
 0x28f   : > { %v1851_v63 = vmul.f32 %v1819_v24, %v1819_v24  ;;  %v1852_v51 = vmul.f32 %v1820_v39, %v1820_v39  ;;  %v1823_v20 = vsub.f32 %v3336_v0, %v3371_v36  ;;  %v1824_v10 = vsub.f32 %v3346_v8, %v3371_v36 }
 0x290   : > { %v1877_v50 = vadd.f32 %v1876_v53, %v1875_v22  ;;  %v1902_v22 = vsel %vm1048_vm7, %v1848_v28, 0.0  ;;  %v1904_v53 = vsel %vm1048_vm7, %v1849_v38, 0.0  ;;  %v1906_v21 = vsel %vm1048_vm7, %v1850_v47, 0.0 }
 0x291   : > { %v1908_v33 = vsel %vm1048_vm7, %v1851_v63, 0.0  ;;  %v1855_v62 = vmul.f32 %v1823_v20, %v1823_v20 }
 0x292   : > { %v1879_v55 = vadd.f32 %v1878_v54, %v1877_v50 }
 0x293   : > { %v1916_v59 = vsel %vm1048_vm7, %v1855_v62, 0.0 }
 0x294   : > { %v1881_v11 = vadd.f32 %v1880_v45, %v1879_v55  ;;  %v1853_v55 = vmul.f32 %v1821_v40, %v1821_v40  ;;  %v1854_v45 = vmul.f32 %v1822_v5, %v1822_v5 }
 0x296   : > { %v1883_v52 = vadd.f32 %v1882_v61, %v1881_v11  ;;  %v1910_v11 = vsel %vm1048_vm7, %v1852_v51, 0.0  ;;  %v1912_v41 = vsel %vm1048_vm7, %v1853_v55, 0.0  ;;  %v1914_v44 = vsel %vm1048_vm7, %v1854_v45, 0.0 }
 0x298   : > { %v1885_v4 = vadd.f32 %v1884_v35, %v1883_v52  ;;  %v1856_v52 = vmul.f32 %v1824_v10, %v1824_v10 }
 0x29a   : > { %v1887_v15 = vadd.f32 %v1886_v60, %v1885_v4  ;;  %v1918_v4 = vsel %vm1048_vm7, %v1856_v52, 0.0 }
 0x29c   : > { %v1889_v43 = vadd.f32 %v1888_v16, %v1887_v15 }
 0x29e   : > { %v1891_v23 = vadd.f32 %v1890_v46, %v1889_v43 }
 0x2a0   : > { %v1893_v1 = vadd.f32 %v1892_v19, %v1891_v23 }
 0x2a2   : > { %v1895_v32 = vadd.f32 %v1894_v42, %v1893_v1 }
 0x2a4   : > { %v1897_v30 = vadd.f32 %v1896_v9, %v1895_v32 }
 0x2a6   : > { %v1899_v37 = vadd.f32 %v1898_v34, %v1897_v30 }
 0x2a8   : > { %v1901_v14 = vadd.f32 %v1900_v31, %v1899_v37 }
 0x2aa   : > { %v1903_v27 = vadd.f32 %v1902_v22, %v1901_v14 }
 0x2ac   : > { %v1905_v50 = vadd.f32 %v1904_v53, %v1903_v27 }
 0x2ae   : > { %v1907_v54 = vadd.f32 %v1906_v21, %v1905_v50 }
 0x2b0   : > { %v1909_v49 = vadd.f32 %v1908_v33, %v1907_v54 }
 0x2b2   : > { %v1911_v48 = vadd.f32 %v1910_v11, %v1909_v49 }
 0x2b4   : > { %v1913_v61 = vadd.f32 %v1912_v41, %v1911_v48 }
 0x2b6   : > { %v1915_v0 = vadd.f32 %v1914_v44, %v1913_v61 }
 0x2b8   : > { %v1917_v35 = vadd.f32 %v1916_v59, %v1915_v0 }
 0x2ba   : > { %v1919_v3 = vadd.f32 %v1918_v4, %v1917_v35 }
 0x2bc   : > { %v1920_v8 = vrot.slane %v1919_v3, 4 }
 0x2be   : > { %v1921_v36 = vadd.f32 %v1920_v8, %v1919_v3 }
 0x2c0   : > { %v1922_v7 = vrot.slane %v1921_v36, 2 }
 0x2c2   : > { %v1923_v60 = vadd.f32 %v1922_v7, %v1921_v36 }
 0x2c4   : > { %v1924_v15 = vrot.slane %v1923_v60, 1 }
 0x2c6   : > { %v1925_v17 = vadd.f32 %v1924_v15, %v1923_v60 }
 0x2c8   : > { %v1927_v58 = vsel %vm607_vm3, %v3368_v56, %v1925_v17 }
 0x2c9   : > { %v1929_v16 = vsel %vm1928_vm1, %v1927_v58, 0.0 }
 0x2ca   : > { %1930 = vst.msk [vmem:[%s237_s7] sm:$0xff] %vm1048_vm7, %v1929_v16 }
 0x2cb PF: > { %s15_s17 = sadd.s32 1, %s2388_s17   ;;  %s3494_s15 = smov %s2384_s16 }
 0x2cc   : > { %p12_p5 = scmp.ge.s32.totalorder %s15_s17, 4   ;;  %s3495_s16 = smov %s3497_s18 }
 0x2ce   :  { %14 = sbr.rel (!%p12_p5) target bundleno = 2 (0x2), region = 77 }

// kernel: conv_block.3
= control target key start
LH: loop header
LB: loop body
LE: loop exit
PB: predicated region body
PF: predicated region fallthrough
CT: control target
= control target key end

     0   :  { %s2437_s12 = smov 0   ;;  %s2439_s13 = smov 0   ;;  %s3437_s0 = inlined_call_operand.vmem [shape: bf16[2,16,16,4], index: 0, kind: input, shape index: {}]   ;;  %s3438_s1 = inlined_call_operand.vmem [shape: bf16[36,8], index: 1, kind: input, shape index: {}]   ;;  %s3439_s2 = inlined_call_operand.vmem [shape: bf16[2,16,16,8], index: 2, kind: output, shape index: {0}]   ;;  %s3440_s3 = inlined_call_operand.vmem [shape: f32[2,8,8], index: 3, kind: output, shape index: {1}]  }
   0x1   :  { %s2441_s14 = smov 0  }
   0x2 LB: > { %s26_s15 = sadd.s32 1, %s2403_s13  ;;  %p2080_p0 = scmp.ge.s32.totalorder %s2407_s14, 1  ;;  %s2407_s14 = sphi %s2441_s14, %s14_s14   ;;  %s2403_s13 = sphi %s2439_s13, %s3446_s13   ;;  %s2399_s12 = sphi %s2437_s12, %s3445_s12  }
   0x3   : > { %p28_p1 = scmp.ge.s32.totalorder %s26_s15, 2  ;;  %p156_p2 = scmp.lt.s32.totalorder %s2407_s14, 3 }
   0x5   : > { %s3448_s15 = smov (%p28_p1, %s26_s15), 0  ;;  %p157_p3 = pnand %p2080_p0, %p156_p2 }
   0x6   : > { %p190_p4 = scmp.lt.s32.totalorder (!%p157_p3), %s2399_s12, 1  ;;  %vm715_vm0 = vcmask (!%p157_p3), 1047552   ;;  %vm716_vm1 = vsmask.f32 (!%p157_p3), 7424  ;;  %s2409_s20 = smov (!%p157_p3), 4   ;;  %vm552_vm2 = vcmask (!%p157_p3), 1040384  }
   0x7   : > { %160 = sbr.rel (%p157_p3) target bundleno = 709 (0x2c5), region = 28  ;;  %s2410_s21 = smov (!%p157_p3), 16   ;;  %vm553_vm3 = vsmask.f32 (!%p157_p3), 256  ;;  %vm2490_vm4 = vmand (!%p157_p3), %vm715_vm0, %vm716_vm1  ;;  %v2358_v38 = vld [vmem:[%s3438_s1] sm:$0xff] (!%p157_p3)   ;;  %v2361_v46 = vld [vmem:[%s3438_s1 + $0x8] sm:$0xff] (!%p157_p3)  }
   0x8   : > { %vm2505_vm5 = vmand (!%p157_p3), %vm552_vm2, %vm553_vm3  ;;  %s2411_s24 = smov (!%p157_p3), 8   ;;  %2250 = vmatprep.subr.bf16.mxu0 (!%p157_p3), %v2358_v38  ;;  %2288 = vmatprep.subr.bf16.mxu1 (!%p157_p3), %v2358_v38  ;;  %s2412_s27 = smov (!%p157_p3), 12   ;;  %vm1416_vm6 = vcmask (!%p157_p3), 1041408   ;;  %vm1083_vm7 = vcmask (!%p157_p3), 31744   ;;  %vm1132_vm8 = vcmask (!%p157_p3), 64512   ;;  %vm1165_vm9 = vcmask (!%p157_p3), 97280  }
   0x9   : > { %2251 = vmatpush3.bf16.msra.mxu0 (!%p157_p3), %v2358_v38  ;;  %2291 = vmatpush3.bf16.msra.mxu1 (!%p157_p3), %v2358_v38  ;;  %s2413_s28 = smov (!%p157_p3), 20   ;;  %s2414_s29 = smov (!%p157_p3), 24   ;;  %vm1198_vm10 = vcmask (!%p157_p3), 130048   ;;  %vm1231_vm11 = vcmask (!%p157_p3), 162816   ;;  %vm1264_vm12 = vcmask (!%p157_p3), 195584   ;;  %vm1297_vm13 = vcmask (!%p157_p3), 228352  }
   0xa   : > { %2252 = vmatprep.subr.bf16.mxu0 (!%p157_p3), %v2361_v46  ;;  %2289 = vmatprep.subr.bf16.mxu1 (!%p157_p3), %v2361_v46  ;;  %s2415_s30 = smov (!%p157_p3), 28   ;;  %s2416_s4 = smov (!%p157_p3), 32   ;;  %vm1330_vm14 = vcmask (!%p157_p3), 261120   ;;  %vm1383_vm15 = vcmask (!%p157_p3), 293888   ;;  %vm1709_vm0 = vcmask (!%p157_p3), 60416  }
   0xd   : > { %2253 = vmatpush3.bf16.msra.mxu0 (!%p157_p3), %v2361_v46  ;;  %2292 = vmatpush3.bf16.msra.mxu1 (!%p157_p3), %v2361_v46 }
   0xe   : > { %s3450_s12 = smov (!%p190_p4, %s2399_s12), 1 }
   0xf   : > { %s2197_s16 = sshll.u32 %s3450_s12, 7  ;;  %s2085_s10 = sshll.u32 %s3450_s12, 3 }
  0x10   : > { %s2463_s19 = scalar_lea.vmem %s3437_s0, %s2197_s16  ;;  %s3041_s9 = scalar_lea.vmem %s3439_s2, %s2197_s16 }
  0x11   : > { %v2466_v0 = vld [vmem:[%s2463_s19 + $0x8] sm:$0xf]  ;;  %v2087_v1 = vld [vmem:[%s2463_s19 + $0xc] sm:$0xf]  ;;  %v227_v6 = vld [vmem:[%s2463_s19] sm:$0xf]  ;;  %s210_s17 = scalar_lea.vmem %s3440_s3, %s2085_s10 }
  0x12   : > { %v229_v2 = vld [vmem:[%s2463_s19 + $0x8] sm:$0xf]  ;;  %v2471_v3 = vcombine.low %v2466_v0, %v2087_v1  ;;  %v2122_v4 = vcombine.low %v2087_v1, %v2087_v1  ;;  %v230_v5 = vld [vmem:[%s2463_s19 + $0xc] sm:$0xf]  ;;  %v228_v7 = vld [vmem:[%s2463_s19 + $0x4] sm:$0xf]  ;;  %v2091_v11 = vcombine.low %v227_v6, %v227_v6  ;;  %v2090_v57 = vcombine.low %v2466_v0, %v2466_v0 }
  0x13   : > { %v2476_v8 = vcombine.low %v229_v2, %v230_v5  ;;  %v2107_v9 = vcombine.low %v227_v6, %v228_v7  ;;  %v2123_v10 = vcombine.low %v228_v7, %v228_v7  ;;  %v2092_v20 = vcombine.low %v229_v2, %v229_v2  ;;  %v231_v21 = vld [vmem:[%s2463_s19 + $0x10] sm:$0xf]  ;;  %v232_v22 = vld [vmem:[%s2463_s19 + $0x14] sm:$0xf]  ;;  %v233_v62 = vld [vmem:[%s2463_s19 + $0x18] sm:$0xf] }
  0x14   : > { %v636_v12 = vshll.u32 %v2122_v4, 16  ;;  %792 = vrot.lane.b32.xlu0 %v2471_v3, %s2409_s20  ;;  %v428_v13 = vshll.u32 %v2471_v3, 16  ;;  %v425_v14 = vshrl.u32 %v2471_v3, 16  ;;  %v316_v25 = vshrl.u32 %v2091_v11, 16  ;;  %v234_v63 = vld [vmem:[%s2463_s19 + $0x1c] sm:$0xf] }
  0x15   : > { %922 = vrot.lane.b32.xlu1 %v2476_v8, %s2410_s21  ;;  %v432_v15 = vshrl.u32 %v2107_v9, 16  ;;  %v435_v16 = vshll.u32 %v2107_v9, 16  ;;  %v640_v17 = vshll.u32 %v2123_v10, 16  ;;  %v439_v27 = vshrl.u32 %v2476_v8, 16  ;;  %v238_v38 = vld [vmem:[%s2463_s19 + $0x2c] sm:$0xf] }
  0x16   : > { %v571_v18 = vrot.slane %v428_v13, 1  ;;  %v638_v19 = vrot.slane %v636_v12, 4  ;;  %v442_v30 = vshll.u32 %v2476_v8, 16  ;;  %v2124_v31 = vcombine.low %v230_v5, %v230_v5 }
  0x17   : > { %v573_v24 = vrot.slane %v435_v16, 1  ;;  %v434_v26 = vrot.slane %v432_v15, 7  ;;  %v642_v29 = vrot.slane %v640_v17, 4  ;;  %v441_v34 = vrot.slane %v439_v27, 7 }
  0x18   : > { %794 = vrot.lane.b32.xlu0 %v2107_v9, %s2409_s20  ;;  %v572_v28 = vor.u32 %v571_v18, %v425_v14  ;;  %v2499_v35 = vcombine.low %v231_v21, %v232_v22  ;;  %v319_v39 = vshrl.u32 %v2092_v20, 16  ;;  %v575_v40 = vrot.slane %v442_v30, 1 }
  0x19   : > { %v574_v32 = vor.u32 %v573_v24, %v432_v15  ;;  %v437_v33 = vor.u32 %v435_v16, %v434_v26  ;;  %v444_v42 = vor.u32 %v442_v30, %v441_v34  ;;  %v644_v43 = vshll.u32 %v2124_v31, 16 }
  0x1a   : > { %v718_v36 = vsel %vm2490_vm4, %v572_v28, %v638_v19  ;;  %v446_v44 = vshrl.u32 %v2499_v35, 16  ;;  %v576_v47 = vor.u32 %v575_v40, %v439_v27  ;;  %v2093_v48 = vcombine.low %v231_v21, %v231_v21 }
  0x1b   : > { %840 = vrot.lane.b32.xlu1 %v718_v36, %s2411_s24  ;;  %v719_v41 = vsel %vm2490_vm4, %v574_v32, %v642_v29  ;;  %v2519_v45 = vsel %vm2505_vm5, %v316_v25, %v437_v33  ;;  %v2529_v49 = vsel %vm2505_vm5, %v319_v39, %v444_v42  ;;  %v646_v50 = vrot.slane %v644_v43, 4  ;;  %v237_v36 = vld [vmem:[%s2463_s19 + $0x28] sm:$0xf] }
  0x1c   : > { %920 = vrot.lane.b32.xlu0 %v2107_v9, %s2410_s21  ;;  %v448_v51 = vrot.slane %v446_v44, 7  ;;  %v449_v52 = vshll.u32 %v2499_v35, 16  ;;  %v322_v54 = vshrl.u32 %v2093_v48, 16  ;;  %v2125_v56 = vcombine.low %v232_v22, %v232_v22  ;;  %v2362_v9 = vld [vmem:[%s3438_s1 + $0x10] ss:$0 sps:$4 sm:$0x33]  }
  0x1d   : > { %v720_v53 = vsel %vm2490_vm4, %v576_v47, %v646_v50  ;;  %v427_v58 = vrot.slane %v425_v14, 7  ;;  %v2550_v1 = vshrl.u32 %v2090_v57, 16  ;;  %v2560_v2 = vcombine.low %v233_v62, %v234_v63  ;;  %v236_v14 = vld [vmem:[%s2463_s19 + $0x24] sm:$0xf]  ;;  %2294 = vmatprep.subr.msk.bf16.mxu0 %vm1416_vm6, %v2362_v9  ;;  %2295 = vmatprep.subr.msk.bf16.mxu1 %vm1416_vm6, %v2362_v9  ;;  %v239_v48 = vld [vmem:[%s2463_s19 + $0x30] sm:$0xf] }
  0x1e   : > { %v451_v55 = vor.u32 %v449_v52, %v448_v51  ;;  %v577_v60 = vrot.slane %v449_v52, 1  ;;  %v648_v61 = vshll.u32 %v2125_v56, 16  ;;  %v2094_v10 = vcombine.low %v233_v62, %v233_v62  ;;  %v240_v50 = vld [vmem:[%s2463_s19 + $0x34] sm:$0xf] }
  0x1f   : > { %842 = vrot.lane.b32.xlu1 %v719_v41, %s2411_s24  ;;  %v2556_v0 = vor.u32 %v428_v13, %v427_v58  ;;  %v453_v3 = vshrl.u32 %v2560_v2, 16  ;;  %v456_v12 = vshll.u32 %v2560_v2, 16  ;;  %v235_v13 = vld [vmem:[%s2463_s19 + $0x20] sm:$0xf]  ;;  %v2126_v15 = vcombine.low %v234_v63, %v234_v63 }
  0x20   : > { %888 = vrot.lane.b32.xlu0 %v2519_v45, %s2412_s27  ;;  %v2546_v59 = vsel %vm2505_vm5, %v322_v54, %v451_v55  ;;  %v578_v4 = vor.u32 %v577_v60, %v446_v44  ;;  %v650_v5 = vrot.slane %v648_v61, 4  ;;  %v2111_v17 = vcombine.low %v235_v13, %v236_v14 }
  0x21   : > { %v555_v6 = vsel %vm2505_vm5, %v2550_v1, %v2556_v0  ;;  %v455_v11 = vrot.slane %v453_v3, 7  ;;  %v1418_v18 = vsel %vm1416_vm6, %v2362_v9, 0  ;;  %v579_v20 = vrot.slane %v456_v12, 1 }
  0x22   : > { %v721_v7 = vsel %vm2490_vm4, %v578_v4, %v650_v5  ;;  %2255 = vmatpush3.bf16.msra.mxu0 %v1418_v18  ;;  %2293 = vmatpush3.bf16.msra.mxu1 %v1418_v18  ;;  %v652_v21 = vshll.u32 %v2126_v15, 16  ;;  %v460_v22 = vshrl.u32 %v2111_v17, 16  ;;  %v2095_v24 = vcombine.low %v235_v13, %v235_v13  ;;  %v242_v13 = vld [vmem:[%s2463_s19 + $0x3c] sm:$0xf] }
  0x23   : > { %890 = vrot.lane.b32.xlu1 %v2529_v49, %s2412_s27  ;;  %v458_v16 = vor.u32 %v456_v12, %v455_v11  ;;  %v580_v25 = vor.u32 %v579_v20, %v453_v3  ;;  %v463_v28 = vshll.u32 %v2111_v17, 16  ;;  %v2127_v32 = vcombine.low %v236_v14, %v236_v14  ;;  %v241_v12 = vld [vmem:[%s2463_s19 + $0x38] sm:$0xf] }
  0x24   : > { %953 = vrot.lane.b32.xlu0 %v719_v41, %s2413_s28  ;;  %v654_v26 = vrot.slane %v652_v21, 4  ;;  %v462_v27 = vrot.slane %v460_v22, 7  ;;  %v328_v30 = vshrl.u32 %v2095_v24, 16  ;;  %v2112_v39 = vcombine.low %v237_v36, %v238_v38  ;;  %v244_v24 = vld [vmem:[%s2463_s19 + $0x44] sm:$0xf] }
  0x25   : > { %v581_v34 = vrot.slane %v463_v28, 1  ;;  %v2096_v44 = vcombine.low %v237_v36, %v237_v36  ;;  %v2113_v54 = vcombine.low %v239_v48, %v240_v50  ;;  %v2097_v60 = vcombine.low %v239_v48, %v239_v48 }
  0x26   : > { %v722_v29 = vsel %vm2490_vm4, %v580_v25, %v654_v26  ;;  %v465_v31 = vor.u32 %v463_v28, %v462_v27  ;;  %v467_v42 = vshrl.u32 %v2112_v39, 16  ;;  %v470_v47 = vshll.u32 %v2112_v39, 16 }
  0x27   : > { %955 = vrot.lane.b32.xlu1 %v720_v53, %s2413_s28  ;;  %v582_v40 = vor.u32 %v581_v34, %v460_v22  ;;  %v331_v51 = vshrl.u32 %v2096_v44, 16  ;;  %v474_v58 = vshrl.u32 %v2113_v54, 16  ;;  %v334_v5 = vshrl.u32 %v2097_v60, 16  ;;  %v243_v22 = vld [vmem:[%s2463_s19 + $0x40] sm:$0xf] }
  0x28   : > { %986 = vrot.lane.b32.xlu0 %v2529_v49, %s2414_s29  ;;  %v2608_v33 = vsel %vm2505_vm5, %v328_v30, %v465_v31  ;;  %v469_v46 = vrot.slane %v467_v42, 7  ;;  %v583_v56 = vrot.slane %v470_v47, 1  ;;  %v2114_v14 = vcombine.low %v241_v12, %v242_v13 }
  0x29   : > { %v476_v63 = vrot.slane %v474_v58, 7  ;;  %v2098_v18 = vcombine.low %v241_v12, %v241_v12  ;;  %v2130_v27 = vcombine.low %v242_v13, %v242_v13  ;;  %v2663_v28 = vcombine.low %v243_v22, %v244_v24 }
  0x2a   : > { %v472_v52 = vor.u32 %v470_v47, %v469_v46  ;;  %v584_v61 = vor.u32 %v583_v56, %v467_v42  ;;  %v484_v21 = vshll.u32 %v2114_v14, 16  ;;  %v2099_v34 = vcombine.low %v243_v22, %v243_v22 }
  0x2b   : > { %988 = vrot.lane.b32.xlu1 %v2546_v59, %s2414_s29  ;;  %v337_v25 = vshrl.u32 %v2098_v18, 16  ;;  %v668_v31 = vshll.u32 %v2130_v27, 16 }
  0x2c   : > { %1018 = vrot.lane.b32.xlu0 %v2476_v8, %s2415_s30  ;;  %v2632_v55 = vsel %vm2505_vm5, %v331_v51, %v472_v52  ;;  %v587_v30 = vrot.slane %v484_v21, 1  ;;  %v245_v51 = vld [vmem:[%s2463_s19 + $0x48] sm:$0xf]  ;;  %v246_v52 = vld [vmem:[%s2463_s19 + $0x4c] sm:$0xf] }
  0x2d   : > { %v670_v36 = vrot.slane %v668_v31, 4 }
  0x2f   : > { %1020 = vrot.lane.b32.xlu1 %v2499_v35, %s2415_s30 }
  0x30   : > { %1051 = vrot.lane.b32.xlu0 %v720_v53, %s2416_s4 }
  0x33   : > { %796 = vrot.lane.b32.xlu1 %v2476_v8, %s2409_s20  ;;  %v325_v8 = vshrl.u32 %v2094_v10, 16 }
  0x34   : > { %1053 = vrot.lane.b32.xlu0 %v721_v7, %s2416_s4 }
  0x35   : > { %v2592_v19 = vsel %vm2505_vm5, %v325_v8, %v458_v16  ;;  %v481_v16 = vshrl.u32 %v2114_v14, 16 }
  0x37   : > { %798 = vrot.lane.b32.xlu1 %v2499_v35, %s2409_s20  ;;  %v483_v20 = vrot.slane %v481_v16, 7 }
  0x38   : > { %844 = vrot.lane.b32.xlu0 %v720_v53, %s2411_s24  ;;  %v2128_v53 = vcombine.low %v238_v38, %v238_v38 }
  0x39   : > { %v486_v26 = vor.u32 %v484_v21, %v483_v20 }
  0x3a   : > { %v660_v57 = vshll.u32 %v2128_v53, 16 }
  0x3b   : > { %846 = vrot.lane.b32.xlu1 %v721_v7, %s2411_s24 }
  0x3c   : > { %892 = vrot.lane.b32.xlu0 %v2546_v59, %s2412_s27  ;;  %v662_v62 = vrot.slane %v660_v57, 4 }
  0x3e   : > { %v724_v4 = vsel %vm2490_vm4, %v584_v61, %v662_v62 }
  0x3f   : > { %894 = vrot.lane.b32.xlu1 %v2592_v19, %s2412_s27 }
  0x40   : > { %924 = vrot.lane.b32.xlu0 %v2499_v35, %s2410_s21  ;;  %v656_v35 = vshll.u32 %v2127_v32, 16  ;;  %v488_v32 = vshrl.u32 %v2663_v28, 16 }
  0x42   : > { %v658_v41 = vrot.slane %v656_v35, 4  ;;  %v588_v35 = vor.u32 %v587_v30, %v481_v16  ;;  %v490_v38 = vrot.slane %v488_v32, 7 }
  0x43   : > { %926 = vrot.lane.b32.xlu1 %v2560_v2, %s2410_s21 }
  0x44   : > { %957 = vrot.lane.b32.xlu0 %v721_v7, %s2413_s28  ;;  %v723_v43 = vsel %vm2490_vm4, %v582_v40, %v658_v41  ;;  %v2129_v7 = vcombine.low %v240_v50, %v240_v50  ;;  %v726_v40 = vsel %vm2490_vm4, %v588_v35, %v670_v36  ;;  %v340_v41 = vshrl.u32 %v2099_v34, 16 }
  0x46   : > { %v664_v11 = vshll.u32 %v2129_v7, 16 }
  0x47   : > { %959 = vrot.lane.b32.xlu1 %v722_v29, %s2413_s28 }
  0x48   : > { %990 = vrot.lane.b32.xlu0 %v2592_v19, %s2414_s29  ;;  %v666_v8 = vrot.slane %v664_v11, 4  ;;  %v2708_v11 = vld [vmem:[%s2463_s19 + $0x54] sm:$0xf] }
  0x4b   : > { %992 = vrot.lane.b32.xlu1 %v2608_v33, %s2414_s29 }
  0x4c   : > { %1022 = vrot.lane.b32.xlu0 %v2560_v2, %s2415_s30 }
  0x4f   : > { %1024 = vrot.lane.b32.xlu1 %v2111_v17, %s2415_s30 }
  0x50   : > { %1055 = vrot.lane.b32.xlu0 %v722_v29, %s2416_s4 }
  0x53   : > { %800 = vrot.lane.b32.xlu1 %v2560_v2, %s2409_s20  ;;  %v477_v2 = vshll.u32 %v2113_v54, 16 }
  0x54   : > { %1057 = vrot.lane.b32.xlu0 %v723_v43, %s2416_s4 }
  0x55   : > { %v479_v3 = vor.u32 %v477_v2, %v476_v63  ;;  %v585_v10 = vrot.slane %v477_v2, 1 }
  0x57   : > { %802 = vrot.lane.b32.xlu1 %v2111_v17, %s2409_s20  ;;  %v2646_v9 = vsel %vm2505_vm5, %v334_v5, %v479_v3  ;;  %v586_v15 = vor.u32 %v585_v10, %v474_v58  ;;  %v247_v10 = vld [vmem:[%s2463_s19 + $0x50] sm:$0xf] }
  0x58   : > { %848 = vrot.lane.b32.xlu0 %v722_v29, %s2411_s24  ;;  %v2670_v29 = vsel %vm2505_vm5, %v337_v25, %v486_v26  ;;  %v2101_v27 = vcombine.low %v247_v10, %v247_v10 }
  0x5b   : > { %850 = vrot.lane.b32.xlu1 %v723_v43, %s2411_s24 }
  0x5c   : > { %896 = vrot.lane.b32.xlu0 %v2608_v33, %s2412_s27 }
  0x5f   : > { %898 = vrot.lane.b32.xlu1 %v2632_v55, %s2412_s27 }
  0x60   : > { %928 = vrot.lane.b32.xlu0 %v2111_v17, %s2410_s21  ;;  %v725_v17 = vsel %vm2490_vm4, %v586_v15, %v666_v8  ;;  %v2132_v15 = vcombine.low %v246_v52, %v246_v52  ;;  %v2714_v8 = vcombine.low %v247_v10, %v2708_v11 }
  0x62   : > { %v676_v25 = vshll.u32 %v2132_v15, 16  ;;  %v502_v1 = vshrl.u32 %v2714_v8, 16  ;;  %v505_v34 = vshll.u32 %v2714_v8, 16 }
  0x63   : > { %930 = vrot.lane.b32.xlu1 %v2112_v39, %s2410_s21 }
  0x64   : > { %961 = vrot.lane.b32.xlu0 %v723_v43, %s2413_s28  ;;  %v2131_v43 = vcombine.low %v244_v24, %v244_v24 }
  0x66   : > { %v672_v50 = vshll.u32 %v2131_v43, 16 }
  0x67   : > { %963 = vrot.lane.b32.xlu1 %v724_v4, %s2413_s28 }
  0x68   : > { %994 = vrot.lane.b32.xlu0 %v2632_v55, %s2414_s29  ;;  %v674_v58 = vrot.slane %v672_v50, 4  ;;  %v346_v50 = vshrl.u32 %v2101_v27, 16 }
  0x6b   : > { %996 = vrot.lane.b32.xlu1 %v2646_v9, %s2414_s29 }
  0x6c   : > { %1026 = vrot.lane.b32.xlu0 %v2112_v39, %s2415_s30 }
  0x6f   : > { %1028 = vrot.lane.b32.xlu1 %v2113_v54, %s2415_s30 }
  0x70   : > { %1059 = vrot.lane.b32.xlu0 %v724_v4, %s2416_s4 }
  0x73   : > { %804 = vrot.lane.b32.xlu1 %v2112_v39, %s2409_s20  ;;  %v491_v39 = vshll.u32 %v2663_v28, 16 }
  0x74   : > { %1061 = vrot.lane.b32.xlu0 %v725_v17, %s2416_s4 }
  0x75   : > { %v493_v42 = vor.u32 %v491_v39, %v490_v38  ;;  %v589_v48 = vrot.slane %v491_v39, 1  ;;  %v504_v38 = vrot.slane %v502_v1, 7 }
  0x77   : > { %806 = vrot.lane.b32.xlu1 %v2113_v54, %s2409_s20  ;;  %v2688_v47 = vsel %vm2505_vm5, %v340_v41, %v493_v42  ;;  %v590_v57 = vor.u32 %v589_v48, %v488_v32 }
  0x78   : > { %852 = vrot.lane.b32.xlu0 %v724_v4, %s2411_s24  ;;  %v2100_v4 = vcombine.low %v245_v51, %v245_v51 }
  0x79   : > { %v727_v63 = vsel %vm2490_vm4, %v590_v57, %v674_v58 }
  0x7a   : > { %v343_v13 = vshrl.u32 %v2100_v4, 16  ;;  %v250_v4 = vld [vmem:[%s2463_s19 + $0x5c] sm:$0xf] }
  0x7b   : > { %854 = vrot.lane.b32.xlu1 %v725_v17, %s2411_s24 }
  0x7c   : > { %900 = vrot.lane.b32.xlu0 %v2646_v9, %s2412_s27 }
  0x7f   : > { %902 = vrot.lane.b32.xlu1 %v2670_v29, %s2412_s27 }
  0x80   : > { %932 = vrot.lane.b32.xlu0 %v2113_v54, %s2410_s21  ;;  %v2695_v54 = vcombine.low %v245_v51, %v246_v52  ;;  %v507_v51 = vor.u32 %v505_v34, %v504_v38 }
  0x82   : > { %v495_v61 = vshrl.u32 %v2695_v54, 16  ;;  %v498_v3 = vshll.u32 %v2695_v54, 16 }
  0x83   : > { %934 = vrot.lane.b32.xlu1 %v2114_v14, %s2410_s21 }
  0x84   : > { %965 = vrot.lane.b32.xlu0 %v725_v17, %s2413_s28  ;;  %v497_v5 = vrot.slane %v495_v61, 7  ;;  %v591_v21 = vrot.slane %v498_v3, 1 }
  0x86   : > { %v793_v44 = vpop.permute.xlu0 %792  ;;  %v592_v32 = vor.u32 %v591_v21, %v495_v61 }
  0x87   : > { %967 = vrot.lane.b32.xlu1 %v726_v40, %s2413_s28  ;;  %v2682_v46 = vpop.permute.xlu1 %922  ;;  %v1086_v17 = vsel %vm1083_vm7, %v555_v6, %v793_v44 }
  0x88   : > { %998 = vrot.lane.b32.xlu0 %v2670_v29, %s2414_s29 }
  0x8a   : > { %v795_v53 = vpop.permute.xlu0 %794 }
  0x8b   : > { %1000 = vrot.lane.b32.xlu1 %v2688_v47, %s2414_s29  ;;  %v1089_v6 = vsel %vm1083_vm7, %v2519_v45, %v795_v53  ;;  %v678_v45 = vrot.slane %v676_v25, 4  ;;  %v2133_v53 = vcombine.low %v2708_v11, %v2708_v11  ;;  %v252_v25 = vld [vmem:[%s2463_s19 + $0x64] sm:$0xf] }
  0x8c   : > { %1030 = vrot.lane.b32.xlu0 %v2114_v14, %s2415_s30 }
  0x8d   : > { %v841_v56 = vpop.permute.xlu1 %840 }
  0x8e   : > { %v921_v60 = vpop.permute.xlu0 %920  ;;  %v1134_v20 = vsel %vm1132_vm8, %v1086_v17, %v841_v56 }
  0x8f   : > { %1032 = vrot.lane.b32.xlu1 %v2663_v28, %s2415_s30 }
  0x90   : > { %1063 = vrot.lane.b32.xlu0 %v726_v40, %s2416_s4 }
  0x91   : > { %v843_v62 = vpop.permute.xlu1 %842 }
  0x92   : > { %v889_v2 = vpop.permute.xlu0 %888  ;;  %v1136_v30 = vsel %vm1132_vm8, %v1089_v6, %v843_v62  ;;  %v593_v62 = vrot.slane %v505_v34, 1 }
  0x93   : > { %808 = vrot.lane.b32.xlu1 %v2114_v14, %s2409_s20  ;;  %v500_v14 = vor.u32 %v498_v3, %v497_v5  ;;  %v1167_v22 = vsel %vm1165_vm9, %v1134_v20, %v889_v2  ;;  %v249_v2 = vld [vmem:[%s2463_s19 + $0x58] sm:$0xf] }
  0x94   : > { %1065 = vrot.lane.b32.xlu0 %v727_v63, %s2416_s4  ;;  %v1200_v31 = vsel %vm1198_vm10, %v1167_v22, %v921_v60  ;;  %v2766_v60 = vsel %vm2505_vm5, %v346_v50, %v507_v51  ;;  %v2774_v3 = vcombine.low %v249_v2, %v250_v4  ;;  %v594_v10 = vor.u32 %v593_v62, %v502_v1  ;;  %v251_v22 = vld [vmem:[%s2463_s19 + $0x60] sm:$0xf] }
  0x95   : > { %v891_v7 = vpop.permute.xlu1 %890  ;;  %v2729_v24 = vsel %vm2505_vm5, %v343_v13, %v500_v14  ;;  %v2102_v17 = vcombine.low %v249_v2, %v249_v2  ;;  %v2791_v27 = vcombine.low %v251_v22, %v252_v25 }
  0x96   : > { %v954_v12 = vpop.permute.xlu0 %953  ;;  %v1169_v35 = vsel %vm1165_vm9, %v1136_v30, %v891_v7  ;;  %v509_v13 = vshrl.u32 %v2774_v3, 16  ;;  %v512_v20 = vshll.u32 %v2774_v3, 16 }
  0x97   : > { %810 = vrot.lane.b32.xlu1 %v2663_v28, %s2409_s20  ;;  %v1233_v36 = vsel %vm1231_vm11, %v1200_v31, %v954_v12  ;;  %v1202_v43 = vsel %vm1198_vm10, %v1169_v35, %v2682_v46  ;;  %v349_v6 = vshrl.u32 %v2102_v17, 16  ;;  %v519_v50 = vshll.u32 %v2791_v27, 16  ;;  %v254_v17 = vld [vmem:[%s2463_s19 + $0x6c] sm:$0xf] }
  0x98   : > { %856 = vrot.lane.b32.xlu0 %v726_v40, %s2411_s24  ;;  %v595_v31 = vrot.slane %v512_v20, 1 }
  0x99   : > { %v956_v16 = vpop.permute.xlu1 %955 }
  0x9a   : > { %v987_v18 = vpop.permute.xlu0 %986  ;;  %v1235_v48 = vsel %vm1231_vm11, %v1202_v43, %v956_v16  ;;  %v2103_v43 = vcombine.low %v251_v22, %v251_v22 }
  0x9b   : > { %858 = vrot.lane.b32.xlu1 %v727_v63, %s2411_s24  ;;  %v1266_v39 = vsel %vm1264_vm12, %v1233_v36, %v987_v18  ;;  %v511_v18 = vrot.slane %v509_v13, 7  ;;  %v516_v36 = vshrl.u32 %v2791_v27, 16 }
  0x9c   : > { %904 = vrot.lane.b32.xlu0 %v2688_v47, %s2412_s27  ;;  %v352_v62 = vshrl.u32 %v2103_v43, 16 }
  0x9d   : > { %v989_v0 = vpop.permute.xlu1 %988 }
  0x9e   : > { %v1019_v26 = vpop.permute.xlu0 %1018  ;;  %v1268_v46 = vsel %vm1264_vm12, %v1235_v48, %v989_v0  ;;  %v2134_v0 = vcombine.low %v250_v4, %v250_v4 }
  0x9f   : > { %906 = vrot.lane.b32.xlu1 %v2729_v24, %s2412_s27  ;;  %v1299_v41 = vsel %vm1297_vm13, %v1266_v39, %v1019_v26  ;;  %v514_v26 = vor.u32 %v512_v20, %v511_v18 }
  0xa0   : > { %936 = vrot.lane.b32.xlu0 %v2663_v28, %s2410_s21  ;;  %v728_v28 = vsel %vm2490_vm4, %v592_v32, %v678_v45  ;;  %v684_v32 = vshll.u32 %v2134_v0, 16 }
  0xa1   : > { %v1021_v40 = vpop.permute.xlu1 %1020  ;;  %v2800_v35 = vsel %vm2505_vm5, %v349_v6, %v514_v26 }
  0xa2   : > { %v1052_v42 = vpop.permute.xlu0 %1051  ;;  %v1301_v56 = vsel %vm1297_vm13, %v1268_v46, %v1021_v40 }
  0xa3   : > { %938 = vrot.lane.b32.xlu1 %v2695_v54, %s2410_s21  ;;  %v1332_v44 = vsel %vm1330_vm14, %v1299_v41, %v1052_v42  ;;  %v686_v42 = vrot.slane %v684_v32, 4 }
  0xa4   : > { %969 = vrot.lane.b32.xlu0 %v727_v63, %s2413_s28  ;;  %2256 = vmatprep.mubr.msk.bf16.mxu0 %vm1383_vm15, %v1332_v44  ;;  %v680_v63 = vshll.u32 %v2133_v53, 16 }
  0xa5   : > { %v797_v52 = vpop.permute.xlu1 %796 }
  0xa6   : > { %v1054_v57 = vpop.permute.xlu0 %1053  ;;  %v682_v11 = vrot.slane %v680_v63, 4  ;;  %v1092_v34 = vsel %vm1083_vm7, %v2529_v49, %v797_v52  ;;  %v596_v49 = vor.u32 %v595_v31, %v509_v13 }
  0xa7   : > { %v1334_v58 = vsel %vm1330_vm14, %v1301_v56, %v1054_v57  ;;  %971 = vrot.lane.b32.xlu1 %v728_v28, %s2413_s28 }
  0xa8   : > { %1002 = vrot.lane.b32.xlu0 %v2729_v24, %s2414_s29  ;;  %2257 = vmatmul.mubr.msk.bf16.vlgmr.msra.gmra.mrb[0].mxu0 %vm1383_vm15, %v1334_v58  ;;  %v729_v15 = vsel %vm2490_vm4, %v594_v10, %v682_v11 }
  0xa9   : > { %v799_v61 = vpop.permute.xlu1 %798 }
  0xaa   : > { %v845_v5 = vpop.permute.xlu0 %844  ;;  %v1095_v44 = vsel %vm1083_vm7, %v2546_v59, %v799_v61  ;;  %v730_v61 = vsel %vm2490_vm4, %v596_v49, %v686_v42 }
  0xab   : > { %1004 = vrot.lane.b32.xlu1 %v2766_v60, %s2414_s29  ;;  %v1138_v45 = vsel %vm1132_vm8, %v1092_v34, %v845_v5  ;;  %v2135_v5 = vcombine.low %v252_v25, %v252_v25 }
  0xac   : > { %1034 = vrot.lane.b32.xlu0 %v2695_v54, %s2415_s30 }
  0xad   : > { %v847_v7 = vpop.permute.xlu1 %846 }
  0xae   : > { %v893_v12 = vpop.permute.xlu0 %892  ;;  %v1140_v51 = vsel %vm1132_vm8, %v1095_v44, %v847_v7 }
  0xaf   : > { %1036 = vrot.lane.b32.xlu1 %v2714_v8, %s2415_s30  ;;  %v1171_v39 = vsel %vm1165_vm9, %v1138_v45, %v893_v12  ;;  %v256_v45 = vld [vmem:[%s2463_s19 + $0x74] sm:$0xf] }
  0xb0   : > { %1067 = vrot.lane.b32.xlu0 %v728_v28, %s2416_s4 }
  0xb1   : > { %v895_v14 = vpop.permute.xlu1 %894 }
  0xb2   : > { %v925_v16 = vpop.permute.xlu0 %924  ;;  %v1173_v53 = vsel %vm1165_vm9, %v1140_v51, %v895_v14  ;;  %v597_v14 = vrot.slane %v519_v50, 1 }
  0xb3   : > { %812 = vrot.lane.b32.xlu1 %v2695_v54, %s2409_s20  ;;  %v1204_v41 = vsel %vm1198_vm10, %v1171_v39, %v925_v16  ;;  %v253_v16 = vld [vmem:[%s2463_s19 + $0x68] sm:$0xf]  ;;  %v2136_v39 = vcombine.low %v254_v17, %v254_v17 }
  0xb4   : > { %1069 = vrot.lane.b32.xlu0 %v729_v15, %s2416_s4  ;;  %v2844_v20 = vcombine.low %v253_v16, %v254_v17  ;;  %v598_v22 = vor.u32 %v597_v14, %v516_v36 }
  0xb5   : > { %v927_v21 = vpop.permute.xlu1 %926  ;;  %v692_v44 = vshll.u32 %v2136_v39, 16 }
  0xb6   : > { %v958_v1 = vpop.permute.xlu0 %957  ;;  %v1206_v59 = vsel %vm1198_vm10, %v1173_v53, %v927_v21  ;;  %v523_v0 = vshrl.u32 %v2844_v20, 16  ;;  %v526_v32 = vshll.u32 %v2844_v20, 16 }
  0xb7   : > { %814 = vrot.lane.b32.xlu1 %v2714_v8, %s2409_s20  ;;  %v1237_v48 = vsel %vm1231_vm11, %v1204_v41, %v958_v1 }
  0xb8   : > { %860 = vrot.lane.b32.xlu0 %v728_v28, %s2411_s24  ;;  %v518_v28 = vrot.slane %v516_v36, 7  ;;  %v525_v31 = vrot.slane %v523_v0, 7  ;;  %v255_v36 = vld [vmem:[%s2463_s19 + $0x70] sm:$0xf]  ;;  %v599_v43 = vrot.slane %v526_v32, 1 }
  0xb9   : > { %v960_v54 = vpop.permute.xlu1 %959  ;;  %v2861_v49 = vcombine.low %v255_v36, %v256_v45 }
  0xba   : > { %v991_v30 = vpop.permute.xlu0 %990  ;;  %v521_v63 = vor.u32 %v519_v50, %v518_v28  ;;  %v528_v41 = vor.u32 %v526_v32, %v525_v31 }
  0xbb   : > { %862 = vrot.lane.b32.xlu1 %v729_v15, %s2411_s24  ;;  %v1270_v46 = vsel %vm1264_vm12, %v1237_v48, %v991_v30  ;;  %v2104_v30 = vcombine.low %v253_v16, %v253_v16  ;;  %v530_v50 = vshrl.u32 %v2861_v49, 16 }
  0xbc   : > { %908 = vrot.lane.b32.xlu0 %v2766_v60, %s2412_s27  ;;  %v2836_v12 = vsel %vm2505_vm5, %v352_v62, %v521_v63  ;;  %v533_v62 = vshll.u32 %v2861_v49, 16 }
  0xbd   : > { %v993_v38 = vpop.permute.xlu1 %992 }
  0xbe   : > { %v1023_v40 = vpop.permute.xlu0 %1022 }
  0xbf   : > { %910 = vrot.lane.b32.xlu1 %v2800_v35, %s2412_s27  ;;  %v1303_v56 = vsel %vm1297_vm13, %v1270_v46, %v1023_v40  ;;  %v355_v40 = vshrl.u32 %v2104_v30, 16  ;;  %v258_v30 = vld [vmem:[%s2463_s19 + $0x7c] sm:$0xf] }
  0xc0   : > { %940 = vrot.lane.b32.xlu0 %v2714_v8, %s2410_s21  ;;  %v1239_v8 = vsel %vm1231_vm11, %v1206_v59, %v960_v54  ;;  %v2105_v59 = vcombine.low %v255_v36, %v255_v36 }
  0xc1   : > { %v1025_v52 = vpop.permute.xlu1 %1024  ;;  %v1272_v2 = vsel %vm1264_vm12, %v1239_v8, %v993_v38  ;;  %v2870_v28 = vsel %vm2505_vm5, %v355_v40, %v528_v41 }
  0xc2   : > { %v1056_v57 = vpop.permute.xlu0 %1055  ;;  %v1305_v7 = vsel %vm1297_vm13, %v1272_v2, %v1025_v52  ;;  %v358_v14 = vshrl.u32 %v2105_v59, 16 }
  0xc3   : > { %v1336_v58 = vsel %vm1330_vm14, %v1303_v56, %v1056_v57  ;;  %942 = vrot.lane.b32.xlu1 %v2774_v3, %s2410_s21  ;;  %v694_v57 = vrot.slane %v692_v44, 4 }
  0xc4   : > { %973 = vrot.lane.b32.xlu0 %v729_v15, %s2413_s28  ;;  %2260 = vmatprep.mubr.msk.bf16.mxu0 %vm1383_vm15, %v1336_v58  ;;  %v688_v15 = vshll.u32 %v2135_v5, 16 }
  0xc5   : > { %v801_v4 = vpop.permute.xlu1 %800 }
  0xc6   : > { %v1058_v10 = vpop.permute.xlu0 %1057  ;;  %v690_v25 = vrot.slane %v688_v15, 4  ;;  %v1098_v48 = vsel %vm1083_vm7, %v2592_v19, %v801_v4  ;;  %v600_v19 = vor.u32 %v599_v43, %v523_v0 }
  0xc7   : > { %v1338_v11 = vsel %vm1330_vm14, %v1305_v7, %v1058_v10  ;;  %975 = vrot.lane.b32.xlu1 %v730_v61, %s2413_s28 }
  0xc8   : > { %1006 = vrot.lane.b32.xlu0 %v2800_v35, %s2414_s29  ;;  %2261 = vmatmul.mubr.msk.bf16.gmra.mrb[4].mxu0 %vm1383_vm15, %v1338_v11  ;;  %v731_v26 = vsel %vm2490_vm4, %v598_v22, %v690_v25 }
  0xc9   : > { %v803_v13 = vpop.permute.xlu1 %802 }
  0xca   : > { %v849_v18 = vpop.permute.xlu0 %848  ;;  %v1101_v58 = vsel %vm1083_vm7, %v2608_v33, %v803_v13  ;;  %v732_v13 = vsel %vm2490_vm4, %v600_v19, %v694_v57 }
  0xcb   : > { %1008 = vrot.lane.b32.xlu1 %v2836_v12, %s2414_s29  ;;  %v1142_v51 = vsel %vm1132_vm8, %v1098_v48, %v849_v18  ;;  %v2137_v18 = vcombine.low %v256_v45, %v256_v45 }
  0xcc   : > { %1038 = vrot.lane.b32.xlu0 %v2774_v3, %s2415_s30 }
  0xcd   : > { %v851_v21 = vpop.permute.xlu1 %850 }
  0xce   : > { %v897_v1 = vpop.permute.xlu0 %896  ;;  %v1144_v63 = vsel %vm1132_vm8, %v1101_v58, %v851_v21 }
  0xcf   : > { %1040 = vrot.lane.b32.xlu1 %v2791_v27, %s2415_s30  ;;  %v1175_v52 = vsel %vm1165_vm9, %v1142_v51, %v897_v1  ;;  %v2089_v51 = vld [vmem:[%s2463_s19 + $0x74] sm:$0xf] }
  0xd0   : > { %1071 = vrot.lane.b32.xlu0 %v730_v61, %s2416_s4 }
  0xd1   : > { %v899_v6 = vpop.permute.xlu1 %898 }
  0xd2   : > { %v929_v54 = vpop.permute.xlu0 %928  ;;  %v1177_v5 = vsel %vm1165_vm9, %v1144_v63, %v899_v6  ;;  %v601_v6 = vrot.slane %v533_v62, 1 }
  0xd3   : > { %816 = vrot.lane.b32.xlu1 %v2774_v3, %s2409_s20  ;;  %v1208_v56 = vsel %vm1198_vm10, %v1175_v52, %v929_v54  ;;  %v257_v54 = vld [vmem:[%s2463_s19 + $0x78] sm:$0xf]  ;;  %v2140_v52 = vcombine.low %v258_v30, %v258_v30 }
  0xd4   : > { %1073 = vrot.lane.b32.xlu0 %v731_v26, %s2416_s4  ;;  %v2914_v32 = vcombine.low %v257_v54, %v258_v30  ;;  %v602_v36 = vor.u32 %v601_v6, %v530_v50 }
  0xd5   : > { %v931_v34 = vpop.permute.xlu1 %930  ;;  %v758_v58 = vshll.u32 %v2140_v52, 16 }
  0xd6   : > { %v962_v38 = vpop.permute.xlu0 %961  ;;  %v1210_v33 = vsel %vm1198_vm10, %v1177_v5, %v931_v34  ;;  %v745_v39 = vshrl.u32 %v2914_v32, 16  ;;  %v748_v44 = vshll.u32 %v2914_v32, 16 }
  0xd7   : > { %818 = vrot.lane.b32.xlu1 %v2791_v27, %s2409_s20  ;;  %v1241_v8 = vsel %vm1231_vm11, %v1208_v56, %v962_v38 }
  0xd8   : > { %864 = vrot.lane.b32.xlu0 %v730_v61, %s2411_s24  ;;  %v532_v61 = vrot.slane %v530_v50, 7  ;;  %v747_v43 = vrot.slane %v745_v39, 7  ;;  %v2088_v50 = vld [vmem:[%s2463_s19 + $0x70] sm:$0xf]  ;;  %v753_v59 = vrot.slane %v748_v44, 1 }
  0xd9   : > { %v964_v3 = vpop.permute.xlu1 %963  ;;  %v2142_v19 = vcombine.low %v2088_v50, %v2089_v51 }
  0xda   : > { %v995_v42 = vpop.permute.xlu0 %994  ;;  %v535_v15 = vor.u32 %v533_v62, %v532_v61  ;;  %v750_v56 = vor.u32 %v748_v44, %v747_v43 }
  0xdb   : > { %866 = vrot.lane.b32.xlu1 %v731_v26, %s2411_s24  ;;  %v1274_v2 = vsel %vm1264_vm12, %v1241_v8, %v995_v42  ;;  %v2138_v42 = vcombine.low %v257_v54, %v257_v54  ;;  %v774_v62 = vshrl.u32 %v2142_v19, 16  ;;  %v2143_v54 = vcombine.low %v2089_v51, %v2089_v51 }
  0xdc   : > { %912 = vrot.lane.b32.xlu0 %v2836_v12, %s2412_s27  ;;  %v2906_v1 = vsel %vm2505_vm5, %v358_v14, %v535_v15  ;;  %v777_v14 = vshll.u32 %v2142_v19, 16 }
  0xdd   : > { %v997_v46 = vpop.permute.xlu1 %996 }
  0xde   : > { %v1027_v53 = vpop.permute.xlu0 %1026 }
  0xdf   : > { %914 = vrot.lane.b32.xlu1 %v2870_v28, %s2412_s27  ;;  %v1307_v7 = vsel %vm1297_vm13, %v1274_v2, %v1027_v53  ;;  %v738_v53 = vshrl.u32 %v2138_v42, 16 }
  0xe0   : > { %944 = vrot.lane.b32.xlu0 %v2791_v27, %s2410_s21  ;;  %v1243_v27 = vsel %vm1231_vm11, %v1210_v33, %v964_v3  ;;  %v760_v33 = vrot.slane %v758_v58, 4 }
  0xe1   : > { %v1029_v4 = vpop.permute.xlu1 %1028  ;;  %v1276_v16 = vsel %vm1264_vm12, %v1243_v27, %v997_v46  ;;  %v752_v61 = vsel %vm2505_vm5, %v738_v53, %v750_v56 }
  0xe2   : > { %v1060_v10 = vpop.permute.xlu0 %1059  ;;  %v1309_v21 = vsel %vm1297_vm13, %v1276_v16, %v1029_v4 }
  0xe3   : > { %v1340_v11 = vsel %vm1330_vm14, %v1307_v7, %v1060_v10  ;;  %946 = vrot.lane.b32.xlu1 %v2844_v20, %s2410_s21  ;;  %v754_v10 = vor.u32 %v753_v59, %v745_v39  ;;  %v782_v39 = vrot.slane %v777_v14, 1 }
  0xe4   : > { %977 = vrot.lane.b32.xlu0 %v731_v26, %s2413_s28  ;;  %2264 = vmatprep.mubr.msk.bf16.mxu0 %vm1383_vm15, %v1340_v11  ;;  %v696_v26 = vshll.u32 %v2137_v18, 16 }
  0xe5   : > { %v805_v17 = vpop.permute.xlu1 %804  ;;  %v783_v42 = vor.u32 %v782_v39, %v774_v62 }
  0xe6   : > { %v1062_v22 = vpop.permute.xlu0 %1061  ;;  %v698_v45 = vrot.slane %v696_v26, 4  ;;  %v1104_v8 = vsel %vm1083_vm7, %v2632_v55, %v805_v17  ;;  %v2141_v55 = vcombine.low %v2088_v50, %v2088_v50 }
  0xe7   : > { %v1342_v25 = vsel %vm1330_vm14, %v1309_v21, %v1062_v22  ;;  %979 = vrot.lane.b32.xlu1 %v732_v13, %s2413_s28 }
  0xe8   : > { %1010 = vrot.lane.b32.xlu0 %v2870_v28, %s2414_s29  ;;  %2265 = vmatmul.mubr.msk.bf16.gmra.mrb[8].mxu0 %vm1383_vm15, %v1342_v25  ;;  %v733_v41 = vsel %vm2490_vm4, %v602_v36, %v698_v45  ;;  %v767_v6 = vshrl.u32 %v2141_v55, 16 }
  0xe9   : > { %v807_v0 = vpop.permute.xlu1 %806 }
  0xea   : > { %v853_v31 = vpop.permute.xlu0 %852  ;;  %v1107_v11 = vsel %vm1083_vm7, %v2646_v9, %v807_v0 }
  0xeb   : > { %1012 = vrot.lane.b32.xlu1 %v2906_v1, %s2414_s29  ;;  %v1146_v63 = vsel %vm1132_vm8, %v1104_v8, %v853_v31 }
  0xec   : > { %1042 = vrot.lane.b32.xlu0 %v2844_v20, %s2415_s30 }
  0xed   : > { %v855_v34 = vpop.permute.xlu1 %854 }
  0xee   : > { %v901_v38 = vpop.permute.xlu0 %900  ;;  %v1148_v15 = vsel %vm1132_vm8, %v1107_v11, %v855_v34 }
  0xef   : > { %1044 = vrot.lane.b32.xlu1 %v2861_v49, %s2415_s30  ;;  %v1179_v4 = vsel %vm1165_vm9, %v1146_v63, %v901_v38 }
  0xf0   : > { %1075 = vrot.lane.b32.xlu0 %v732_v13, %s2416_s4 }
  0xf1   : > { %v903_v40 = vpop.permute.xlu1 %902 }
  0xf2   : > { %v933_v3 = vpop.permute.xlu0 %932  ;;  %v1181_v18 = vsel %vm1165_vm9, %v1148_v15, %v903_v40  ;;  %v787_v40 = vshll.u32 %v2143_v54, 16 }
  0xf3   : > { %820 = vrot.lane.b32.xlu1 %v2844_v20, %s2409_s20  ;;  %v1212_v7 = vsel %vm1198_vm10, %v1179_v4, %v933_v3 }
  0xf4   : > { %1077 = vrot.lane.b32.xlu0 %v733_v41, %s2416_s4  ;;  %v789_v43 = vrot.slane %v787_v40, 4 }
  0xf5   : > { %v935_v48 = vpop.permute.xlu1 %934 }
  0xf6   : > { %v966_v46 = vpop.permute.xlu0 %965  ;;  %v1214_v25 = vsel %vm1198_vm10, %v1181_v18, %v935_v48  ;;  %v791_v37 = vsel %vm2490_vm4, %v783_v42, %v789_v43 }
  0xf7   : > { %822 = vrot.lane.b32.xlu1 %v2861_v49, %s2409_s20  ;;  %v1245_v27 = vsel %vm1231_vm11, %v1212_v7, %v966_v46 }
  0xf8   : > { %868 = vrot.lane.b32.xlu0 %v732_v13, %s2411_s24  ;;  %v776_v13 = vrot.slane %v774_v62, 7 }
  0xf9   : > { %v968_v20 = vpop.permute.xlu1 %967 }
  0xfa   : > { %v999_v57 = vpop.permute.xlu0 %998  ;;  %v1247_v0 = vsel %vm1231_vm11, %v1214_v25, %v968_v20  ;;  %v779_v26 = vor.u32 %v777_v14, %v776_v13 }
  0xfb   : > { %870 = vrot.lane.b32.xlu1 %v733_v41, %s2411_s24  ;;  %v1278_v16 = vsel %vm1264_vm12, %v1245_v27, %v999_v57 }
  0xfc   : > { %916 = vrot.lane.b32.xlu0 %v2906_v1, %s2412_s27  ;;  %v781_v38 = vsel %vm2505_vm5, %v767_v6, %v779_v26 }
  0xfd   : > { %v1001_v2 = vpop.permute.xlu1 %1000 }
  0xfe   : > { %v1031_v5 = vpop.permute.xlu0 %1030  ;;  %v1280_v30 = vsel %vm1264_vm12, %v1247_v0, %v1001_v2 }
  0xff   : > { %918 = vrot.lane.b32.xlu1 %v752_v61, %s2412_s27  ;;  %v1311_v21 = vsel %vm1297_vm13, %v1278_v16, %v1031_v5 }
 0x100   : > { %948 = vrot.lane.b32.xlu0 %v2861_v49, %s2410_s21  ;;  %v762_v49 = vsel %vm2490_vm4, %v754_v10, %v760_v33 }
 0x101   : > { %v1033_v17 = vpop.permute.xlu1 %1032 }
 0x102   : > { %v1064_v22 = vpop.permute.xlu0 %1063  ;;  %v1313_v34 = vsel %vm1297_vm13, %v1280_v30, %v1033_v17 }
 0x103   : > { %v1344_v9 = vsel %vm1330_vm14, %v1311_v21, %v1064_v22  ;;  %950 = vrot.lane.b32.xlu1 %v2914_v32, %s2410_s21 }
 0x104   : > { %981 = vrot.lane.b32.xlu0 %v733_v41, %s2413_s28  ;;  %2268 = vmatprep.mubr.msk.bf16.mxu0 %vm1383_vm15, %v1344_v9 }
 0x105   : > { %v809_v31 = vpop.permute.xlu1 %808 }
 0x106   : > { %v1066_v36 = vpop.permute.xlu0 %1065 }
 0x107   : > { %v1346_v45 = vsel %vm1330_vm14, %v1313_v34, %v1066_v36  ;;  %983 = vrot.lane.b32.xlu1 %v762_v49, %s2413_s28 }
 0x108   : > { %1014 = vrot.lane.b32.xlu0 %v752_v61, %s2414_s29  ;;  %2269 = vmatmul.mubr.msk.bf16.gmra.mrb[12].mxu0 %vm1383_vm15, %v1346_v45 }
 0x109   : > { %v811_v41 = vpop.permute.xlu1 %810 }
 0x10a   : > { %v857_v3 = vpop.permute.xlu0 %856  ;;  %v1113_v58 = vsel %vm1083_vm7, %v2688_v47, %v811_v41 }
 0x10b   : > { %1016 = vrot.lane.b32.xlu1 %v781_v38, %s2414_s29 }
 0x10c   : > { %1046 = vrot.lane.b32.xlu0 %v2914_v32, %s2415_s30  ;;  %v1110_v32 = vsel %vm1083_vm7, %v2670_v29, %v809_v31 }
 0x10d   : > { %v859_v44 = vpop.permute.xlu1 %858  ;;  %v1150_v20 = vsel %vm1132_vm8, %v1110_v32, %v857_v3 }
 0x10e   : > { %v905_v48 = vpop.permute.xlu0 %904  ;;  %v1152_v61 = vsel %vm1132_vm8, %v1113_v58, %v859_v44 }
 0x10f   : > { %1048 = vrot.lane.b32.xlu1 %v2142_v19, %s2415_s30  ;;  %v1183_v19 = vsel %vm1165_vm9, %v1150_v20, %v905_v48 }
 0x110   : > { %1079 = vrot.lane.b32.xlu0 %v762_v49, %s2416_s4 }
 0x111   : > { %v907_v50 = vpop.permute.xlu1 %906 }
 0x112   : > { %v937_v51 = vpop.permute.xlu0 %936  ;;  %v1185_v29 = vsel %vm1165_vm9, %v1152_v61, %v907_v50 }
 0x113   : > { %1081 = vrot.lane.b32.xlu1 %v791_v37, %s2416_s4  ;;  %v1216_v23 = vsel %vm1198_vm10, %v1183_v19, %v937_v51 }
 0x115   : > { %v939_v46 = vpop.permute.xlu1 %938 }
 0x116   : > { %v970_v52 = vpop.permute.xlu0 %969  ;;  %v1218_v5 = vsel %vm1198_vm10, %v1185_v29, %v939_v46 }
 0x117   : > { %v1249_v8 = vsel %vm1231_vm11, %v1216_v23, %v970_v52 }
 0x119   : > { %v972_v53 = vpop.permute.xlu1 %971 }
 0x11a   : > { %v1003_v56 = vpop.permute.xlu0 %1002  ;;  %v1251_v10 = vsel %vm1231_vm11, %v1218_v5, %v972_v53 }
 0x11b   : > { %v1282_v62 = vsel %vm1264_vm12, %v1249_v8, %v1003_v56 }
 0x11d   : > { %v1005_v57 = vpop.permute.xlu1 %1004 }
 0x11e   : > { %v1035_v59 = vpop.permute.xlu0 %1034  ;;  %v1284_v47 = vsel %vm1264_vm12, %v1251_v10, %v1005_v57 }
 0x11f   : > { %v1315_v2 = vsel %vm1297_vm13, %v1282_v62, %v1035_v59 }
 0x121   : > { %v1037_v63 = vpop.permute.xlu1 %1036 }
 0x122   : > { %v1068_v4 = vpop.permute.xlu0 %1067  ;;  %v1317_v55 = vsel %vm1297_vm13, %v1284_v47, %v1037_v63 }
 0x123   : > { %v1348_v7 = vsel %vm1330_vm14, %v1315_v2, %v1068_v4 }
 0x124   : > { %2272 = vmatprep.mubr.msk.bf16.mxu1 %vm1383_vm15, %v1348_v7 }
 0x125   : > { %v813_v33 = vpop.permute.xlu1 %812 }
 0x126   : > { %v1070_v11 = vpop.permute.xlu0 %1069  ;;  %v1116_v49 = vsel %vm1083_vm7, %v2729_v24, %v813_v33 }
 0x127   : > { %v1350_v27 = vsel %vm1330_vm14, %v1317_v55, %v1070_v11 }
 0x128   : > { %2273 = vmatmul.mubr.msk.bf16.vlgmr.msra.gmra.mrb[0].mxu1 %vm1383_vm15, %v1350_v27 }
 0x129   : > { %v815_v13 = vpop.permute.xlu1 %814 }
 0x12a   : > { %v861_v14 = vpop.permute.xlu0 %860  ;;  %v1119_v31 = vsel %vm1083_vm7, %v2766_v60, %v815_v13 }
 0x12b   : > { %v1154_v0 = vsel %vm1132_vm8, %v1116_v49, %v861_v14 }
 0x12d   : > { %v863_v15 = vpop.permute.xlu1 %862 }
 0x12e   : > { %v909_v16 = vpop.permute.xlu0 %908  ;;  %v1156_v36 = vsel %vm1132_vm8, %v1119_v31, %v863_v15 }
 0x12f   : > { %v1187_v26 = vsel %vm1165_vm9, %v1154_v0, %v909_v16 }
 0x131   : > { %v911_v17 = vpop.permute.xlu1 %910 }
 0x132   : > { %v941_v18 = vpop.permute.xlu0 %940  ;;  %v1189_v24 = vsel %vm1165_vm9, %v1156_v36, %v911_v17 }
 0x133   : > { %v1220_v30 = vsel %vm1198_vm10, %v1187_v26, %v941_v18 }
 0x135   : > { %v943_v21 = vpop.permute.xlu1 %942 }
 0x136   : > { %v974_v22 = vpop.permute.xlu0 %973  ;;  %v1222_v41 = vsel %vm1198_vm10, %v1189_v24, %v943_v21 }
 0x137   : > { %v1253_v34 = vsel %vm1231_vm11, %v1220_v30, %v974_v22 }
 0x139   : > { %v976_v25 = vpop.permute.xlu1 %975 }
 0x13a   : > { %v1007_v9 = vpop.permute.xlu0 %1006  ;;  %v1255_v42 = vsel %vm1231_vm11, %v1222_v41, %v976_v25 }
 0x13b   : > { %v1286_v45 = vsel %vm1264_vm12, %v1253_v34, %v1007_v9 }
 0x13d   : > { %v1009_v6 = vpop.permute.xlu1 %1008 }
 0x13e   : > { %v1039_v54 = vpop.permute.xlu0 %1038  ;;  %v1288_v60 = vsel %vm1264_vm12, %v1255_v42, %v1009_v6 }
 0x13f   : > { %v1319_v39 = vsel %vm1297_vm13, %v1286_v45, %v1039_v54 }
 0x141   : > { %v1041_v38 = vpop.permute.xlu1 %1040 }
 0x142   : > { %v1072_v40 = vpop.permute.xlu0 %1071  ;;  %v1321_v44 = vsel %vm1297_vm13, %v1288_v60, %v1041_v38 }
 0x143   : > { %v1352_v3 = vsel %vm1330_vm14, %v1319_v39, %v1072_v40 }
 0x144   : > { %2276 = vmatprep.mubr.msk.bf16.mxu1 %vm1383_vm15, %v1352_v3 }
 0x145   : > { %v817_v43 = vpop.permute.xlu1 %816 }
 0x146   : > { %v1074_v48 = vpop.permute.xlu0 %1073  ;;  %v1122_v59 = vsel %vm1083_vm7, %v2800_v35, %v817_v43 }
 0x147   : > { %v1354_v37 = vsel %vm1330_vm14, %v1321_v44, %v1074_v48 }
 0x148   : > { %2277 = vmatmul.mubr.msk.bf16.gmra.mrb[4].mxu1 %vm1383_vm15, %v1354_v37 }
 0x149   : > { %v819_v50 = vpop.permute.xlu1 %818 }
 0x14a   : > { %v865_v51 = vpop.permute.xlu0 %864  ;;  %v1125_v63 = vsel %vm1083_vm7, %v2836_v12, %v819_v50 }
 0x14b   : > { %v1158_v23 = vsel %vm1132_vm8, %v1122_v59, %v865_v51 }
 0x14d   : > { %v867_v46 = vpop.permute.xlu1 %866 }
 0x14e   : > { %v913_v52 = vpop.permute.xlu0 %912  ;;  %v1160_v2 = vsel %vm1132_vm8, %v1125_v63, %v867_v46 }
 0x14f   : > { %v1191_v8 = vsel %vm1165_vm9, %v1158_v23, %v913_v52 }
 0x151   : > { %v915_v53 = vpop.permute.xlu1 %914 }
 0x152   : > { %v945_v56 = vpop.permute.xlu0 %944  ;;  %v1193_v35 = vsel %vm1165_vm9, %v1160_v2, %v915_v53 }
 0x153   : > { %v1224_v62 = vsel %vm1198_vm10, %v1191_v8, %v945_v56 }
 0x155   : > { %v947_v32 = vpop.permute.xlu1 %946 }
 0x156   : > { %v978_v20 = vpop.permute.xlu0 %977  ;;  %v1226_v47 = vsel %vm1198_vm10, %v1193_v35, %v947_v32 }
 0x157   : > { %v1257_v29 = vsel %vm1231_vm11, %v1224_v62, %v978_v20 }
 0x159   : > { %v980_v57 = vpop.permute.xlu1 %979 }
 0x15a   : > { %v1011_v19 = vpop.permute.xlu0 %1010  ;;  %v1259_v55 = vsel %vm1231_vm11, %v1226_v47, %v980_v57 }
 0x15b   : > { %v1290_v4 = vsel %vm1264_vm12, %v1257_v29, %v1011_v19 }
 0x15d   : > { %v1013_v58 = vpop.permute.xlu1 %1012 }
 0x15e   : > { %v1043_v61 = vpop.permute.xlu0 %1042  ;;  %v1292_v12 = vsel %vm1264_vm12, %v1259_v55, %v1013_v58 }
 0x15f   : > { %v1323_v7 = vsel %vm1297_vm13, %v1290_v4, %v1043_v61 }
 0x161   : > { %v1045_v5 = vpop.permute.xlu1 %1044 }
 0x162   : > { %v1076_v10 = vpop.permute.xlu0 %1075  ;;  %v1325_v27 = vsel %vm1297_vm13, %v1292_v12, %v1045_v5 }
 0x163   : > { %v1356_v33 = vsel %vm1330_vm14, %v1323_v7, %v1076_v10 }
 0x164   : > { %2280 = vmatprep.mubr.msk.bf16.mxu1 %vm1383_vm15, %v1356_v33 }
 0x165   : > { %v821_v11 = vpop.permute.xlu1 %820 }
 0x166   : > { %v1078_v13 = vpop.permute.xlu0 %1077  ;;  %v1128_v26 = vsel %vm1083_vm7, %v2870_v28, %v821_v11 }
 0x167   : > { %v1358_v14 = vsel %vm1330_vm14, %v1325_v27, %v1078_v13 }
 0x168   : > { %2281 = vmatmul.mubr.msk.bf16.gmra.mrb[8].mxu1 %vm1383_vm15, %v1358_v14 }
 0x169   : > { %v823_v15 = vpop.permute.xlu1 %822 }
 0x16a   : > { %v869_v16 = vpop.permute.xlu0 %868  ;;  %v1131_v38 = vsel %vm1083_vm7, %v2906_v1, %v823_v15 }
 0x16b   : > { %v1162_v31 = vsel %vm1132_vm8, %v1128_v26, %v869_v16 }
 0x16d   : > { %v871_v17 = vpop.permute.xlu1 %870 }
 0x16e   : > { %v917_v18 = vpop.permute.xlu0 %916  ;;  %v1164_v60 = vsel %vm1132_vm8, %v1131_v38, %v871_v17 }
 0x16f   : > { %v1195_v24 = vsel %vm1165_vm9, %v1162_v31, %v917_v18 }
 0x171   : > { %v919_v21 = vpop.permute.xlu1 %918 }
 0x172   : > { %v949_v22 = vpop.permute.xlu0 %948  ;;  %v1197_v48 = vsel %vm1165_vm9, %v1164_v60, %v919_v21 }
 0x173   : > { %v1228_v41 = vsel %vm1198_vm10, %v1195_v24, %v949_v22 }
 0x175   : > { %v951_v25 = vpop.permute.xlu1 %950 }
 0x176   : > { %v982_v9 = vpop.permute.xlu0 %981  ;;  %v1230_v46 = vsel %vm1198_vm10, %v1197_v48, %v951_v25 }
 0x177   : > { %v1261_v43 = vsel %vm1231_vm11, %v1228_v41, %v982_v9 }
 0x179   : > { %v984_v49 = vpop.permute.xlu1 %983 }
 0x17a   : > { %v1015_v0 = vpop.permute.xlu0 %1014  ;;  %v1263_v32 = vsel %vm1231_vm11, %v1230_v46, %v984_v49 }
 0x17b   : > { %v3043_v6 = vpop.f32.mrb[0].mxu0  ;;  %v1294_v37 = vsel %vm1264_vm12, %v1261_v43, %v1015_v0 }
 0x17c   : > { %v2201_v54 = vpack.c.bf16 %v3043_v6, %v3043_v6  ;;  %v3049_v30 = vpop.f32.mrb[1].mxu0  ;;  %v1745_v50 = vsel %vm1132_vm8, %v3043_v6, 0.0 }
 0x17d   : > { %v2199_v34 = vpack.c.bf16 %v3049_v30, %v3049_v30  ;;  %v1017_v36 = vpop.permute.xlu1 %1016  ;;  %v3054_v45 = vpop.f32.mrb[2].mxu0  ;;  %v1742_v3 = vsel %vm1132_vm8, %v3049_v30, 0.0 }
 0x17e   : > { %1712 = vst.msk [vmem:[%s3041_s9 + $0x8] sm:$0xf] %vm1709_vm0, %v2201_v54  ;;  %v2202_v28 = vpack.c.bf16 %v3054_v45, %v3054_v45  ;;  %v1047_v39 = vpop.permute.xlu0 %1046  ;;  %v3063_v40 = vpop.f32.mrb[3].mxu0  ;;  %v1747_v20 = vsel %vm1132_vm8, %v3054_v45, 0.0  ;;  %v1296_v19 = vsel %vm1264_vm12, %v1263_v32, %v1017_v36 }
 0x17f   : > { %1710 = vst.msk [vmem:[%s3041_s9] sm:$0xf] %vm1709_vm0, %v2199_v34  ;;  %v2200_v1 = vpack.c.bf16 %v3063_v40, %v3063_v40  ;;  %v1743_v42 = vsel %vm1132_vm8, %v3063_v40, 0.0  ;;  %v1327_v52 = vsel %vm1297_vm13, %v1294_v37, %v1047_v39 }
 0x180   : > { %1713 = vst.msk [vmem:[%s3041_s9 + $0xc] sm:$0xf] %vm1709_vm0, %v2202_v28  ;;  %v1744_v44 = vadd.f32 %v1743_v42, %v1742_v3 }
 0x181   : > { %1711 = vst.msk [vmem:[%s3041_s9 + $0x4] sm:$0xf] %vm1709_vm0, %v2200_v1  ;;  %v1049_v51 = vpop.permute.xlu1 %1048 }
 0x182   : > { %v1746_v53 = vadd.f32 %v1745_v50, %v1744_v44  ;;  %v1080_v56 = vpop.permute.xlu0 %1079  ;;  %v1329_v23 = vsel %vm1297_vm13, %v1296_v19, %v1049_v51 }
 0x183   : > { %v1360_v57 = vsel %vm1330_vm14, %v1327_v52, %v1080_v56 }
 0x184   : > { %2284 = vmatprep.mubr.msk.bf16.mxu1 %vm1383_vm15, %v1360_v57  ;;  %v1748_v59 = vadd.f32 %v1747_v20, %v1746_v53 }
 0x185   : > { %v1082_v58 = vpop.permute.xlu1 %1081 }
 0x186   : > { %v1362_v8 = vsel %vm1330_vm14, %v1329_v23, %v1082_v58 }
 0x187   : > { %2285 = vmatmul.mubr.msk.bf16.gmra.mrb[12].mxu1 %vm1383_vm15, %v1362_v8 }
 0x19b   : > { %v3095_v61 = vpop.f32.mrb[4].mxu0 }
 0x19c   : > { %v2205_v62 = vpack.c.bf16 %v3095_v61, %v3095_v61  ;;  %v3099_v63 = vpop.f32.mrb[5].mxu0  ;;  %v1753_v55 = vsel %vm1132_vm8, %v3095_v61, 0.0 }
 0x19d   : > { %v2203_v29 = vpack.c.bf16 %v3099_v63, %v3099_v63  ;;  %v1749_v2 = vsel %vm1132_vm8, %v3099_v63, 0.0  ;;  %v3105_v4 = vpop.f32.mrb[6].mxu0 }
 0x19e   : > { %1716 = vst.msk [vmem:[%s3041_s9 + $0x18] sm:$0xf] %vm1709_vm0, %v2205_v62  ;;  %v1750_v5 = vadd.f32 %v1749_v2, %v1748_v59  ;;  %v2206_v35 = vpack.c.bf16 %v3105_v4, %v3105_v4  ;;  %v3111_v7 = vpop.f32.mrb[7].mxu0  ;;  %v1755_v11 = vsel %vm1132_vm8, %v3105_v4, 0.0 }
 0x19f   : > { %1714 = vst.msk [vmem:[%s3041_s9 + $0x10] sm:$0xf] %vm1709_vm0, %v2203_v29  ;;  %v2204_v10 = vpack.c.bf16 %v3111_v7, %v3111_v7  ;;  %v1751_v47 = vsel %vm1132_vm8, %v3111_v7, 0.0 }
 0x1a0   : > { %1717 = vst.msk [vmem:[%s3041_s9 + $0x1c] sm:$0xf] %vm1709_vm0, %v2206_v35  ;;  %v1752_v33 = vadd.f32 %v1751_v47, %v1750_v5 }
 0x1a1   : > { %1715 = vst.msk [vmem:[%s3041_s9 + $0x14] sm:$0xf] %vm1709_vm0, %v2204_v10 }
 0x1a2   : > { %v1754_v12 = vadd.f32 %v1753_v55, %v1752_v33 }
 0x1a4   : > { %v1756_v27 = vadd.f32 %v1755_v11, %v1754_v12 }
 0x1bb   : > { %v3127_v13 = vpop.f32.mrb[8].mxu0 }
 0x1bc   : > { %v2209_v14 = vpack.c.bf16 %v3127_v13, %v3127_v13  ;;  %v3131_v15 = vpop.f32.mrb[9].mxu0  ;;  %v1761_v26 = vsel %vm1132_vm8, %v3127_v13, 0.0 }
 0x1bd   : > { %v2207_v16 = vpack.c.bf16 %v3131_v15, %v3131_v15  ;;  %v1757_v17 = vsel %vm1132_vm8, %v3131_v15, 0.0  ;;  %v3137_v18 = vpop.f32.mrb[10].mxu0 }
 0x1be   : > { %1720 = vst.msk [vmem:[%s3041_s9 + $0x28] sm:$0xf] %vm1709_vm0, %v2209_v14  ;;  %v1758_v21 = vadd.f32 %v1757_v17, %v1756_v27  ;;  %v2210_v22 = vpack.c.bf16 %v3137_v18, %v3137_v18  ;;  %v3143_v25 = vpop.f32.mrb[11].mxu0  ;;  %v1763_v31 = vsel %vm1132_vm8, %v3137_v18, 0.0 }
 0x1bf   : > { %1718 = vst.msk [vmem:[%s3041_s9 + $0x20] sm:$0xf] %vm1709_vm0, %v2207_v16  ;;  %v2208_v9 = vpack.c.bf16 %v3143_v25, %v3143_v25  ;;  %v1759_v49 = vsel %vm1132_vm8, %v3143_v25, 0.0 }
 0x1c0   : > { %1721 = vst.msk [vmem:[%s3041_s9 + $0x2c] sm:$0xf] %vm1709_vm0, %v2210_v22  ;;  %v1760_v0 = vadd.f32 %v1759_v49, %v1758_v21 }
 0x1c1   : > { %1719 = vst.msk [vmem:[%s3041_s9 + $0x24] sm:$0xf] %vm1709_vm0, %v2208_v9 }
 0x1c2   : > { %v1762_v54 = vadd.f32 %v1761_v26, %v1760_v0 }
 0x1c4   : > { %v1764_v34 = vadd.f32 %v1763_v31, %v1762_v54 }
 0x1db   : > { %v3159_v36 = vpop.f32.mrb[12].mxu0 }
 0x1dc   : > { %v2213_v38 = vpack.c.bf16 %v3159_v36, %v3159_v36  ;;  %v3163_v24 = vpop.f32.mrb[13].mxu0  ;;  %v1769_v48 = vsel %vm1132_vm8, %v3159_v36, 0.0 }
 0x1dd   : > { %v2211_v28 = vpack.c.bf16 %v3163_v24, %v3163_v24  ;;  %v1765_v39 = vsel %vm1132_vm8, %v3163_v24, 0.0  ;;  %v3169_v41 = vpop.f32.mrb[14].mxu0 }
 0x1de   : > { %1724 = vst.msk [vmem:[%s3041_s9 + $0x38] sm:$0xf] %vm1709_vm0, %v2213_v38  ;;  %v1766_v3 = vadd.f32 %v1765_v39, %v1764_v34  ;;  %v2214_v1 = vpack.c.bf16 %v3169_v41, %v3169_v41  ;;  %v3175_v42 = vpop.f32.mrb[15].mxu0  ;;  %v1771_v50 = vsel %vm1132_vm8, %v3169_v41, 0.0 }
 0x1df   : > { %1722 = vst.msk [vmem:[%s3041_s9 + $0x30] sm:$0xf] %vm1709_vm0, %v2211_v28  ;;  %v2212_v60 = vpack.c.bf16 %v3175_v42, %v3175_v42  ;;  %v1767_v43 = vsel %vm1132_vm8, %v3175_v42, 0.0 }
 0x1e0   : > { %1725 = vst.msk [vmem:[%s3041_s9 + $0x3c] sm:$0xf] %vm1709_vm0, %v2214_v1  ;;  %v1768_v44 = vadd.f32 %v1767_v43, %v1766_v3 }
 0x1e1   : > { %1723 = vst.msk [vmem:[%s3041_s9 + $0x34] sm:$0xf] %vm1709_vm0, %v2212_v60 }
 0x1e2   : > { %v1770_v37 = vadd.f32 %v1769_v48, %v1768_v44 }
 0x1e4   : > { %v1772_v51 = vadd.f32 %v1771_v50, %v1770_v37 }
 0x1fb   : > { %v3191_v46 = vpop.f32.mrb[0].mxu1 }
 0x1fc   : > { %v2217_v52 = vpack.c.bf16 %v3191_v46, %v3191_v46  ;;  %v3195_v53 = vpop.f32.mrb[1].mxu1  ;;  %v1777_v62 = vsel %vm1132_vm8, %v3191_v46, 0.0 }
 0x1fd   : > { %v2215_v56 = vpack.c.bf16 %v3195_v53, %v3195_v53  ;;  %v1773_v32 = vsel %vm1132_vm8, %v3195_v53, 0.0  ;;  %v3201_v20 = vpop.f32.mrb[2].mxu1 }
 0x1fe   : > { %1728 = vst.msk [vmem:[%s3041_s9 + $0x48] sm:$0xf] %vm1709_vm0, %v2217_v52  ;;  %v1774_v57 = vadd.f32 %v1773_v32, %v1772_v51  ;;  %v2218_v19 = vpack.c.bf16 %v3201_v20, %v3201_v20  ;;  %v3207_v59 = vpop.f32.mrb[3].mxu1  ;;  %v1779_v2 = vsel %vm1132_vm8, %v3201_v20, 0.0 }
 0x1ff   : > { %1726 = vst.msk [vmem:[%s3041_s9 + $0x40] sm:$0xf] %vm1709_vm0, %v2215_v56  ;;  %v2216_v23 = vpack.c.bf16 %v3207_v59, %v3207_v59  ;;  %v1775_v58 = vsel %vm1132_vm8, %v3207_v59, 0.0 }
 0x200   : > { %1729 = vst.msk [vmem:[%s3041_s9 + $0x4c] sm:$0xf] %vm1709_vm0, %v2218_v19  ;;  %v1776_v8 = vadd.f32 %v1775_v58, %v1774_v57 }
 0x201   : > { %1727 = vst.msk [vmem:[%s3041_s9 + $0x44] sm:$0xf] %vm1709_vm0, %v2216_v23 }
 0x202   : > { %v1778_v29 = vadd.f32 %v1777_v62, %v1776_v8 }
 0x204   : > { %v1780_v5 = vadd.f32 %v1779_v2, %v1778_v29 }
 0x21b   : > { %v3223_v35 = vpop.f32.mrb[4].mxu1 }
 0x21c   : > { %v2221_v10 = vpack.c.bf16 %v3223_v35, %v3223_v35  ;;  %v3227_v47 = vpop.f32.mrb[5].mxu1  ;;  %v1785_v22 = vsel %vm1132_vm8, %v3223_v35, 0.0 }
 0x21d   : > { %v2219_v33 = vpack.c.bf16 %v3227_v47, %v3227_v47  ;;  %v1781_v55 = vsel %vm1132_vm8, %v3227_v47, 0.0  ;;  %v3233_v12 = vpop.f32.mrb[6].mxu1 }
 0x21e   : > { %1732 = vst.msk [vmem:[%s3041_s9 + $0x58] sm:$0xf] %vm1709_vm0, %v2221_v10  ;;  %v1782_v11 = vadd.f32 %v1781_v55, %v1780_v5  ;;  %v2222_v27 = vpack.c.bf16 %v3233_v12, %v3233_v12  ;;  %v3239_v14 = vpop.f32.mrb[7].mxu1  ;;  %v1787_v49 = vsel %vm1132_vm8, %v3233_v12, 0.0 }
 0x21f   : > { %1730 = vst.msk [vmem:[%s3041_s9 + $0x50] sm:$0xf] %vm1709_vm0, %v2219_v33  ;;  %v2220_v16 = vpack.c.bf16 %v3239_v14, %v3239_v14  ;;  %v1783_v17 = vsel %vm1132_vm8, %v3239_v14, 0.0 }
 0x220   : > { %1733 = vst.msk [vmem:[%s3041_s9 + $0x5c] sm:$0xf] %vm1709_vm0, %v2222_v27  ;;  %v1784_v21 = vadd.f32 %v1783_v17, %v1782_v11 }
 0x221   : > { %1731 = vst.msk [vmem:[%s3041_s9 + $0x54] sm:$0xf] %vm1709_vm0, %v2220_v16 }
 0x222   : > { %v1786_v9 = vadd.f32 %v1785_v22, %v1784_v21 }
 0x224   : > { %v1788_v0 = vadd.f32 %v1787_v49, %v1786_v9 }
 0x23b   : > { %v3255_v26 = vpop.f32.mrb[8].mxu1 }
 0x23c   : > { %v2225_v54 = vpack.c.bf16 %v3255_v26, %v3255_v26  ;;  %v3259_v31 = vpop.f32.mrb[9].mxu1  ;;  %v1793_v48 = vsel %vm1132_vm8, %v3255_v26, 0.0 }
 0x23d   : > { %v2223_v34 = vpack.c.bf16 %v3259_v31, %v3259_v31  ;;  %v1789_v38 = vsel %vm1132_vm8, %v3259_v31, 0.0  ;;  %v3265_v28 = vpop.f32.mrb[10].mxu1 }
 0x23e   : > { %1736 = vst.msk [vmem:[%s3041_s9 + $0x68] sm:$0xf] %vm1709_vm0, %v2225_v54  ;;  %v1790_v39 = vadd.f32 %v1789_v38, %v1788_v0  ;;  %v2226_v3 = vpack.c.bf16 %v3265_v28, %v3265_v28  ;;  %v3271_v1 = vpop.f32.mrb[11].mxu1  ;;  %v1795_v50 = vsel %vm1132_vm8, %v3265_v28, 0.0 }
 0x23f   : > { %1734 = vst.msk [vmem:[%s3041_s9 + $0x60] sm:$0xf] %vm1709_vm0, %v2223_v34  ;;  %v2224_v60 = vpack.c.bf16 %v3271_v1, %v3271_v1  ;;  %v1791_v43 = vsel %vm1132_vm8, %v3271_v1, 0.0 }
 0x240   : > { %1737 = vst.msk [vmem:[%s3041_s9 + $0x6c] sm:$0xf] %vm1709_vm0, %v2226_v3  ;;  %v1792_v44 = vadd.f32 %v1791_v43, %v1790_v39 }
 0x241   : > { %1735 = vst.msk [vmem:[%s3041_s9 + $0x64] sm:$0xf] %vm1709_vm0, %v2224_v60 }
 0x242   : > { %v1794_v37 = vadd.f32 %v1793_v48, %v1792_v44 }
 0x244   : > { %v1796_v51 = vadd.f32 %v1795_v50, %v1794_v37 }
 0x25a   : > { %v3287_v52 = vpop.f32.mrb[12].mxu1 }
 0x25b   : > { %v2229_v56 = vpack.c.bf16 %v3287_v52, %v3287_v52  ;;  %v3291_v32 = vpop.f32.mrb[13].mxu1  ;;  %v1801_v10 = vsel %vm1132_vm8, %v3287_v52, 0.0 }
 0x25c   : > { %v2227_v57 = vpack.c.bf16 %v3291_v32, %v3291_v32  ;;  %v1797_v19 = vsel %vm1132_vm8, %v3291_v32, 0.0  ;;  %v3297_v23 = vpop.f32.mrb[14].mxu1 }
 0x25d   : > { %1740 = vst.msk [vmem:[%s3041_s9 + $0x78] sm:$0xf] %vm1709_vm0, %v2229_v56  ;;  %v1798_v58 = vadd.f32 %v1797_v19, %v1796_v51  ;;  %v2230_v8 = vpack.c.bf16 %v3297_v23, %v3297_v23  ;;  %v3303_v62 = vpop.f32.mrb[15].mxu1  ;;  %v1803_v55 = vsel %vm1132_vm8, %v3297_v23, 0.0 }
 0x25e   : > { %1738 = vst.msk [vmem:[%s3041_s9 + $0x70] sm:$0xf] %vm1709_vm0, %v2227_v57  ;;  %v2228_v29 = vpack.c.bf16 %v3303_v62, %v3303_v62  ;;  %v1799_v2 = vsel %vm1132_vm8, %v3303_v62, 0.0 }
 0x25f   : > { %1741 = vst.msk [vmem:[%s3041_s9 + $0x7c] sm:$0xf] %vm1709_vm0, %v2230_v8  ;;  %v1800_v5 = vadd.f32 %v1799_v2, %v1798_v58 }
 0x260   : > { %1739 = vst.msk [vmem:[%s3041_s9 + $0x74] sm:$0xf] %vm1709_vm0, %v2228_v29 }
 0x261   : > { %v1802_v33 = vadd.f32 %v1801_v10, %v1800_v5 }
 0x263   : > { %v1804_v11 = vadd.f32 %v1803_v55, %v1802_v33 }
 0x265   : > { %v1805_v27 = vrot.slane %v1804_v11, 4 }
 0x267   : > { %v1806_v16 = vadd.f32 %v1805_v27, %v1804_v11 }
 0x269   : > { %v1807_v17 = vrot.slane %v1806_v16, 2 }
 0x26b   : > { %v1808_v21 = vadd.f32 %v1807_v17, %v1806_v16 }
 0x26d   : > { %v1809_v22 = vrot.slane %v1808_v21, 1 }
 0x26f   : > { %v3319_v9 = vadd.f32 %v1809_v22, %v1808_v21 }
 0x271   : > { %v3322_v49 = vmul.f32 0.00390625, %v3319_v9 }
 0x273   : > { %v1812_v0 = vsub.f32 %v3049_v30, %v3322_v49  ;;  %v1813_v54 = vsub.f32 %v3063_v40, %v3322_v49  ;;  %v1814_v34 = vsub.f32 %v3043_v6, %v3322_v49  ;;  %v1815_v38 = vsub.f32 %v3054_v45, %v3322_v49 }
 0x274   : > { %v1816_v60 = vsub.f32 %v3099_v63, %v3322_v49  ;;  %v1817_v44 = vsub.f32 %v3111_v7, %v3322_v49  ;;  %v1818_v6 = vsub.f32 %v3095_v61, %v3322_v49  ;;  %v1819_v63 = vsub.f32 %v3105_v4, %v3322_v49 }
 0x275   : > { %v1844_v39 = vmul.f32 %v1812_v0, %v1812_v0  ;;  %v1845_v3 = vmul.f32 %v1813_v54, %v1813_v54  ;;  %v1846_v43 = vmul.f32 %v1814_v34, %v1814_v34  ;;  %v1847_v48 = vmul.f32 %v1815_v38, %v1815_v38 }
 0x276   : > { %v1848_v50 = vmul.f32 %v1816_v60, %v1816_v60  ;;  %v1849_v56 = vmul.f32 %v1817_v44, %v1817_v44  ;;  %v1820_v19 = vsub.f32 %v3131_v15, %v3322_v49  ;;  %v1850_v58 = vmul.f32 %v1818_v6, %v1818_v6 }
 0x277   : > { %v1876_v30 = vsel %vm1132_vm8, %v1844_v39, 0.0  ;;  %v1877_v40 = vsel %vm1132_vm8, %v1845_v3, 0.0  ;;  %v1879_v45 = vsel %vm1132_vm8, %v1846_v43, 0.0  ;;  %v1881_v57 = vsel %vm1132_vm8, %v1847_v48, 0.0 }
 0x278   : > { %v1878_v37 = vadd.f32 %v1877_v40, %v1876_v30  ;;  %v1883_v8 = vsel %vm1132_vm8, %v1848_v50, 0.0  ;;  %v1821_v61 = vsub.f32 %v3143_v25, %v3322_v49  ;;  %v1851_v2 = vmul.f32 %v1819_v63, %v1819_v63 }
 0x279   : > { %v1885_v5 = vsel %vm1132_vm8, %v1849_v56, 0.0  ;;  %v1822_v4 = vsub.f32 %v3127_v13, %v3322_v49  ;;  %v1852_v33 = vmul.f32 %v1820_v19, %v1820_v19  ;;  %v1887_v55 = vsel %vm1132_vm8, %v1850_v58, 0.0 }
 0x27a   : > { %v1880_v51 = vadd.f32 %v1879_v45, %v1878_v37  ;;  %v1823_v15 = vsub.f32 %v3137_v18, %v3322_v49  ;;  %v1853_v27 = vmul.f32 %v1821_v61, %v1821_v61  ;;  %v1889_v16 = vsel %vm1132_vm8, %v1851_v2, 0.0 }
 0x27b   : > { %v1824_v25 = vsub.f32 %v3163_v24, %v3322_v49  ;;  %v1854_v21 = vmul.f32 %v1822_v4, %v1822_v4  ;;  %v1891_v22 = vsel %vm1132_vm8, %v1852_v33, 0.0  ;;  %v1825_v13 = vsub.f32 %v3175_v42, %v3322_v49 }
 0x27c   : > { %v1882_v7 = vadd.f32 %v1881_v57, %v1880_v51  ;;  %v1855_v54 = vmul.f32 %v1823_v15, %v1823_v15  ;;  %v1893_v34 = vsel %vm1132_vm8, %v1853_v27, 0.0  ;;  %v1826_v18 = vsub.f32 %v3159_v36, %v3322_v49 }
 0x27d   : > { %v1856_v39 = vmul.f32 %v1824_v25, %v1824_v25  ;;  %v1895_v3 = vsel %vm1132_vm8, %v1854_v21, 0.0  ;;  %v1827_v24 = vsub.f32 %v3169_v41, %v3322_v49  ;;  %v1857_v43 = vmul.f32 %v1825_v13, %v1825_v13 }
 0x27e   : > { %v1884_v29 = vadd.f32 %v1883_v8, %v1882_v7  ;;  %v1897_v44 = vsel %vm1132_vm8, %v1855_v54, 0.0  ;;  %v1828_v42 = vsub.f32 %v3195_v53, %v3322_v49  ;;  %v1858_v30 = vmul.f32 %v1826_v18, %v1826_v18 }
 0x27f   : > { %v1899_v40 = vsel %vm1132_vm8, %v1856_v39, 0.0  ;;  %v1829_v36 = vsub.f32 %v3207_v59, %v3322_v49  ;;  %v1859_v6 = vmul.f32 %v1827_v24, %v1827_v24  ;;  %v1901_v50 = vsel %vm1132_vm8, %v1857_v43, 0.0 }
 0x280   : > { %v1886_v10 = vadd.f32 %v1885_v5, %v1884_v29  ;;  %v1830_v41 = vsub.f32 %v3191_v46, %v3322_v49  ;;  %v1860_v51 = vmul.f32 %v1828_v42, %v1828_v42  ;;  %v1903_v63 = vsel %vm1132_vm8, %v1858_v30, 0.0 }
 0x281   : > { %v1831_v53 = vsub.f32 %v3201_v20, %v3322_v49  ;;  %v1861_v57 = vmul.f32 %v1829_v36, %v1829_v36  ;;  %v1905_v7 = vsel %vm1132_vm8, %v1859_v6, 0.0  ;;  %v1832_v59 = vsub.f32 %v3227_v47, %v3322_v49 }
 0x282   : > { %v1888_v11 = vadd.f32 %v1887_v55, %v1886_v10  ;;  %v1862_v58 = vmul.f32 %v1830_v41, %v1830_v41  ;;  %v1907_v8 = vsel %vm1132_vm8, %v1860_v51, 0.0  ;;  %v1833_v46 = vsub.f32 %v3239_v14, %v3322_v49 }
 0x283   : > { %v1863_v61 = vmul.f32 %v1831_v53, %v1831_v53  ;;  %v1909_v2 = vsel %vm1132_vm8, %v1861_v57, 0.0  ;;  %v1834_v20 = vsub.f32 %v3223_v35, %v3322_v49  ;;  %v1864_v10 = vmul.f32 %v1832_v59, %v1832_v59 }
 0x284   : > { %v1890_v17 = vadd.f32 %v1889_v16, %v1888_v11  ;;  %v1911_v4 = vsel %vm1132_vm8, %v1862_v58, 0.0  ;;  %v1835_v47 = vsub.f32 %v3233_v12, %v3322_v49  ;;  %v1865_v55 = vmul.f32 %v1833_v46, %v1833_v46 }
 0x285   : > { %v1913_v11 = vsel %vm1132_vm8, %v1863_v61, 0.0  ;;  %v1836_v14 = vsub.f32 %v3259_v31, %v3322_v49  ;;  %v1866_v27 = vmul.f32 %v1834_v20, %v1834_v20  ;;  %v1915_v16 = vsel %vm1132_vm8, %v1864_v10, 0.0 }
 0x286   : > { %v1892_v0 = vadd.f32 %v1891_v22, %v1890_v17  ;;  %v1837_v35 = vsub.f32 %v3271_v1, %v3322_v49  ;;  %v1867_v25 = vmul.f32 %v1835_v47, %v1835_v47  ;;  %v1917_v21 = vsel %vm1132_vm8, %v1865_v55, 0.0 }
 0x287   : > { %v1838_v12 = vsub.f32 %v3255_v26, %v3322_v49  ;;  %v1919_v13 = vsel %vm1132_vm8, %v1866_v27, 0.0  ;;  %v1839_v31 = vsub.f32 %v3265_v28, %v3322_v49  ;;  %v1840_v1 = vsub.f32 %v3291_v32, %v3322_v49 }
 0x288   : > { %v1894_v38 = vadd.f32 %v1893_v34, %v1892_v0  ;;  %v1868_v0 = vmul.f32 %v1836_v14, %v1836_v14  ;;  %v1869_v34 = vmul.f32 %v1837_v35, %v1837_v35  ;;  %v1841_v26 = vsub.f32 %v3303_v62, %v3322_v49 }
 0x289   : > { %v1870_v39 = vmul.f32 %v1838_v12, %v1838_v12  ;;  %v1871_v24 = vmul.f32 %v1839_v31, %v1839_v31  ;;  %v1842_v28 = vsub.f32 %v3287_v52, %v3322_v49  ;;  %v1843_v32 = vsub.f32 %v3297_v23, %v3322_v49 }
 0x28a   : > { %v1896_v60 = vadd.f32 %v1895_v3, %v1894_v38  ;;  %v1921_v38 = vsel %vm1132_vm8, %v1867_v25, 0.0  ;;  %v1923_v3 = vsel %vm1132_vm8, %v1868_v0, 0.0  ;;  %v1925_v43 = vsel %vm1132_vm8, %v1869_v34, 0.0 }
 0x28b   : > { %v1927_v42 = vsel %vm1132_vm8, %v1870_v39, 0.0  ;;  %v1874_v62 = vmul.f32 %v1842_v28, %v1842_v28 }
 0x28c   : > { %v1898_v48 = vadd.f32 %v1897_v44, %v1896_v60 }
 0x28d   : > { %v1935_v51 = vsel %vm1132_vm8, %v1874_v62, 0.0 }
 0x28e   : > { %v1900_v37 = vadd.f32 %v1899_v40, %v1898_v48  ;;  %v1872_v48 = vmul.f32 %v1840_v1, %v1840_v1  ;;  %v1873_v40 = vmul.f32 %v1841_v26, %v1841_v26 }
 0x290   : > { %v1902_v45 = vadd.f32 %v1901_v50, %v1900_v37  ;;  %v1929_v37 = vsel %vm1132_vm8, %v1871_v24, 0.0  ;;  %v1931_v6 = vsel %vm1132_vm8, %v1872_v48, 0.0  ;;  %v1933_v41 = vsel %vm1132_vm8, %v1873_v40, 0.0 }
 0x292   : > { %v1904_v56 = vadd.f32 %v1903_v63, %v1902_v45  ;;  %v1875_v45 = vmul.f32 %v1843_v32, %v1843_v32 }
 0x294   : > { %v1906_v19 = vadd.f32 %v1905_v7, %v1904_v56  ;;  %v1937_v56 = vsel %vm1132_vm8, %v1875_v45, 0.0 }
 0x296   : > { %v1908_v29 = vadd.f32 %v1907_v8, %v1906_v19 }
 0x298   : > { %v1910_v5 = vadd.f32 %v1909_v2, %v1908_v29 }
 0x29a   : > { %v1912_v33 = vadd.f32 %v1911_v4, %v1910_v5 }
 0x29c   : > { %v1914_v15 = vadd.f32 %v1913_v11, %v1912_v33 }
 0x29e   : > { %v1916_v17 = vadd.f32 %v1915_v16, %v1914_v15 }
 0x2a0   : > { %v1918_v22 = vadd.f32 %v1917_v21, %v1916_v17 }
 0x2a2   : > { %v1920_v54 = vadd.f32 %v1919_v13, %v1918_v22 }
 0x2a4   : > { %v1922_v18 = vadd.f32 %v1921_v38, %v1920_v54 }
 0x2a6   : > { %v1924_v60 = vadd.f32 %v1923_v3, %v1922_v18 }
 0x2a8   : > { %v1926_v44 = vadd.f32 %v1925_v43, %v1924_v60 }
 0x2aa   : > { %v1928_v30 = vadd.f32 %v1927_v42, %v1926_v44 }
 0x2ac   : > { %v1930_v36 = vadd.f32 %v1929_v37, %v1928_v30 }
 0x2ae   : > { %v1932_v50 = vadd.f32 %v1931_v6, %v1930_v36 }
 0x2b0   : > { %v1934_v52 = vadd.f32 %v1933_v41, %v1932_v50 }
 0x2b2   : > { %v1936_v63 = vadd.f32 %v1935_v51, %v1934_v52 }
 0x2b4   : > { %v1938_v53 = vadd.f32 %v1937_v56, %v1936_v63 }
 0x2b6   : > { %v1939_v23 = vrot.slane %v1938_v53, 4 }
 0x2b8   : > { %v1940_v49 = vadd.f32 %v1939_v23, %v1938_v53 }
 0x2ba   : > { %v1941_v57 = vrot.slane %v1940_v49, 2 }
 0x2bc   : > { %v1942_v7 = vadd.f32 %v1941_v57, %v1940_v49 }
 0x2be   : > { %v1943_v19 = vrot.slane %v1942_v7, 1 }
 0x2c0   : > { %v1944_v59 = vadd.f32 %v1943_v19, %v1942_v7 }
 0x2c2   : > { %v1946_v58 = vsel %vm552_vm2, %v3319_v9, %v1944_v59 }
 0x2c3   : > { %v1947_v8 = vsel %vm1416_vm6, %v1946_v58, 0.0 }
 0x2c4   : > { %1948 = vst.msk [vmem:[%s210_s17] sm:$0xff] %vm1132_vm8, %v1947_v8 }
 0x2c5 PF: > { %s14_s14 = sadd.s32 1, %s2407_s14   ;;  %s3445_s12 = smov %s2403_s13 }
 0x2c6   : > { %p11_p5 = scmp.ge.s32.totalorder %s14_s14, 4   ;;  %s3446_s13 = smov %s3448_s15 }
 0x2c8   :  { %13 = sbr.rel (!%p11_p5) target bundleno = 2 (0x2), region = 73 }

</bundles_post_ra>
